<compile_context>
chip_gen: v7x
topology: tpu7x:2x2x1
jax: 0.10.0
libtpu: 0.0.40
codegen_flags: <defaults>
</compile_context>

<pallas_src>
import jax
import jax.numpy as jnp
from jax.experimental import pallas as pl
from jax.experimental.pallas import tpu as pltpu


def conv_min_add(x, weight, bias):
    """x: (N, C_in, H, W) f32; weight: (C_out, C_in, 3, 3); bias: (C_out,)."""
    N, C_in, H, W = x.shape
    C_out, _, KH, KW = weight.shape
    assert (KH, KW) == (3, 3)

    Hp, Wp = H + 2, W + 2
    # pad=1 halo (cheap, ~1x input traffic); everything else is in-kernel.
    x_pad = jnp.pad(x, ((0, 0), (0, 0), (1, 1), (1, 1)))

    w_flat = weight.reshape(-1).astype(jnp.float32)    # (C_out*C_in*9,) -> SMEM
    b_fused = (bias + 0.5).astype(jnp.float32)         # (C_out,)        -> SMEM

    def kernel(x_ref, w_ref, b_ref, o_ref):
        # x_ref: (1, C_in, Hp, Wp) VMEM  -- padded image for this grid step
        # w_ref: (C_out*C_in*9,)   SMEM  -- conv weights, (co,ci,kh,kw) C-order
        # b_ref: (C_out,)          SMEM  -- bias + 0.5
        # o_ref: (1, C_out, H, W)  VMEM  -- NCHW output block
        accs = [jnp.zeros((H, W), jnp.float32) for _ in range(C_out)]
        # 27 shifted windows; each window feeds all 8 output channels so it is
        # only loaded once.  Fully unrolled (static trip counts).
        for ci in range(C_in):
            for kh in range(KH):
                for kw in range(KW):
                    win = x_ref[0, ci, pl.ds(kh, H), pl.ds(kw, W)]   # (H, W)
                    for co in range(C_out):
                        widx = ((co * C_in + ci) * KH + kh) * KW + kw
                        accs[co] = accs[co] + w_ref[widx] * win
        # Fused epilogue: min(acc + b, -0.2) + 0.5 == min(acc + (b + 0.5), 0.3)
        for co in range(C_out):
            o_ref[0, co, :, :] = jnp.minimum(accs[co] + b_ref[co], 0.3)

    return pl.pallas_call(
        kernel,
        out_shape=jax.ShapeDtypeStruct((N, C_out, H, W), jnp.float32),
        grid_spec=pl.GridSpec(
            grid=(N,),
            in_specs=[
                pl.BlockSpec((1, C_in, Hp, Wp), lambda n: (n, 0, 0, 0)),
                pl.BlockSpec(memory_space=pltpu.MemorySpace.SMEM),
                pl.BlockSpec(memory_space=pltpu.MemorySpace.SMEM),
            ],
            out_specs=pl.BlockSpec((1, C_out, H, W), lambda n: (n, 0, 0, 0)),
        ),
        compiler_params=pltpu.CompilerParams(
            dimension_semantics=("parallel",)),
    )(x_pad, w_flat, b_fused)


if __name__ == "__main__":
    key = jax.random.PRNGKey(0)
    kx, kw, kb = jax.random.split(key, 3)

    # Small shapes consistent with the module: C_in=3, C_out=8.
    N, C_in, H, W = 2, 3, 16, 16
    C_out = 8

    x = jax.random.normal(kx, (N, C_in, H, W), dtype=jnp.float32)
    # Deterministic Conv2d-like fan-in uniform init.
    fan_in = C_in * 3 * 3
    bound = 1.0 / (fan_in ** 0.5)
    weight = jax.random.uniform(kw, (C_out, C_in, 3, 3), jnp.float32,
                                minval=-bound, maxval=bound)
    bias = jax.random.uniform(kb, (C_out,), jnp.float32,
                              minval=-bound, maxval=bound)

    out = conv_min_add(x, weight, bias)
    jax.block_until_ready(out)

    # Reference: XLA conv with same semantics as torch conv2d(pad=1) + min + add.
    ref = jax.lax.conv_general_dilated(
        x, weight, window_strides=(1, 1), padding=((1, 1), (1, 1)),
        dimension_numbers=("NCHW", "OIHW", "NCHW"),
        precision=jax.lax.Precision.HIGHEST,
    ) + bias.reshape(1, C_out, 1, 1)
    ref = jnp.minimum(ref, -0.2) + 0.5

    assert out.shape == (N, C_out, H, W)
    assert jnp.max(jnp.abs(out - ref)) < 2e-3
    print("KERNEL_OK")
</pallas_src>

<mosaic_0001>
module attributes {stable_mosaic.version = 11 : i64} {
  func.func @kernel(%arg0: i32, %arg1: memref<1x3x18x18xf32, #tpu.memory_space<vmem>>, %arg2: memref<216xf32, #tpu.memory_space<smem>>, %arg3: memref<8xf32, #tpu.memory_space<smem>>, %arg4: memref<1x8x16x16xf32, #tpu.memory_space<vmem>>) attributes {dimension_semantics = [#tpu.dimension_semantics<parallel>], iteration_bounds = array<i64: 2>, scalar_prefetch = 0 : i64, scratch_operands = 0 : i64, tpu.core_type = #tpu.core_type<tc>, window_params = [{transform_indices = @transform_0, window_bounds = array<i64: 1, 3, 18, 18>}, {transform_indices = @transform_1, window_bounds = array<i64: 216>}, {transform_indices = @transform_2, window_bounds = array<i64: 8>}, {transform_indices = @transform_3, window_bounds = array<i64: 1, 8, 16, 16>}]} {
    %cst = arith.constant 0.000000e+00 : f32
    %0 = vector.broadcast %cst : f32 to vector<16x16xf32>
    %cst_0 = arith.constant 0.000000e+00 : f32
    %1 = vector.broadcast %cst_0 : f32 to vector<16x16xf32>
    %cst_1 = arith.constant 0.000000e+00 : f32
    %2 = vector.broadcast %cst_1 : f32 to vector<16x16xf32>
    %cst_2 = arith.constant 0.000000e+00 : f32
    %3 = vector.broadcast %cst_2 : f32 to vector<16x16xf32>
    %cst_3 = arith.constant 0.000000e+00 : f32
    %4 = vector.broadcast %cst_3 : f32 to vector<16x16xf32>
    %cst_4 = arith.constant 0.000000e+00 : f32
    %5 = vector.broadcast %cst_4 : f32 to vector<16x16xf32>
    %cst_5 = arith.constant 0.000000e+00 : f32
    %6 = vector.broadcast %cst_5 : f32 to vector<16x16xf32>
    %cst_6 = arith.constant 0.000000e+00 : f32
    %7 = vector.broadcast %cst_6 : f32 to vector<16x16xf32>
    %c0 = arith.constant 0 : index
    %c0_7 = arith.constant 0 : index
    %c0_8 = arith.constant 0 : index
    %c0_9 = arith.constant 0 : index
    %8 = vector.load %arg1[%c0, %c0_7, %c0_8, %c0_9] : memref<1x3x18x18xf32, #tpu.memory_space<vmem>>, vector<1x1x16x16xf32>
    %9 = vector.shape_cast %8 : vector<1x1x16x16xf32> to vector<16x16xf32>
    %c0_10 = arith.constant 0 : index
    %10 = memref.load %arg2[%c0_10] : memref<216xf32, #tpu.memory_space<smem>>
    %11 = vector.broadcast %10 : f32 to vector<16x16xf32>
    %12 = arith.mulf %11, %9 : vector<16x16xf32>
    %13 = arith.addf %0, %12 : vector<16x16xf32>
    %c27 = arith.constant 27 : index
    %14 = memref.load %arg2[%c27] : memref<216xf32, #tpu.memory_space<smem>>
    %15 = vector.broadcast %14 : f32 to vector<16x16xf32>
    %16 = arith.mulf %15, %9 : vector<16x16xf32>
    %17 = arith.addf %1, %16 : vector<16x16xf32>
    %c54 = arith.constant 54 : index
    %18 = memref.load %arg2[%c54] : memref<216xf32, #tpu.memory_space<smem>>
    %19 = vector.broadcast %18 : f32 to vector<16x16xf32>
    %20 = arith.mulf %19, %9 : vector<16x16xf32>
    %21 = arith.addf %2, %20 : vector<16x16xf32>
    %c81 = arith.constant 81 : index
    %22 = memref.load %arg2[%c81] : memref<216xf32, #tpu.memory_space<smem>>
    %23 = vector.broadcast %22 : f32 to vector<16x16xf32>
    %24 = arith.mulf %23, %9 : vector<16x16xf32>
    %25 = arith.addf %3, %24 : vector<16x16xf32>
    %c108 = arith.constant 108 : index
    %26 = memref.load %arg2[%c108] : memref<216xf32, #tpu.memory_space<smem>>
    %27 = vector.broadcast %26 : f32 to vector<16x16xf32>
    %28 = arith.mulf %27, %9 : vector<16x16xf32>
    %29 = arith.addf %4, %28 : vector<16x16xf32>
    %c135 = arith.constant 135 : index
    %30 = memref.load %arg2[%c135] : memref<216xf32, #tpu.memory_space<smem>>
    %31 = vector.broadcast %30 : f32 to vector<16x16xf32>
    %32 = arith.mulf %31, %9 : vector<16x16xf32>
    %33 = arith.addf %5, %32 : vector<16x16xf32>
    %c162 = arith.constant 162 : index
    %34 = memref.load %arg2[%c162] : memref<216xf32, #tpu.memory_space<smem>>
    %35 = vector.broadcast %34 : f32 to vector<16x16xf32>
    %36 = arith.mulf %35, %9 : vector<16x16xf32>
    %37 = arith.addf %6, %36 : vector<16x16xf32>
    %c189 = arith.constant 189 : index
    %38 = memref.load %arg2[%c189] : memref<216xf32, #tpu.memory_space<smem>>
    %39 = vector.broadcast %38 : f32 to vector<16x16xf32>
    %40 = arith.mulf %39, %9 : vector<16x16xf32>
    %41 = arith.addf %7, %40 : vector<16x16xf32>
    %c0_11 = arith.constant 0 : index
    %c0_12 = arith.constant 0 : index
    %c0_13 = arith.constant 0 : index
    %c1 = arith.constant 1 : index
    %42 = vector.load %arg1[%c0_11, %c0_12, %c0_13, %c1] : memref<1x3x18x18xf32, #tpu.memory_space<vmem>>, vector<1x1x16x16xf32>
    %43 = vector.shape_cast %42 : vector<1x1x16x16xf32> to vector<16x16xf32>
    %c1_14 = arith.constant 1 : index
    %44 = memref.load %arg2[%c1_14] : memref<216xf32, #tpu.memory_space<smem>>
    %45 = vector.broadcast %44 : f32 to vector<16x16xf32>
    %46 = arith.mulf %45, %43 : vector<16x16xf32>
    %47 = arith.addf %13, %46 : vector<16x16xf32>
    %c28 = arith.constant 28 : index
    %48 = memref.load %arg2[%c28] : memref<216xf32, #tpu.memory_space<smem>>
    %49 = vector.broadcast %48 : f32 to vector<16x16xf32>
    %50 = arith.mulf %49, %43 : vector<16x16xf32>
    %51 = arith.addf %17, %50 : vector<16x16xf32>
    %c55 = arith.constant 55 : index
    %52 = memref.load %arg2[%c55] : memref<216xf32, #tpu.memory_space<smem>>
    %53 = vector.broadcast %52 : f32 to vector<16x16xf32>
    %54 = arith.mulf %53, %43 : vector<16x16xf32>
    %55 = arith.addf %21, %54 : vector<16x16xf32>
    %c82 = arith.constant 82 : index
    %56 = memref.load %arg2[%c82] : memref<216xf32, #tpu.memory_space<smem>>
    %57 = vector.broadcast %56 : f32 to vector<16x16xf32>
    %58 = arith.mulf %57, %43 : vector<16x16xf32>
    %59 = arith.addf %25, %58 : vector<16x16xf32>
    %c109 = arith.constant 109 : index
    %60 = memref.load %arg2[%c109] : memref<216xf32, #tpu.memory_space<smem>>
    %61 = vector.broadcast %60 : f32 to vector<16x16xf32>
    %62 = arith.mulf %61, %43 : vector<16x16xf32>
    %63 = arith.addf %29, %62 : vector<16x16xf32>
    %c136 = arith.constant 136 : index
    %64 = memref.load %arg2[%c136] : memref<216xf32, #tpu.memory_space<smem>>
    %65 = vector.broadcast %64 : f32 to vector<16x16xf32>
    %66 = arith.mulf %65, %43 : vector<16x16xf32>
    %67 = arith.addf %33, %66 : vector<16x16xf32>
    %c163 = arith.constant 163 : index
    %68 = memref.load %arg2[%c163] : memref<216xf32, #tpu.memory_space<smem>>
    %69 = vector.broadcast %68 : f32 to vector<16x16xf32>
    %70 = arith.mulf %69, %43 : vector<16x16xf32>
    %71 = arith.addf %37, %70 : vector<16x16xf32>
    %c190 = arith.constant 190 : index
    %72 = memref.load %arg2[%c190] : memref<216xf32, #tpu.memory_space<smem>>
    %73 = vector.broadcast %72 : f32 to vector<16x16xf32>
    %74 = arith.mulf %73, %43 : vector<16x16xf32>
    %75 = arith.addf %41, %74 : vector<16x16xf32>
    %c0_15 = arith.constant 0 : index
    %c0_16 = arith.constant 0 : index
    %c0_17 = arith.constant 0 : index
    %c2 = arith.constant 2 : index
    %76 = vector.load %arg1[%c0_15, %c0_16, %c0_17, %c2] : memref<1x3x18x18xf32, #tpu.memory_space<vmem>>, vector<1x1x16x16xf32>
    %77 = vector.shape_cast %76 : vector<1x1x16x16xf32> to vector<16x16xf32>
    %c2_18 = arith.constant 2 : index
    %78 = memref.load %arg2[%c2_18] : memref<216xf32, #tpu.memory_space<smem>>
    %79 = vector.broadcast %78 : f32 to vector<16x16xf32>
    %80 = arith.mulf %79, %77 : vector<16x16xf32>
    %81 = arith.addf %47, %80 : vector<16x16xf32>
    %c29 = arith.constant 29 : index
    %82 = memref.load %arg2[%c29] : memref<216xf32, #tpu.memory_space<smem>>
    %83 = vector.broadcast %82 : f32 to vector<16x16xf32>
    %84 = arith.mulf %83, %77 : vector<16x16xf32>
    %85 = arith.addf %51, %84 : vector<16x16xf32>
    %c56 = arith.constant 56 : index
    %86 = memref.load %arg2[%c56] : memref<216xf32, #tpu.memory_space<smem>>
    %87 = vector.broadcast %86 : f32 to vector<16x16xf32>
    %88 = arith.mulf %87, %77 : vector<16x16xf32>
    %89 = arith.addf %55, %88 : vector<16x16xf32>
    %c83 = arith.constant 83 : index
    %90 = memref.load %arg2[%c83] : memref<216xf32, #tpu.memory_space<smem>>
    %91 = vector.broadcast %90 : f32 to vector<16x16xf32>
    %92 = arith.mulf %91, %77 : vector<16x16xf32>
    %93 = arith.addf %59, %92 : vector<16x16xf32>
    %c110 = arith.constant 110 : index
    %94 = memref.load %arg2[%c110] : memref<216xf32, #tpu.memory_space<smem>>
    %95 = vector.broadcast %94 : f32 to vector<16x16xf32>
    %96 = arith.mulf %95, %77 : vector<16x16xf32>
    %97 = arith.addf %63, %96 : vector<16x16xf32>
    %c137 = arith.constant 137 : index
    %98 = memref.load %arg2[%c137] : memref<216xf32, #tpu.memory_space<smem>>
    %99 = vector.broadcast %98 : f32 to vector<16x16xf32>
    %100 = arith.mulf %99, %77 : vector<16x16xf32>
    %101 = arith.addf %67, %100 : vector<16x16xf32>
    %c164 = arith.constant 164 : index
    %102 = memref.load %arg2[%c164] : memref<216xf32, #tpu.memory_space<smem>>
    %103 = vector.broadcast %102 : f32 to vector<16x16xf32>
    %104 = arith.mulf %103, %77 : vector<16x16xf32>
    %105 = arith.addf %71, %104 : vector<16x16xf32>
    %c191 = arith.constant 191 : index
    %106 = memref.load %arg2[%c191] : memref<216xf32, #tpu.memory_space<smem>>
    %107 = vector.broadcast %106 : f32 to vector<16x16xf32>
    %108 = arith.mulf %107, %77 : vector<16x16xf32>
    %109 = arith.addf %75, %108 : vector<16x16xf32>
    %c0_19 = arith.constant 0 : index
    %c0_20 = arith.constant 0 : index
    %c1_21 = arith.constant 1 : index
    %c0_22 = arith.constant 0 : index
    %110 = vector.load %arg1[%c0_19, %c0_20, %c1_21, %c0_22] : memref<1x3x18x18xf32, #tpu.memory_space<vmem>>, vector<1x1x16x16xf32>
    %111 = vector.shape_cast %110 : vector<1x1x16x16xf32> to vector<16x16xf32>
    %c3 = arith.constant 3 : index
    %112 = memref.load %arg2[%c3] : memref<216xf32, #tpu.memory_space<smem>>
    %113 = vector.broadcast %112 : f32 to vector<16x16xf32>
    %114 = arith.mulf %113, %111 : vector<16x16xf32>
    %115 = arith.addf %81, %114 : vector<16x16xf32>
    %c30 = arith.constant 30 : index
    %116 = memref.load %arg2[%c30] : memref<216xf32, #tpu.memory_space<smem>>
    %117 = vector.broadcast %116 : f32 to vector<16x16xf32>
    %118 = arith.mulf %117, %111 : vector<16x16xf32>
    %119 = arith.addf %85, %118 : vector<16x16xf32>
    %c57 = arith.constant 57 : index
    %120 = memref.load %arg2[%c57] : memref<216xf32, #tpu.memory_space<smem>>
    %121 = vector.broadcast %120 : f32 to vector<16x16xf32>
    %122 = arith.mulf %121, %111 : vector<16x16xf32>
    %123 = arith.addf %89, %122 : vector<16x16xf32>
    %c84 = arith.constant 84 : index
    %124 = memref.load %arg2[%c84] : memref<216xf32, #tpu.memory_space<smem>>
    %125 = vector.broadcast %124 : f32 to vector<16x16xf32>
    %126 = arith.mulf %125, %111 : vector<16x16xf32>
    %127 = arith.addf %93, %126 : vector<16x16xf32>
    %c111 = arith.constant 111 : index
    %128 = memref.load %arg2[%c111] : memref<216xf32, #tpu.memory_space<smem>>
    %129 = vector.broadcast %128 : f32 to vector<16x16xf32>
    %130 = arith.mulf %129, %111 : vector<16x16xf32>
    %131 = arith.addf %97, %130 : vector<16x16xf32>
    %c138 = arith.constant 138 : index
    %132 = memref.load %arg2[%c138] : memref<216xf32, #tpu.memory_space<smem>>
    %133 = vector.broadcast %132 : f32 to vector<16x16xf32>
    %134 = arith.mulf %133, %111 : vector<16x16xf32>
    %135 = arith.addf %101, %134 : vector<16x16xf32>
    %c165 = arith.constant 165 : index
    %136 = memref.load %arg2[%c165] : memref<216xf32, #tpu.memory_space<smem>>
    %137 = vector.broadcast %136 : f32 to vector<16x16xf32>
    %138 = arith.mulf %137, %111 : vector<16x16xf32>
    %139 = arith.addf %105, %138 : vector<16x16xf32>
    %c192 = arith.constant 192 : index
    %140 = memref.load %arg2[%c192] : memref<216xf32, #tpu.memory_space<smem>>
    %141 = vector.broadcast %140 : f32 to vector<16x16xf32>
    %142 = arith.mulf %141, %111 : vector<16x16xf32>
    %143 = arith.addf %109, %142 : vector<16x16xf32>
    %c0_23 = arith.constant 0 : index
    %c0_24 = arith.constant 0 : index
    %c1_25 = arith.constant 1 : index
    %c1_26 = arith.constant 1 : index
    %144 = vector.load %arg1[%c0_23, %c0_24, %c1_25, %c1_26] : memref<1x3x18x18xf32, #tpu.memory_space<vmem>>, vector<1x1x16x16xf32>
    %145 = vector.shape_cast %144 : vector<1x1x16x16xf32> to vector<16x16xf32>
    %c4 = arith.constant 4 : index
    %146 = memref.load %arg2[%c4] : memref<216xf32, #tpu.memory_space<smem>>
    %147 = vector.broadcast %146 : f32 to vector<16x16xf32>
    %148 = arith.mulf %147, %145 : vector<16x16xf32>
    %149 = arith.addf %115, %148 : vector<16x16xf32>
    %c31 = arith.constant 31 : index
    %150 = memref.load %arg2[%c31] : memref<216xf32, #tpu.memory_space<smem>>
    %151 = vector.broadcast %150 : f32 to vector<16x16xf32>
    %152 = arith.mulf %151, %145 : vector<16x16xf32>
    %153 = arith.addf %119, %152 : vector<16x16xf32>
    %c58 = arith.constant 58 : index
    %154 = memref.load %arg2[%c58] : memref<216xf32, #tpu.memory_space<smem>>
    %155 = vector.broadcast %154 : f32 to vector<16x16xf32>
    %156 = arith.mulf %155, %145 : vector<16x16xf32>
    %157 = arith.addf %123, %156 : vector<16x16xf32>
    %c85 = arith.constant 85 : index
    %158 = memref.load %arg2[%c85] : memref<216xf32, #tpu.memory_space<smem>>
    %159 = vector.broadcast %158 : f32 to vector<16x16xf32>
    %160 = arith.mulf %159, %145 : vector<16x16xf32>
    %161 = arith.addf %127, %160 : vector<16x16xf32>
    %c112 = arith.constant 112 : index
    %162 = memref.load %arg2[%c112] : memref<216xf32, #tpu.memory_space<smem>>
    %163 = vector.broadcast %162 : f32 to vector<16x16xf32>
    %164 = arith.mulf %163, %145 : vector<16x16xf32>
    %165 = arith.addf %131, %164 : vector<16x16xf32>
    %c139 = arith.constant 139 : index
    %166 = memref.load %arg2[%c139] : memref<216xf32, #tpu.memory_space<smem>>
    %167 = vector.broadcast %166 : f32 to vector<16x16xf32>
    %168 = arith.mulf %167, %145 : vector<16x16xf32>
    %169 = arith.addf %135, %168 : vector<16x16xf32>
    %c166 = arith.constant 166 : index
    %170 = memref.load %arg2[%c166] : memref<216xf32, #tpu.memory_space<smem>>
    %171 = vector.broadcast %170 : f32 to vector<16x16xf32>
    %172 = arith.mulf %171, %145 : vector<16x16xf32>
    %173 = arith.addf %139, %172 : vector<16x16xf32>
    %c193 = arith.constant 193 : index
    %174 = memref.load %arg2[%c193] : memref<216xf32, #tpu.memory_space<smem>>
    %175 = vector.broadcast %174 : f32 to vector<16x16xf32>
    %176 = arith.mulf %175, %145 : vector<16x16xf32>
    %177 = arith.addf %143, %176 : vector<16x16xf32>
    %c0_27 = arith.constant 0 : index
    %c0_28 = arith.constant 0 : index
    %c1_29 = arith.constant 1 : index
    %c2_30 = arith.constant 2 : index
    %178 = vector.load %arg1[%c0_27, %c0_28, %c1_29, %c2_30] : memref<1x3x18x18xf32, #tpu.memory_space<vmem>>, vector<1x1x16x16xf32>
    %179 = vector.shape_cast %178 : vector<1x1x16x16xf32> to vector<16x16xf32>
    %c5 = arith.constant 5 : index
    %180 = memref.load %arg2[%c5] : memref<216xf32, #tpu.memory_space<smem>>
    %181 = vector.broadcast %180 : f32 to vector<16x16xf32>
    %182 = arith.mulf %181, %179 : vector<16x16xf32>
    %183 = arith.addf %149, %182 : vector<16x16xf32>
    %c32 = arith.constant 32 : index
    %184 = memref.load %arg2[%c32] : memref<216xf32, #tpu.memory_space<smem>>
    %185 = vector.broadcast %184 : f32 to vector<16x16xf32>
    %186 = arith.mulf %185, %179 : vector<16x16xf32>
    %187 = arith.addf %153, %186 : vector<16x16xf32>
    %c59 = arith.constant 59 : index
    %188 = memref.load %arg2[%c59] : memref<216xf32, #tpu.memory_space<smem>>
    %189 = vector.broadcast %188 : f32 to vector<16x16xf32>
    %190 = arith.mulf %189, %179 : vector<16x16xf32>
    %191 = arith.addf %157, %190 : vector<16x16xf32>
    %c86 = arith.constant 86 : index
    %192 = memref.load %arg2[%c86] : memref<216xf32, #tpu.memory_space<smem>>
    %193 = vector.broadcast %192 : f32 to vector<16x16xf32>
    %194 = arith.mulf %193, %179 : vector<16x16xf32>
    %195 = arith.addf %161, %194 : vector<16x16xf32>
    %c113 = arith.constant 113 : index
    %196 = memref.load %arg2[%c113] : memref<216xf32, #tpu.memory_space<smem>>
    %197 = vector.broadcast %196 : f32 to vector<16x16xf32>
    %198 = arith.mulf %197, %179 : vector<16x16xf32>
    %199 = arith.addf %165, %198 : vector<16x16xf32>
    %c140 = arith.constant 140 : index
    %200 = memref.load %arg2[%c140] : memref<216xf32, #tpu.memory_space<smem>>
    %201 = vector.broadcast %200 : f32 to vector<16x16xf32>
    %202 = arith.mulf %201, %179 : vector<16x16xf32>
    %203 = arith.addf %169, %202 : vector<16x16xf32>
    %c167 = arith.constant 167 : index
    %204 = memref.load %arg2[%c167] : memref<216xf32, #tpu.memory_space<smem>>
    %205 = vector.broadcast %204 : f32 to vector<16x16xf32>
    %206 = arith.mulf %205, %179 : vector<16x16xf32>
    %207 = arith.addf %173, %206 : vector<16x16xf32>
    %c194 = arith.constant 194 : index
    %208 = memref.load %arg2[%c194] : memref<216xf32, #tpu.memory_space<smem>>
    %209 = vector.broadcast %208 : f32 to vector<16x16xf32>
    %210 = arith.mulf %209, %179 : vector<16x16xf32>
    %211 = arith.addf %177, %210 : vector<16x16xf32>
    %c0_31 = arith.constant 0 : index
    %c0_32 = arith.constant 0 : index
    %c2_33 = arith.constant 2 : index
    %c0_34 = arith.constant 0 : index
    %212 = vector.load %arg1[%c0_31, %c0_32, %c2_33, %c0_34] : memref<1x3x18x18xf32, #tpu.memory_space<vmem>>, vector<1x1x16x16xf32>
    %213 = vector.shape_cast %212 : vector<1x1x16x16xf32> to vector<16x16xf32>
    %c6 = arith.constant 6 : index
    %214 = memref.load %arg2[%c6] : memref<216xf32, #tpu.memory_space<smem>>
    %215 = vector.broadcast %214 : f32 to vector<16x16xf32>
    %216 = arith.mulf %215, %213 : vector<16x16xf32>
    %217 = arith.addf %183, %216 : vector<16x16xf32>
    %c33 = arith.constant 33 : index
    %218 = memref.load %arg2[%c33] : memref<216xf32, #tpu.memory_space<smem>>
    %219 = vector.broadcast %218 : f32 to vector<16x16xf32>
    %220 = arith.mulf %219, %213 : vector<16x16xf32>
    %221 = arith.addf %187, %220 : vector<16x16xf32>
    %c60 = arith.constant 60 : index
    %222 = memref.load %arg2[%c60] : memref<216xf32, #tpu.memory_space<smem>>
    %223 = vector.broadcast %222 : f32 to vector<16x16xf32>
    %224 = arith.mulf %223, %213 : vector<16x16xf32>
    %225 = arith.addf %191, %224 : vector<16x16xf32>
    %c87 = arith.constant 87 : index
    %226 = memref.load %arg2[%c87] : memref<216xf32, #tpu.memory_space<smem>>
    %227 = vector.broadcast %226 : f32 to vector<16x16xf32>
    %228 = arith.mulf %227, %213 : vector<16x16xf32>
    %229 = arith.addf %195, %228 : vector<16x16xf32>
    %c114 = arith.constant 114 : index
    %230 = memref.load %arg2[%c114] : memref<216xf32, #tpu.memory_space<smem>>
    %231 = vector.broadcast %230 : f32 to vector<16x16xf32>
    %232 = arith.mulf %231, %213 : vector<16x16xf32>
    %233 = arith.addf %199, %232 : vector<16x16xf32>
    %c141 = arith.constant 141 : index
    %234 = memref.load %arg2[%c141] : memref<216xf32, #tpu.memory_space<smem>>
    %235 = vector.broadcast %234 : f32 to vector<16x16xf32>
    %236 = arith.mulf %235, %213 : vector<16x16xf32>
    %237 = arith.addf %203, %236 : vector<16x16xf32>
    %c168 = arith.constant 168 : index
    %238 = memref.load %arg2[%c168] : memref<216xf32, #tpu.memory_space<smem>>
    %239 = vector.broadcast %238 : f32 to vector<16x16xf32>
    %240 = arith.mulf %239, %213 : vector<16x16xf32>
    %241 = arith.addf %207, %240 : vector<16x16xf32>
    %c195 = arith.constant 195 : index
    %242 = memref.load %arg2[%c195] : memref<216xf32, #tpu.memory_space<smem>>
    %243 = vector.broadcast %242 : f32 to vector<16x16xf32>
    %244 = arith.mulf %243, %213 : vector<16x16xf32>
    %245 = arith.addf %211, %244 : vector<16x16xf32>
    %c0_35 = arith.constant 0 : index
    %c0_36 = arith.constant 0 : index
    %c2_37 = arith.constant 2 : index
    %c1_38 = arith.constant 1 : index
    %246 = vector.load %arg1[%c0_35, %c0_36, %c2_37, %c1_38] : memref<1x3x18x18xf32, #tpu.memory_space<vmem>>, vector<1x1x16x16xf32>
    %247 = vector.shape_cast %246 : vector<1x1x16x16xf32> to vector<16x16xf32>
    %c7 = arith.constant 7 : index
    %248 = memref.load %arg2[%c7] : memref<216xf32, #tpu.memory_space<smem>>
    %249 = vector.broadcast %248 : f32 to vector<16x16xf32>
    %250 = arith.mulf %249, %247 : vector<16x16xf32>
    %251 = arith.addf %217, %250 : vector<16x16xf32>
    %c34 = arith.constant 34 : index
    %252 = memref.load %arg2[%c34] : memref<216xf32, #tpu.memory_space<smem>>
    %253 = vector.broadcast %252 : f32 to vector<16x16xf32>
    %254 = arith.mulf %253, %247 : vector<16x16xf32>
    %255 = arith.addf %221, %254 : vector<16x16xf32>
    %c61 = arith.constant 61 : index
    %256 = memref.load %arg2[%c61] : memref<216xf32, #tpu.memory_space<smem>>
    %257 = vector.broadcast %256 : f32 to vector<16x16xf32>
    %258 = arith.mulf %257, %247 : vector<16x16xf32>
    %259 = arith.addf %225, %258 : vector<16x16xf32>
    %c88 = arith.constant 88 : index
    %260 = memref.load %arg2[%c88] : memref<216xf32, #tpu.memory_space<smem>>
    %261 = vector.broadcast %260 : f32 to vector<16x16xf32>
    %262 = arith.mulf %261, %247 : vector<16x16xf32>
    %263 = arith.addf %229, %262 : vector<16x16xf32>
    %c115 = arith.constant 115 : index
    %264 = memref.load %arg2[%c115] : memref<216xf32, #tpu.memory_space<smem>>
    %265 = vector.broadcast %264 : f32 to vector<16x16xf32>
    %266 = arith.mulf %265, %247 : vector<16x16xf32>
    %267 = arith.addf %233, %266 : vector<16x16xf32>
    %c142 = arith.constant 142 : index
    %268 = memref.load %arg2[%c142] : memref<216xf32, #tpu.memory_space<smem>>
    %269 = vector.broadcast %268 : f32 to vector<16x16xf32>
    %270 = arith.mulf %269, %247 : vector<16x16xf32>
    %271 = arith.addf %237, %270 : vector<16x16xf32>
    %c169 = arith.constant 169 : index
    %272 = memref.load %arg2[%c169] : memref<216xf32, #tpu.memory_space<smem>>
    %273 = vector.broadcast %272 : f32 to vector<16x16xf32>
    %274 = arith.mulf %273, %247 : vector<16x16xf32>
    %275 = arith.addf %241, %274 : vector<16x16xf32>
    %c196 = arith.constant 196 : index
    %276 = memref.load %arg2[%c196] : memref<216xf32, #tpu.memory_space<smem>>
    %277 = vector.broadcast %276 : f32 to vector<16x16xf32>
    %278 = arith.mulf %277, %247 : vector<16x16xf32>
    %279 = arith.addf %245, %278 : vector<16x16xf32>
    %c0_39 = arith.constant 0 : index
    %c0_40 = arith.constant 0 : index
    %c2_41 = arith.constant 2 : index
    %c2_42 = arith.constant 2 : index
    %280 = vector.load %arg1[%c0_39, %c0_40, %c2_41, %c2_42] : memref<1x3x18x18xf32, #tpu.memory_space<vmem>>, vector<1x1x16x16xf32>
    %281 = vector.shape_cast %280 : vector<1x1x16x16xf32> to vector<16x16xf32>
    %c8 = arith.constant 8 : index
    %282 = memref.load %arg2[%c8] : memref<216xf32, #tpu.memory_space<smem>>
    %283 = vector.broadcast %282 : f32 to vector<16x16xf32>
    %284 = arith.mulf %283, %281 : vector<16x16xf32>
    %285 = arith.addf %251, %284 : vector<16x16xf32>
    %c35 = arith.constant 35 : index
    %286 = memref.load %arg2[%c35] : memref<216xf32, #tpu.memory_space<smem>>
    %287 = vector.broadcast %286 : f32 to vector<16x16xf32>
    %288 = arith.mulf %287, %281 : vector<16x16xf32>
    %289 = arith.addf %255, %288 : vector<16x16xf32>
    %c62 = arith.constant 62 : index
    %290 = memref.load %arg2[%c62] : memref<216xf32, #tpu.memory_space<smem>>
    %291 = vector.broadcast %290 : f32 to vector<16x16xf32>
    %292 = arith.mulf %291, %281 : vector<16x16xf32>
    %293 = arith.addf %259, %292 : vector<16x16xf32>
    %c89 = arith.constant 89 : index
    %294 = memref.load %arg2[%c89] : memref<216xf32, #tpu.memory_space<smem>>
    %295 = vector.broadcast %294 : f32 to vector<16x16xf32>
    %296 = arith.mulf %295, %281 : vector<16x16xf32>
    %297 = arith.addf %263, %296 : vector<16x16xf32>
    %c116 = arith.constant 116 : index
    %298 = memref.load %arg2[%c116] : memref<216xf32, #tpu.memory_space<smem>>
    %299 = vector.broadcast %298 : f32 to vector<16x16xf32>
    %300 = arith.mulf %299, %281 : vector<16x16xf32>
    %301 = arith.addf %267, %300 : vector<16x16xf32>
    %c143 = arith.constant 143 : index
    %302 = memref.load %arg2[%c143] : memref<216xf32, #tpu.memory_space<smem>>
    %303 = vector.broadcast %302 : f32 to vector<16x16xf32>
    %304 = arith.mulf %303, %281 : vector<16x16xf32>
    %305 = arith.addf %271, %304 : vector<16x16xf32>
    %c170 = arith.constant 170 : index
    %306 = memref.load %arg2[%c170] : memref<216xf32, #tpu.memory_space<smem>>
    %307 = vector.broadcast %306 : f32 to vector<16x16xf32>
    %308 = arith.mulf %307, %281 : vector<16x16xf32>
    %309 = arith.addf %275, %308 : vector<16x16xf32>
    %c197 = arith.constant 197 : index
    %310 = memref.load %arg2[%c197] : memref<216xf32, #tpu.memory_space<smem>>
    %311 = vector.broadcast %310 : f32 to vector<16x16xf32>
    %312 = arith.mulf %311, %281 : vector<16x16xf32>
    %313 = arith.addf %279, %312 : vector<16x16xf32>
    %c0_43 = arith.constant 0 : index
    %c1_44 = arith.constant 1 : index
    %c0_45 = arith.constant 0 : index
    %c0_46 = arith.constant 0 : index
    %314 = vector.load %arg1[%c0_43, %c1_44, %c0_45, %c0_46] : memref<1x3x18x18xf32, #tpu.memory_space<vmem>>, vector<1x1x16x16xf32>
    %315 = vector.shape_cast %314 : vector<1x1x16x16xf32> to vector<16x16xf32>
    %c9 = arith.constant 9 : index
    %316 = memref.load %arg2[%c9] : memref<216xf32, #tpu.memory_space<smem>>
    %317 = vector.broadcast %316 : f32 to vector<16x16xf32>
    %318 = arith.mulf %317, %315 : vector<16x16xf32>
    %319 = arith.addf %285, %318 : vector<16x16xf32>
    %c36 = arith.constant 36 : index
    %320 = memref.load %arg2[%c36] : memref<216xf32, #tpu.memory_space<smem>>
    %321 = vector.broadcast %320 : f32 to vector<16x16xf32>
    %322 = arith.mulf %321, %315 : vector<16x16xf32>
    %323 = arith.addf %289, %322 : vector<16x16xf32>
    %c63 = arith.constant 63 : index
    %324 = memref.load %arg2[%c63] : memref<216xf32, #tpu.memory_space<smem>>
    %325 = vector.broadcast %324 : f32 to vector<16x16xf32>
    %326 = arith.mulf %325, %315 : vector<16x16xf32>
    %327 = arith.addf %293, %326 : vector<16x16xf32>
    %c90 = arith.constant 90 : index
    %328 = memref.load %arg2[%c90] : memref<216xf32, #tpu.memory_space<smem>>
    %329 = vector.broadcast %328 : f32 to vector<16x16xf32>
    %330 = arith.mulf %329, %315 : vector<16x16xf32>
    %331 = arith.addf %297, %330 : vector<16x16xf32>
    %c117 = arith.constant 117 : index
    %332 = memref.load %arg2[%c117] : memref<216xf32, #tpu.memory_space<smem>>
    %333 = vector.broadcast %332 : f32 to vector<16x16xf32>
    %334 = arith.mulf %333, %315 : vector<16x16xf32>
    %335 = arith.addf %301, %334 : vector<16x16xf32>
    %c144 = arith.constant 144 : index
    %336 = memref.load %arg2[%c144] : memref<216xf32, #tpu.memory_space<smem>>
    %337 = vector.broadcast %336 : f32 to vector<16x16xf32>
    %338 = arith.mulf %337, %315 : vector<16x16xf32>
    %339 = arith.addf %305, %338 : vector<16x16xf32>
    %c171 = arith.constant 171 : index
    %340 = memref.load %arg2[%c171] : memref<216xf32, #tpu.memory_space<smem>>
    %341 = vector.broadcast %340 : f32 to vector<16x16xf32>
    %342 = arith.mulf %341, %315 : vector<16x16xf32>
    %343 = arith.addf %309, %342 : vector<16x16xf32>
    %c198 = arith.constant 198 : index
    %344 = memref.load %arg2[%c198] : memref<216xf32, #tpu.memory_space<smem>>
    %345 = vector.broadcast %344 : f32 to vector<16x16xf32>
    %346 = arith.mulf %345, %315 : vector<16x16xf32>
    %347 = arith.addf %313, %346 : vector<16x16xf32>
    %c0_47 = arith.constant 0 : index
    %c1_48 = arith.constant 1 : index
    %c0_49 = arith.constant 0 : index
    %c1_50 = arith.constant 1 : index
    %348 = vector.load %arg1[%c0_47, %c1_48, %c0_49, %c1_50] : memref<1x3x18x18xf32, #tpu.memory_space<vmem>>, vector<1x1x16x16xf32>
    %349 = vector.shape_cast %348 : vector<1x1x16x16xf32> to vector<16x16xf32>
    %c10 = arith.constant 10 : index
    %350 = memref.load %arg2[%c10] : memref<216xf32, #tpu.memory_space<smem>>
    %351 = vector.broadcast %350 : f32 to vector<16x16xf32>
    %352 = arith.mulf %351, %349 : vector<16x16xf32>
    %353 = arith.addf %319, %352 : vector<16x16xf32>
    %c37 = arith.constant 37 : index
    %354 = memref.load %arg2[%c37] : memref<216xf32, #tpu.memory_space<smem>>
    %355 = vector.broadcast %354 : f32 to vector<16x16xf32>
    %356 = arith.mulf %355, %349 : vector<16x16xf32>
    %357 = arith.addf %323, %356 : vector<16x16xf32>
    %c64 = arith.constant 64 : index
    %358 = memref.load %arg2[%c64] : memref<216xf32, #tpu.memory_space<smem>>
    %359 = vector.broadcast %358 : f32 to vector<16x16xf32>
    %360 = arith.mulf %359, %349 : vector<16x16xf32>
    %361 = arith.addf %327, %360 : vector<16x16xf32>
    %c91 = arith.constant 91 : index
    %362 = memref.load %arg2[%c91] : memref<216xf32, #tpu.memory_space<smem>>
    %363 = vector.broadcast %362 : f32 to vector<16x16xf32>
    %364 = arith.mulf %363, %349 : vector<16x16xf32>
    %365 = arith.addf %331, %364 : vector<16x16xf32>
    %c118 = arith.constant 118 : index
    %366 = memref.load %arg2[%c118] : memref<216xf32, #tpu.memory_space<smem>>
    %367 = vector.broadcast %366 : f32 to vector<16x16xf32>
    %368 = arith.mulf %367, %349 : vector<16x16xf32>
    %369 = arith.addf %335, %368 : vector<16x16xf32>
    %c145 = arith.constant 145 : index
    %370 = memref.load %arg2[%c145] : memref<216xf32, #tpu.memory_space<smem>>
    %371 = vector.broadcast %370 : f32 to vector<16x16xf32>
    %372 = arith.mulf %371, %349 : vector<16x16xf32>
    %373 = arith.addf %339, %372 : vector<16x16xf32>
    %c172 = arith.constant 172 : index
    %374 = memref.load %arg2[%c172] : memref<216xf32, #tpu.memory_space<smem>>
    %375 = vector.broadcast %374 : f32 to vector<16x16xf32>
    %376 = arith.mulf %375, %349 : vector<16x16xf32>
    %377 = arith.addf %343, %376 : vector<16x16xf32>
    %c199 = arith.constant 199 : index
    %378 = memref.load %arg2[%c199] : memref<216xf32, #tpu.memory_space<smem>>
    %379 = vector.broadcast %378 : f32 to vector<16x16xf32>
    %380 = arith.mulf %379, %349 : vector<16x16xf32>
    %381 = arith.addf %347, %380 : vector<16x16xf32>
    %c0_51 = arith.constant 0 : index
    %c1_52 = arith.constant 1 : index
    %c0_53 = arith.constant 0 : index
    %c2_54 = arith.constant 2 : index
    %382 = vector.load %arg1[%c0_51, %c1_52, %c0_53, %c2_54] : memref<1x3x18x18xf32, #tpu.memory_space<vmem>>, vector<1x1x16x16xf32>
    %383 = vector.shape_cast %382 : vector<1x1x16x16xf32> to vector<16x16xf32>
    %c11 = arith.constant 11 : index
    %384 = memref.load %arg2[%c11] : memref<216xf32, #tpu.memory_space<smem>>
    %385 = vector.broadcast %384 : f32 to vector<16x16xf32>
    %386 = arith.mulf %385, %383 : vector<16x16xf32>
    %387 = arith.addf %353, %386 : vector<16x16xf32>
    %c38 = arith.constant 38 : index
    %388 = memref.load %arg2[%c38] : memref<216xf32, #tpu.memory_space<smem>>
    %389 = vector.broadcast %388 : f32 to vector<16x16xf32>
    %390 = arith.mulf %389, %383 : vector<16x16xf32>
    %391 = arith.addf %357, %390 : vector<16x16xf32>
    %c65 = arith.constant 65 : index
    %392 = memref.load %arg2[%c65] : memref<216xf32, #tpu.memory_space<smem>>
    %393 = vector.broadcast %392 : f32 to vector<16x16xf32>
    %394 = arith.mulf %393, %383 : vector<16x16xf32>
    %395 = arith.addf %361, %394 : vector<16x16xf32>
    %c92 = arith.constant 92 : index
    %396 = memref.load %arg2[%c92] : memref<216xf32, #tpu.memory_space<smem>>
    %397 = vector.broadcast %396 : f32 to vector<16x16xf32>
    %398 = arith.mulf %397, %383 : vector<16x16xf32>
    %399 = arith.addf %365, %398 : vector<16x16xf32>
    %c119 = arith.constant 119 : index
    %400 = memref.load %arg2[%c119] : memref<216xf32, #tpu.memory_space<smem>>
    %401 = vector.broadcast %400 : f32 to vector<16x16xf32>
    %402 = arith.mulf %401, %383 : vector<16x16xf32>
    %403 = arith.addf %369, %402 : vector<16x16xf32>
    %c146 = arith.constant 146 : index
    %404 = memref.load %arg2[%c146] : memref<216xf32, #tpu.memory_space<smem>>
    %405 = vector.broadcast %404 : f32 to vector<16x16xf32>
    %406 = arith.mulf %405, %383 : vector<16x16xf32>
    %407 = arith.addf %373, %406 : vector<16x16xf32>
    %c173 = arith.constant 173 : index
    %408 = memref.load %arg2[%c173] : memref<216xf32, #tpu.memory_space<smem>>
    %409 = vector.broadcast %408 : f32 to vector<16x16xf32>
    %410 = arith.mulf %409, %383 : vector<16x16xf32>
    %411 = arith.addf %377, %410 : vector<16x16xf32>
    %c200 = arith.constant 200 : index
    %412 = memref.load %arg2[%c200] : memref<216xf32, #tpu.memory_space<smem>>
    %413 = vector.broadcast %412 : f32 to vector<16x16xf32>
    %414 = arith.mulf %413, %383 : vector<16x16xf32>
    %415 = arith.addf %381, %414 : vector<16x16xf32>
    %c0_55 = arith.constant 0 : index
    %c1_56 = arith.constant 1 : index
    %c1_57 = arith.constant 1 : index
    %c0_58 = arith.constant 0 : index
    %416 = vector.load %arg1[%c0_55, %c1_56, %c1_57, %c0_58] : memref<1x3x18x18xf32, #tpu.memory_space<vmem>>, vector<1x1x16x16xf32>
    %417 = vector.shape_cast %416 : vector<1x1x16x16xf32> to vector<16x16xf32>
    %c12 = arith.constant 12 : index
    %418 = memref.load %arg2[%c12] : memref<216xf32, #tpu.memory_space<smem>>
    %419 = vector.broadcast %418 : f32 to vector<16x16xf32>
    %420 = arith.mulf %419, %417 : vector<16x16xf32>
    %421 = arith.addf %387, %420 : vector<16x16xf32>
    %c39 = arith.constant 39 : index
    %422 = memref.load %arg2[%c39] : memref<216xf32, #tpu.memory_space<smem>>
    %423 = vector.broadcast %422 : f32 to vector<16x16xf32>
    %424 = arith.mulf %423, %417 : vector<16x16xf32>
    %425 = arith.addf %391, %424 : vector<16x16xf32>
    %c66 = arith.constant 66 : index
    %426 = memref.load %arg2[%c66] : memref<216xf32, #tpu.memory_space<smem>>
    %427 = vector.broadcast %426 : f32 to vector<16x16xf32>
    %428 = arith.mulf %427, %417 : vector<16x16xf32>
    %429 = arith.addf %395, %428 : vector<16x16xf32>
    %c93 = arith.constant 93 : index
    %430 = memref.load %arg2[%c93] : memref<216xf32, #tpu.memory_space<smem>>
    %431 = vector.broadcast %430 : f32 to vector<16x16xf32>
    %432 = arith.mulf %431, %417 : vector<16x16xf32>
    %433 = arith.addf %399, %432 : vector<16x16xf32>
    %c120 = arith.constant 120 : index
    %434 = memref.load %arg2[%c120] : memref<216xf32, #tpu.memory_space<smem>>
    %435 = vector.broadcast %434 : f32 to vector<16x16xf32>
    %436 = arith.mulf %435, %417 : vector<16x16xf32>
    %437 = arith.addf %403, %436 : vector<16x16xf32>
    %c147 = arith.constant 147 : index
    %438 = memref.load %arg2[%c147] : memref<216xf32, #tpu.memory_space<smem>>
    %439 = vector.broadcast %438 : f32 to vector<16x16xf32>
    %440 = arith.mulf %439, %417 : vector<16x16xf32>
    %441 = arith.addf %407, %440 : vector<16x16xf32>
    %c174 = arith.constant 174 : index
    %442 = memref.load %arg2[%c174] : memref<216xf32, #tpu.memory_space<smem>>
    %443 = vector.broadcast %442 : f32 to vector<16x16xf32>
    %444 = arith.mulf %443, %417 : vector<16x16xf32>
    %445 = arith.addf %411, %444 : vector<16x16xf32>
    %c201 = arith.constant 201 : index
    %446 = memref.load %arg2[%c201] : memref<216xf32, #tpu.memory_space<smem>>
    %447 = vector.broadcast %446 : f32 to vector<16x16xf32>
    %448 = arith.mulf %447, %417 : vector<16x16xf32>
    %449 = arith.addf %415, %448 : vector<16x16xf32>
    %c0_59 = arith.constant 0 : index
    %c1_60 = arith.constant 1 : index
    %c1_61 = arith.constant 1 : index
    %c1_62 = arith.constant 1 : index
    %450 = vector.load %arg1[%c0_59, %c1_60, %c1_61, %c1_62] : memref<1x3x18x18xf32, #tpu.memory_space<vmem>>, vector<1x1x16x16xf32>
    %451 = vector.shape_cast %450 : vector<1x1x16x16xf32> to vector<16x16xf32>
    %c13 = arith.constant 13 : index
    %452 = memref.load %arg2[%c13] : memref<216xf32, #tpu.memory_space<smem>>
    %453 = vector.broadcast %452 : f32 to vector<16x16xf32>
    %454 = arith.mulf %453, %451 : vector<16x16xf32>
    %455 = arith.addf %421, %454 : vector<16x16xf32>
    %c40 = arith.constant 40 : index
    %456 = memref.load %arg2[%c40] : memref<216xf32, #tpu.memory_space<smem>>
    %457 = vector.broadcast %456 : f32 to vector<16x16xf32>
    %458 = arith.mulf %457, %451 : vector<16x16xf32>
    %459 = arith.addf %425, %458 : vector<16x16xf32>
    %c67 = arith.constant 67 : index
    %460 = memref.load %arg2[%c67] : memref<216xf32, #tpu.memory_space<smem>>
    %461 = vector.broadcast %460 : f32 to vector<16x16xf32>
    %462 = arith.mulf %461, %451 : vector<16x16xf32>
    %463 = arith.addf %429, %462 : vector<16x16xf32>
    %c94 = arith.constant 94 : index
    %464 = memref.load %arg2[%c94] : memref<216xf32, #tpu.memory_space<smem>>
    %465 = vector.broadcast %464 : f32 to vector<16x16xf32>
    %466 = arith.mulf %465, %451 : vector<16x16xf32>
    %467 = arith.addf %433, %466 : vector<16x16xf32>
    %c121 = arith.constant 121 : index
    %468 = memref.load %arg2[%c121] : memref<216xf32, #tpu.memory_space<smem>>
    %469 = vector.broadcast %468 : f32 to vector<16x16xf32>
    %470 = arith.mulf %469, %451 : vector<16x16xf32>
    %471 = arith.addf %437, %470 : vector<16x16xf32>
    %c148 = arith.constant 148 : index
    %472 = memref.load %arg2[%c148] : memref<216xf32, #tpu.memory_space<smem>>
    %473 = vector.broadcast %472 : f32 to vector<16x16xf32>
    %474 = arith.mulf %473, %451 : vector<16x16xf32>
    %475 = arith.addf %441, %474 : vector<16x16xf32>
    %c175 = arith.constant 175 : index
    %476 = memref.load %arg2[%c175] : memref<216xf32, #tpu.memory_space<smem>>
    %477 = vector.broadcast %476 : f32 to vector<16x16xf32>
    %478 = arith.mulf %477, %451 : vector<16x16xf32>
    %479 = arith.addf %445, %478 : vector<16x16xf32>
    %c202 = arith.constant 202 : index
    %480 = memref.load %arg2[%c202] : memref<216xf32, #tpu.memory_space<smem>>
    %481 = vector.broadcast %480 : f32 to vector<16x16xf32>
    %482 = arith.mulf %481, %451 : vector<16x16xf32>
    %483 = arith.addf %449, %482 : vector<16x16xf32>
    %c0_63 = arith.constant 0 : index
    %c1_64 = arith.constant 1 : index
    %c1_65 = arith.constant 1 : index
    %c2_66 = arith.constant 2 : index
    %484 = vector.load %arg1[%c0_63, %c1_64, %c1_65, %c2_66] : memref<1x3x18x18xf32, #tpu.memory_space<vmem>>, vector<1x1x16x16xf32>
    %485 = vector.shape_cast %484 : vector<1x1x16x16xf32> to vector<16x16xf32>
    %c14 = arith.constant 14 : index
    %486 = memref.load %arg2[%c14] : memref<216xf32, #tpu.memory_space<smem>>
    %487 = vector.broadcast %486 : f32 to vector<16x16xf32>
    %488 = arith.mulf %487, %485 : vector<16x16xf32>
    %489 = arith.addf %455, %488 : vector<16x16xf32>
    %c41 = arith.constant 41 : index
    %490 = memref.load %arg2[%c41] : memref<216xf32, #tpu.memory_space<smem>>
    %491 = vector.broadcast %490 : f32 to vector<16x16xf32>
    %492 = arith.mulf %491, %485 : vector<16x16xf32>
    %493 = arith.addf %459, %492 : vector<16x16xf32>
    %c68 = arith.constant 68 : index
    %494 = memref.load %arg2[%c68] : memref<216xf32, #tpu.memory_space<smem>>
    %495 = vector.broadcast %494 : f32 to vector<16x16xf32>
    %496 = arith.mulf %495, %485 : vector<16x16xf32>
    %497 = arith.addf %463, %496 : vector<16x16xf32>
    %c95 = arith.constant 95 : index
    %498 = memref.load %arg2[%c95] : memref<216xf32, #tpu.memory_space<smem>>
    %499 = vector.broadcast %498 : f32 to vector<16x16xf32>
    %500 = arith.mulf %499, %485 : vector<16x16xf32>
    %501 = arith.addf %467, %500 : vector<16x16xf32>
    %c122 = arith.constant 122 : index
    %502 = memref.load %arg2[%c122] : memref<216xf32, #tpu.memory_space<smem>>
    %503 = vector.broadcast %502 : f32 to vector<16x16xf32>
    %504 = arith.mulf %503, %485 : vector<16x16xf32>
    %505 = arith.addf %471, %504 : vector<16x16xf32>
    %c149 = arith.constant 149 : index
    %506 = memref.load %arg2[%c149] : memref<216xf32, #tpu.memory_space<smem>>
    %507 = vector.broadcast %506 : f32 to vector<16x16xf32>
    %508 = arith.mulf %507, %485 : vector<16x16xf32>
    %509 = arith.addf %475, %508 : vector<16x16xf32>
    %c176 = arith.constant 176 : index
    %510 = memref.load %arg2[%c176] : memref<216xf32, #tpu.memory_space<smem>>
    %511 = vector.broadcast %510 : f32 to vector<16x16xf32>
    %512 = arith.mulf %511, %485 : vector<16x16xf32>
    %513 = arith.addf %479, %512 : vector<16x16xf32>
    %c203 = arith.constant 203 : index
    %514 = memref.load %arg2[%c203] : memref<216xf32, #tpu.memory_space<smem>>
    %515 = vector.broadcast %514 : f32 to vector<16x16xf32>
    %516 = arith.mulf %515, %485 : vector<16x16xf32>
    %517 = arith.addf %483, %516 : vector<16x16xf32>
    %c0_67 = arith.constant 0 : index
    %c1_68 = arith.constant 1 : index
    %c2_69 = arith.constant 2 : index
    %c0_70 = arith.constant 0 : index
    %518 = vector.load %arg1[%c0_67, %c1_68, %c2_69, %c0_70] : memref<1x3x18x18xf32, #tpu.memory_space<vmem>>, vector<1x1x16x16xf32>
    %519 = vector.shape_cast %518 : vector<1x1x16x16xf32> to vector<16x16xf32>
    %c15 = arith.constant 15 : index
    %520 = memref.load %arg2[%c15] : memref<216xf32, #tpu.memory_space<smem>>
    %521 = vector.broadcast %520 : f32 to vector<16x16xf32>
    %522 = arith.mulf %521, %519 : vector<16x16xf32>
    %523 = arith.addf %489, %522 : vector<16x16xf32>
    %c42 = arith.constant 42 : index
    %524 = memref.load %arg2[%c42] : memref<216xf32, #tpu.memory_space<smem>>
    %525 = vector.broadcast %524 : f32 to vector<16x16xf32>
    %526 = arith.mulf %525, %519 : vector<16x16xf32>
    %527 = arith.addf %493, %526 : vector<16x16xf32>
    %c69 = arith.constant 69 : index
    %528 = memref.load %arg2[%c69] : memref<216xf32, #tpu.memory_space<smem>>
    %529 = vector.broadcast %528 : f32 to vector<16x16xf32>
    %530 = arith.mulf %529, %519 : vector<16x16xf32>
    %531 = arith.addf %497, %530 : vector<16x16xf32>
    %c96 = arith.constant 96 : index
    %532 = memref.load %arg2[%c96] : memref<216xf32, #tpu.memory_space<smem>>
    %533 = vector.broadcast %532 : f32 to vector<16x16xf32>
    %534 = arith.mulf %533, %519 : vector<16x16xf32>
    %535 = arith.addf %501, %534 : vector<16x16xf32>
    %c123 = arith.constant 123 : index
    %536 = memref.load %arg2[%c123] : memref<216xf32, #tpu.memory_space<smem>>
    %537 = vector.broadcast %536 : f32 to vector<16x16xf32>
    %538 = arith.mulf %537, %519 : vector<16x16xf32>
    %539 = arith.addf %505, %538 : vector<16x16xf32>
    %c150 = arith.constant 150 : index
    %540 = memref.load %arg2[%c150] : memref<216xf32, #tpu.memory_space<smem>>
    %541 = vector.broadcast %540 : f32 to vector<16x16xf32>
    %542 = arith.mulf %541, %519 : vector<16x16xf32>
    %543 = arith.addf %509, %542 : vector<16x16xf32>
    %c177 = arith.constant 177 : index
    %544 = memref.load %arg2[%c177] : memref<216xf32, #tpu.memory_space<smem>>
    %545 = vector.broadcast %544 : f32 to vector<16x16xf32>
    %546 = arith.mulf %545, %519 : vector<16x16xf32>
    %547 = arith.addf %513, %546 : vector<16x16xf32>
    %c204 = arith.constant 204 : index
    %548 = memref.load %arg2[%c204] : memref<216xf32, #tpu.memory_space<smem>>
    %549 = vector.broadcast %548 : f32 to vector<16x16xf32>
    %550 = arith.mulf %549, %519 : vector<16x16xf32>
    %551 = arith.addf %517, %550 : vector<16x16xf32>
    %c0_71 = arith.constant 0 : index
    %c1_72 = arith.constant 1 : index
    %c2_73 = arith.constant 2 : index
    %c1_74 = arith.constant 1 : index
    %552 = vector.load %arg1[%c0_71, %c1_72, %c2_73, %c1_74] : memref<1x3x18x18xf32, #tpu.memory_space<vmem>>, vector<1x1x16x16xf32>
    %553 = vector.shape_cast %552 : vector<1x1x16x16xf32> to vector<16x16xf32>
    %c16 = arith.constant 16 : index
    %554 = memref.load %arg2[%c16] : memref<216xf32, #tpu.memory_space<smem>>
    %555 = vector.broadcast %554 : f32 to vector<16x16xf32>
    %556 = arith.mulf %555, %553 : vector<16x16xf32>
    %557 = arith.addf %523, %556 : vector<16x16xf32>
    %c43 = arith.constant 43 : index
    %558 = memref.load %arg2[%c43] : memref<216xf32, #tpu.memory_space<smem>>
    %559 = vector.broadcast %558 : f32 to vector<16x16xf32>
    %560 = arith.mulf %559, %553 : vector<16x16xf32>
    %561 = arith.addf %527, %560 : vector<16x16xf32>
    %c70 = arith.constant 70 : index
    %562 = memref.load %arg2[%c70] : memref<216xf32, #tpu.memory_space<smem>>
    %563 = vector.broadcast %562 : f32 to vector<16x16xf32>
    %564 = arith.mulf %563, %553 : vector<16x16xf32>
    %565 = arith.addf %531, %564 : vector<16x16xf32>
    %c97 = arith.constant 97 : index
    %566 = memref.load %arg2[%c97] : memref<216xf32, #tpu.memory_space<smem>>
    %567 = vector.broadcast %566 : f32 to vector<16x16xf32>
    %568 = arith.mulf %567, %553 : vector<16x16xf32>
    %569 = arith.addf %535, %568 : vector<16x16xf32>
    %c124 = arith.constant 124 : index
    %570 = memref.load %arg2[%c124] : memref<216xf32, #tpu.memory_space<smem>>
    %571 = vector.broadcast %570 : f32 to vector<16x16xf32>
    %572 = arith.mulf %571, %553 : vector<16x16xf32>
    %573 = arith.addf %539, %572 : vector<16x16xf32>
    %c151 = arith.constant 151 : index
    %574 = memref.load %arg2[%c151] : memref<216xf32, #tpu.memory_space<smem>>
    %575 = vector.broadcast %574 : f32 to vector<16x16xf32>
    %576 = arith.mulf %575, %553 : vector<16x16xf32>
    %577 = arith.addf %543, %576 : vector<16x16xf32>
    %c178 = arith.constant 178 : index
    %578 = memref.load %arg2[%c178] : memref<216xf32, #tpu.memory_space<smem>>
    %579 = vector.broadcast %578 : f32 to vector<16x16xf32>
    %580 = arith.mulf %579, %553 : vector<16x16xf32>
    %581 = arith.addf %547, %580 : vector<16x16xf32>
    %c205 = arith.constant 205 : index
    %582 = memref.load %arg2[%c205] : memref<216xf32, #tpu.memory_space<smem>>
    %583 = vector.broadcast %582 : f32 to vector<16x16xf32>
    %584 = arith.mulf %583, %553 : vector<16x16xf32>
    %585 = arith.addf %551, %584 : vector<16x16xf32>
    %c0_75 = arith.constant 0 : index
    %c1_76 = arith.constant 1 : index
    %c2_77 = arith.constant 2 : index
    %c2_78 = arith.constant 2 : index
    %586 = vector.load %arg1[%c0_75, %c1_76, %c2_77, %c2_78] : memref<1x3x18x18xf32, #tpu.memory_space<vmem>>, vector<1x1x16x16xf32>
    %587 = vector.shape_cast %586 : vector<1x1x16x16xf32> to vector<16x16xf32>
    %c17 = arith.constant 17 : index
    %588 = memref.load %arg2[%c17] : memref<216xf32, #tpu.memory_space<smem>>
    %589 = vector.broadcast %588 : f32 to vector<16x16xf32>
    %590 = arith.mulf %589, %587 : vector<16x16xf32>
    %591 = arith.addf %557, %590 : vector<16x16xf32>
    %c44 = arith.constant 44 : index
    %592 = memref.load %arg2[%c44] : memref<216xf32, #tpu.memory_space<smem>>
    %593 = vector.broadcast %592 : f32 to vector<16x16xf32>
    %594 = arith.mulf %593, %587 : vector<16x16xf32>
    %595 = arith.addf %561, %594 : vector<16x16xf32>
    %c71 = arith.constant 71 : index
    %596 = memref.load %arg2[%c71] : memref<216xf32, #tpu.memory_space<smem>>
    %597 = vector.broadcast %596 : f32 to vector<16x16xf32>
    %598 = arith.mulf %597, %587 : vector<16x16xf32>
    %599 = arith.addf %565, %598 : vector<16x16xf32>
    %c98 = arith.constant 98 : index
    %600 = memref.load %arg2[%c98] : memref<216xf32, #tpu.memory_space<smem>>
    %601 = vector.broadcast %600 : f32 to vector<16x16xf32>
    %602 = arith.mulf %601, %587 : vector<16x16xf32>
    %603 = arith.addf %569, %602 : vector<16x16xf32>
    %c125 = arith.constant 125 : index
    %604 = memref.load %arg2[%c125] : memref<216xf32, #tpu.memory_space<smem>>
    %605 = vector.broadcast %604 : f32 to vector<16x16xf32>
    %606 = arith.mulf %605, %587 : vector<16x16xf32>
    %607 = arith.addf %573, %606 : vector<16x16xf32>
    %c152 = arith.constant 152 : index
    %608 = memref.load %arg2[%c152] : memref<216xf32, #tpu.memory_space<smem>>
    %609 = vector.broadcast %608 : f32 to vector<16x16xf32>
    %610 = arith.mulf %609, %587 : vector<16x16xf32>
    %611 = arith.addf %577, %610 : vector<16x16xf32>
    %c179 = arith.constant 179 : index
    %612 = memref.load %arg2[%c179] : memref<216xf32, #tpu.memory_space<smem>>
    %613 = vector.broadcast %612 : f32 to vector<16x16xf32>
    %614 = arith.mulf %613, %587 : vector<16x16xf32>
    %615 = arith.addf %581, %614 : vector<16x16xf32>
    %c206 = arith.constant 206 : index
    %616 = memref.load %arg2[%c206] : memref<216xf32, #tpu.memory_space<smem>>
    %617 = vector.broadcast %616 : f32 to vector<16x16xf32>
    %618 = arith.mulf %617, %587 : vector<16x16xf32>
    %619 = arith.addf %585, %618 : vector<16x16xf32>
    %c0_79 = arith.constant 0 : index
    %c2_80 = arith.constant 2 : index
    %c0_81 = arith.constant 0 : index
    %c0_82 = arith.constant 0 : index
    %620 = vector.load %arg1[%c0_79, %c2_80, %c0_81, %c0_82] : memref<1x3x18x18xf32, #tpu.memory_space<vmem>>, vector<1x1x16x16xf32>
    %621 = vector.shape_cast %620 : vector<1x1x16x16xf32> to vector<16x16xf32>
    %c18 = arith.constant 18 : index
    %622 = memref.load %arg2[%c18] : memref<216xf32, #tpu.memory_space<smem>>
    %623 = vector.broadcast %622 : f32 to vector<16x16xf32>
    %624 = arith.mulf %623, %621 : vector<16x16xf32>
    %625 = arith.addf %591, %624 : vector<16x16xf32>
    %c45 = arith.constant 45 : index
    %626 = memref.load %arg2[%c45] : memref<216xf32, #tpu.memory_space<smem>>
    %627 = vector.broadcast %626 : f32 to vector<16x16xf32>
    %628 = arith.mulf %627, %621 : vector<16x16xf32>
    %629 = arith.addf %595, %628 : vector<16x16xf32>
    %c72 = arith.constant 72 : index
    %630 = memref.load %arg2[%c72] : memref<216xf32, #tpu.memory_space<smem>>
    %631 = vector.broadcast %630 : f32 to vector<16x16xf32>
    %632 = arith.mulf %631, %621 : vector<16x16xf32>
    %633 = arith.addf %599, %632 : vector<16x16xf32>
    %c99 = arith.constant 99 : index
    %634 = memref.load %arg2[%c99] : memref<216xf32, #tpu.memory_space<smem>>
    %635 = vector.broadcast %634 : f32 to vector<16x16xf32>
    %636 = arith.mulf %635, %621 : vector<16x16xf32>
    %637 = arith.addf %603, %636 : vector<16x16xf32>
    %c126 = arith.constant 126 : index
    %638 = memref.load %arg2[%c126] : memref<216xf32, #tpu.memory_space<smem>>
    %639 = vector.broadcast %638 : f32 to vector<16x16xf32>
    %640 = arith.mulf %639, %621 : vector<16x16xf32>
    %641 = arith.addf %607, %640 : vector<16x16xf32>
    %c153 = arith.constant 153 : index
    %642 = memref.load %arg2[%c153] : memref<216xf32, #tpu.memory_space<smem>>
    %643 = vector.broadcast %642 : f32 to vector<16x16xf32>
    %644 = arith.mulf %643, %621 : vector<16x16xf32>
    %645 = arith.addf %611, %644 : vector<16x16xf32>
    %c180 = arith.constant 180 : index
    %646 = memref.load %arg2[%c180] : memref<216xf32, #tpu.memory_space<smem>>
    %647 = vector.broadcast %646 : f32 to vector<16x16xf32>
    %648 = arith.mulf %647, %621 : vector<16x16xf32>
    %649 = arith.addf %615, %648 : vector<16x16xf32>
    %c207 = arith.constant 207 : index
    %650 = memref.load %arg2[%c207] : memref<216xf32, #tpu.memory_space<smem>>
    %651 = vector.broadcast %650 : f32 to vector<16x16xf32>
    %652 = arith.mulf %651, %621 : vector<16x16xf32>
    %653 = arith.addf %619, %652 : vector<16x16xf32>
    %c0_83 = arith.constant 0 : index
    %c2_84 = arith.constant 2 : index
    %c0_85 = arith.constant 0 : index
    %c1_86 = arith.constant 1 : index
    %654 = vector.load %arg1[%c0_83, %c2_84, %c0_85, %c1_86] : memref<1x3x18x18xf32, #tpu.memory_space<vmem>>, vector<1x1x16x16xf32>
    %655 = vector.shape_cast %654 : vector<1x1x16x16xf32> to vector<16x16xf32>
    %c19 = arith.constant 19 : index
    %656 = memref.load %arg2[%c19] : memref<216xf32, #tpu.memory_space<smem>>
    %657 = vector.broadcast %656 : f32 to vector<16x16xf32>
    %658 = arith.mulf %657, %655 : vector<16x16xf32>
    %659 = arith.addf %625, %658 : vector<16x16xf32>
    %c46 = arith.constant 46 : index
    %660 = memref.load %arg2[%c46] : memref<216xf32, #tpu.memory_space<smem>>
    %661 = vector.broadcast %660 : f32 to vector<16x16xf32>
    %662 = arith.mulf %661, %655 : vector<16x16xf32>
    %663 = arith.addf %629, %662 : vector<16x16xf32>
    %c73 = arith.constant 73 : index
    %664 = memref.load %arg2[%c73] : memref<216xf32, #tpu.memory_space<smem>>
    %665 = vector.broadcast %664 : f32 to vector<16x16xf32>
    %666 = arith.mulf %665, %655 : vector<16x16xf32>
    %667 = arith.addf %633, %666 : vector<16x16xf32>
    %c100 = arith.constant 100 : index
    %668 = memref.load %arg2[%c100] : memref<216xf32, #tpu.memory_space<smem>>
    %669 = vector.broadcast %668 : f32 to vector<16x16xf32>
    %670 = arith.mulf %669, %655 : vector<16x16xf32>
    %671 = arith.addf %637, %670 : vector<16x16xf32>
    %c127 = arith.constant 127 : index
    %672 = memref.load %arg2[%c127] : memref<216xf32, #tpu.memory_space<smem>>
    %673 = vector.broadcast %672 : f32 to vector<16x16xf32>
    %674 = arith.mulf %673, %655 : vector<16x16xf32>
    %675 = arith.addf %641, %674 : vector<16x16xf32>
    %c154 = arith.constant 154 : index
    %676 = memref.load %arg2[%c154] : memref<216xf32, #tpu.memory_space<smem>>
    %677 = vector.broadcast %676 : f32 to vector<16x16xf32>
    %678 = arith.mulf %677, %655 : vector<16x16xf32>
    %679 = arith.addf %645, %678 : vector<16x16xf32>
    %c181 = arith.constant 181 : index
    %680 = memref.load %arg2[%c181] : memref<216xf32, #tpu.memory_space<smem>>
    %681 = vector.broadcast %680 : f32 to vector<16x16xf32>
    %682 = arith.mulf %681, %655 : vector<16x16xf32>
    %683 = arith.addf %649, %682 : vector<16x16xf32>
    %c208 = arith.constant 208 : index
    %684 = memref.load %arg2[%c208] : memref<216xf32, #tpu.memory_space<smem>>
    %685 = vector.broadcast %684 : f32 to vector<16x16xf32>
    %686 = arith.mulf %685, %655 : vector<16x16xf32>
    %687 = arith.addf %653, %686 : vector<16x16xf32>
    %c0_87 = arith.constant 0 : index
    %c2_88 = arith.constant 2 : index
    %c0_89 = arith.constant 0 : index
    %c2_90 = arith.constant 2 : index
    %688 = vector.load %arg1[%c0_87, %c2_88, %c0_89, %c2_90] : memref<1x3x18x18xf32, #tpu.memory_space<vmem>>, vector<1x1x16x16xf32>
    %689 = vector.shape_cast %688 : vector<1x1x16x16xf32> to vector<16x16xf32>
    %c20 = arith.constant 20 : index
    %690 = memref.load %arg2[%c20] : memref<216xf32, #tpu.memory_space<smem>>
    %691 = vector.broadcast %690 : f32 to vector<16x16xf32>
    %692 = arith.mulf %691, %689 : vector<16x16xf32>
    %693 = arith.addf %659, %692 : vector<16x16xf32>
    %c47 = arith.constant 47 : index
    %694 = memref.load %arg2[%c47] : memref<216xf32, #tpu.memory_space<smem>>
    %695 = vector.broadcast %694 : f32 to vector<16x16xf32>
    %696 = arith.mulf %695, %689 : vector<16x16xf32>
    %697 = arith.addf %663, %696 : vector<16x16xf32>
    %c74 = arith.constant 74 : index
    %698 = memref.load %arg2[%c74] : memref<216xf32, #tpu.memory_space<smem>>
    %699 = vector.broadcast %698 : f32 to vector<16x16xf32>
    %700 = arith.mulf %699, %689 : vector<16x16xf32>
    %701 = arith.addf %667, %700 : vector<16x16xf32>
    %c101 = arith.constant 101 : index
    %702 = memref.load %arg2[%c101] : memref<216xf32, #tpu.memory_space<smem>>
    %703 = vector.broadcast %702 : f32 to vector<16x16xf32>
    %704 = arith.mulf %703, %689 : vector<16x16xf32>
    %705 = arith.addf %671, %704 : vector<16x16xf32>
    %c128 = arith.constant 128 : index
    %706 = memref.load %arg2[%c128] : memref<216xf32, #tpu.memory_space<smem>>
    %707 = vector.broadcast %706 : f32 to vector<16x16xf32>
    %708 = arith.mulf %707, %689 : vector<16x16xf32>
    %709 = arith.addf %675, %708 : vector<16x16xf32>
    %c155 = arith.constant 155 : index
    %710 = memref.load %arg2[%c155] : memref<216xf32, #tpu.memory_space<smem>>
    %711 = vector.broadcast %710 : f32 to vector<16x16xf32>
    %712 = arith.mulf %711, %689 : vector<16x16xf32>
    %713 = arith.addf %679, %712 : vector<16x16xf32>
    %c182 = arith.constant 182 : index
    %714 = memref.load %arg2[%c182] : memref<216xf32, #tpu.memory_space<smem>>
    %715 = vector.broadcast %714 : f32 to vector<16x16xf32>
    %716 = arith.mulf %715, %689 : vector<16x16xf32>
    %717 = arith.addf %683, %716 : vector<16x16xf32>
    %c209 = arith.constant 209 : index
    %718 = memref.load %arg2[%c209] : memref<216xf32, #tpu.memory_space<smem>>
    %719 = vector.broadcast %718 : f32 to vector<16x16xf32>
    %720 = arith.mulf %719, %689 : vector<16x16xf32>
    %721 = arith.addf %687, %720 : vector<16x16xf32>
    %c0_91 = arith.constant 0 : index
    %c2_92 = arith.constant 2 : index
    %c1_93 = arith.constant 1 : index
    %c0_94 = arith.constant 0 : index
    %722 = vector.load %arg1[%c0_91, %c2_92, %c1_93, %c0_94] : memref<1x3x18x18xf32, #tpu.memory_space<vmem>>, vector<1x1x16x16xf32>
    %723 = vector.shape_cast %722 : vector<1x1x16x16xf32> to vector<16x16xf32>
    %c21 = arith.constant 21 : index
    %724 = memref.load %arg2[%c21] : memref<216xf32, #tpu.memory_space<smem>>
    %725 = vector.broadcast %724 : f32 to vector<16x16xf32>
    %726 = arith.mulf %725, %723 : vector<16x16xf32>
    %727 = arith.addf %693, %726 : vector<16x16xf32>
    %c48 = arith.constant 48 : index
    %728 = memref.load %arg2[%c48] : memref<216xf32, #tpu.memory_space<smem>>
    %729 = vector.broadcast %728 : f32 to vector<16x16xf32>
    %730 = arith.mulf %729, %723 : vector<16x16xf32>
    %731 = arith.addf %697, %730 : vector<16x16xf32>
    %c75 = arith.constant 75 : index
    %732 = memref.load %arg2[%c75] : memref<216xf32, #tpu.memory_space<smem>>
    %733 = vector.broadcast %732 : f32 to vector<16x16xf32>
    %734 = arith.mulf %733, %723 : vector<16x16xf32>
    %735 = arith.addf %701, %734 : vector<16x16xf32>
    %c102 = arith.constant 102 : index
    %736 = memref.load %arg2[%c102] : memref<216xf32, #tpu.memory_space<smem>>
    %737 = vector.broadcast %736 : f32 to vector<16x16xf32>
    %738 = arith.mulf %737, %723 : vector<16x16xf32>
    %739 = arith.addf %705, %738 : vector<16x16xf32>
    %c129 = arith.constant 129 : index
    %740 = memref.load %arg2[%c129] : memref<216xf32, #tpu.memory_space<smem>>
    %741 = vector.broadcast %740 : f32 to vector<16x16xf32>
    %742 = arith.mulf %741, %723 : vector<16x16xf32>
    %743 = arith.addf %709, %742 : vector<16x16xf32>
    %c156 = arith.constant 156 : index
    %744 = memref.load %arg2[%c156] : memref<216xf32, #tpu.memory_space<smem>>
    %745 = vector.broadcast %744 : f32 to vector<16x16xf32>
    %746 = arith.mulf %745, %723 : vector<16x16xf32>
    %747 = arith.addf %713, %746 : vector<16x16xf32>
    %c183 = arith.constant 183 : index
    %748 = memref.load %arg2[%c183] : memref<216xf32, #tpu.memory_space<smem>>
    %749 = vector.broadcast %748 : f32 to vector<16x16xf32>
    %750 = arith.mulf %749, %723 : vector<16x16xf32>
    %751 = arith.addf %717, %750 : vector<16x16xf32>
    %c210 = arith.constant 210 : index
    %752 = memref.load %arg2[%c210] : memref<216xf32, #tpu.memory_space<smem>>
    %753 = vector.broadcast %752 : f32 to vector<16x16xf32>
    %754 = arith.mulf %753, %723 : vector<16x16xf32>
    %755 = arith.addf %721, %754 : vector<16x16xf32>
    %c0_95 = arith.constant 0 : index
    %c2_96 = arith.constant 2 : index
    %c1_97 = arith.constant 1 : index
    %c1_98 = arith.constant 1 : index
    %756 = vector.load %arg1[%c0_95, %c2_96, %c1_97, %c1_98] : memref<1x3x18x18xf32, #tpu.memory_space<vmem>>, vector<1x1x16x16xf32>
    %757 = vector.shape_cast %756 : vector<1x1x16x16xf32> to vector<16x16xf32>
    %c22 = arith.constant 22 : index
    %758 = memref.load %arg2[%c22] : memref<216xf32, #tpu.memory_space<smem>>
    %759 = vector.broadcast %758 : f32 to vector<16x16xf32>
    %760 = arith.mulf %759, %757 : vector<16x16xf32>
    %761 = arith.addf %727, %760 : vector<16x16xf32>
    %c49 = arith.constant 49 : index
    %762 = memref.load %arg2[%c49] : memref<216xf32, #tpu.memory_space<smem>>
    %763 = vector.broadcast %762 : f32 to vector<16x16xf32>
    %764 = arith.mulf %763, %757 : vector<16x16xf32>
    %765 = arith.addf %731, %764 : vector<16x16xf32>
    %c76 = arith.constant 76 : index
    %766 = memref.load %arg2[%c76] : memref<216xf32, #tpu.memory_space<smem>>
    %767 = vector.broadcast %766 : f32 to vector<16x16xf32>
    %768 = arith.mulf %767, %757 : vector<16x16xf32>
    %769 = arith.addf %735, %768 : vector<16x16xf32>
    %c103 = arith.constant 103 : index
    %770 = memref.load %arg2[%c103] : memref<216xf32, #tpu.memory_space<smem>>
    %771 = vector.broadcast %770 : f32 to vector<16x16xf32>
    %772 = arith.mulf %771, %757 : vector<16x16xf32>
    %773 = arith.addf %739, %772 : vector<16x16xf32>
    %c130 = arith.constant 130 : index
    %774 = memref.load %arg2[%c130] : memref<216xf32, #tpu.memory_space<smem>>
    %775 = vector.broadcast %774 : f32 to vector<16x16xf32>
    %776 = arith.mulf %775, %757 : vector<16x16xf32>
    %777 = arith.addf %743, %776 : vector<16x16xf32>
    %c157 = arith.constant 157 : index
    %778 = memref.load %arg2[%c157] : memref<216xf32, #tpu.memory_space<smem>>
    %779 = vector.broadcast %778 : f32 to vector<16x16xf32>
    %780 = arith.mulf %779, %757 : vector<16x16xf32>
    %781 = arith.addf %747, %780 : vector<16x16xf32>
    %c184 = arith.constant 184 : index
    %782 = memref.load %arg2[%c184] : memref<216xf32, #tpu.memory_space<smem>>
    %783 = vector.broadcast %782 : f32 to vector<16x16xf32>
    %784 = arith.mulf %783, %757 : vector<16x16xf32>
    %785 = arith.addf %751, %784 : vector<16x16xf32>
    %c211 = arith.constant 211 : index
    %786 = memref.load %arg2[%c211] : memref<216xf32, #tpu.memory_space<smem>>
    %787 = vector.broadcast %786 : f32 to vector<16x16xf32>
    %788 = arith.mulf %787, %757 : vector<16x16xf32>
    %789 = arith.addf %755, %788 : vector<16x16xf32>
    %c0_99 = arith.constant 0 : index
    %c2_100 = arith.constant 2 : index
    %c1_101 = arith.constant 1 : index
    %c2_102 = arith.constant 2 : index
    %790 = vector.load %arg1[%c0_99, %c2_100, %c1_101, %c2_102] : memref<1x3x18x18xf32, #tpu.memory_space<vmem>>, vector<1x1x16x16xf32>
    %791 = vector.shape_cast %790 : vector<1x1x16x16xf32> to vector<16x16xf32>
    %c23 = arith.constant 23 : index
    %792 = memref.load %arg2[%c23] : memref<216xf32, #tpu.memory_space<smem>>
    %793 = vector.broadcast %792 : f32 to vector<16x16xf32>
    %794 = arith.mulf %793, %791 : vector<16x16xf32>
    %795 = arith.addf %761, %794 : vector<16x16xf32>
    %c50 = arith.constant 50 : index
    %796 = memref.load %arg2[%c50] : memref<216xf32, #tpu.memory_space<smem>>
    %797 = vector.broadcast %796 : f32 to vector<16x16xf32>
    %798 = arith.mulf %797, %791 : vector<16x16xf32>
    %799 = arith.addf %765, %798 : vector<16x16xf32>
    %c77 = arith.constant 77 : index
    %800 = memref.load %arg2[%c77] : memref<216xf32, #tpu.memory_space<smem>>
    %801 = vector.broadcast %800 : f32 to vector<16x16xf32>
    %802 = arith.mulf %801, %791 : vector<16x16xf32>
    %803 = arith.addf %769, %802 : vector<16x16xf32>
    %c104 = arith.constant 104 : index
    %804 = memref.load %arg2[%c104] : memref<216xf32, #tpu.memory_space<smem>>
    %805 = vector.broadcast %804 : f32 to vector<16x16xf32>
    %806 = arith.mulf %805, %791 : vector<16x16xf32>
    %807 = arith.addf %773, %806 : vector<16x16xf32>
    %c131 = arith.constant 131 : index
    %808 = memref.load %arg2[%c131] : memref<216xf32, #tpu.memory_space<smem>>
    %809 = vector.broadcast %808 : f32 to vector<16x16xf32>
    %810 = arith.mulf %809, %791 : vector<16x16xf32>
    %811 = arith.addf %777, %810 : vector<16x16xf32>
    %c158 = arith.constant 158 : index
    %812 = memref.load %arg2[%c158] : memref<216xf32, #tpu.memory_space<smem>>
    %813 = vector.broadcast %812 : f32 to vector<16x16xf32>
    %814 = arith.mulf %813, %791 : vector<16x16xf32>
    %815 = arith.addf %781, %814 : vector<16x16xf32>
    %c185 = arith.constant 185 : index
    %816 = memref.load %arg2[%c185] : memref<216xf32, #tpu.memory_space<smem>>
    %817 = vector.broadcast %816 : f32 to vector<16x16xf32>
    %818 = arith.mulf %817, %791 : vector<16x16xf32>
    %819 = arith.addf %785, %818 : vector<16x16xf32>
    %c212 = arith.constant 212 : index
    %820 = memref.load %arg2[%c212] : memref<216xf32, #tpu.memory_space<smem>>
    %821 = vector.broadcast %820 : f32 to vector<16x16xf32>
    %822 = arith.mulf %821, %791 : vector<16x16xf32>
    %823 = arith.addf %789, %822 : vector<16x16xf32>
    %c0_103 = arith.constant 0 : index
    %c2_104 = arith.constant 2 : index
    %c2_105 = arith.constant 2 : index
    %c0_106 = arith.constant 0 : index
    %824 = vector.load %arg1[%c0_103, %c2_104, %c2_105, %c0_106] : memref<1x3x18x18xf32, #tpu.memory_space<vmem>>, vector<1x1x16x16xf32>
    %825 = vector.shape_cast %824 : vector<1x1x16x16xf32> to vector<16x16xf32>
    %c24 = arith.constant 24 : index
    %826 = memref.load %arg2[%c24] : memref<216xf32, #tpu.memory_space<smem>>
    %827 = vector.broadcast %826 : f32 to vector<16x16xf32>
    %828 = arith.mulf %827, %825 : vector<16x16xf32>
    %829 = arith.addf %795, %828 : vector<16x16xf32>
    %c51 = arith.constant 51 : index
    %830 = memref.load %arg2[%c51] : memref<216xf32, #tpu.memory_space<smem>>
    %831 = vector.broadcast %830 : f32 to vector<16x16xf32>
    %832 = arith.mulf %831, %825 : vector<16x16xf32>
    %833 = arith.addf %799, %832 : vector<16x16xf32>
    %c78 = arith.constant 78 : index
    %834 = memref.load %arg2[%c78] : memref<216xf32, #tpu.memory_space<smem>>
    %835 = vector.broadcast %834 : f32 to vector<16x16xf32>
    %836 = arith.mulf %835, %825 : vector<16x16xf32>
    %837 = arith.addf %803, %836 : vector<16x16xf32>
    %c105 = arith.constant 105 : index
    %838 = memref.load %arg2[%c105] : memref<216xf32, #tpu.memory_space<smem>>
    %839 = vector.broadcast %838 : f32 to vector<16x16xf32>
    %840 = arith.mulf %839, %825 : vector<16x16xf32>
    %841 = arith.addf %807, %840 : vector<16x16xf32>
    %c132 = arith.constant 132 : index
    %842 = memref.load %arg2[%c132] : memref<216xf32, #tpu.memory_space<smem>>
    %843 = vector.broadcast %842 : f32 to vector<16x16xf32>
    %844 = arith.mulf %843, %825 : vector<16x16xf32>
    %845 = arith.addf %811, %844 : vector<16x16xf32>
    %c159 = arith.constant 159 : index
    %846 = memref.load %arg2[%c159] : memref<216xf32, #tpu.memory_space<smem>>
    %847 = vector.broadcast %846 : f32 to vector<16x16xf32>
    %848 = arith.mulf %847, %825 : vector<16x16xf32>
    %849 = arith.addf %815, %848 : vector<16x16xf32>
    %c186 = arith.constant 186 : index
    %850 = memref.load %arg2[%c186] : memref<216xf32, #tpu.memory_space<smem>>
    %851 = vector.broadcast %850 : f32 to vector<16x16xf32>
    %852 = arith.mulf %851, %825 : vector<16x16xf32>
    %853 = arith.addf %819, %852 : vector<16x16xf32>
    %c213 = arith.constant 213 : index
    %854 = memref.load %arg2[%c213] : memref<216xf32, #tpu.memory_space<smem>>
    %855 = vector.broadcast %854 : f32 to vector<16x16xf32>
    %856 = arith.mulf %855, %825 : vector<16x16xf32>
    %857 = arith.addf %823, %856 : vector<16x16xf32>
    %c0_107 = arith.constant 0 : index
    %c2_108 = arith.constant 2 : index
    %c2_109 = arith.constant 2 : index
    %c1_110 = arith.constant 1 : index
    %858 = vector.load %arg1[%c0_107, %c2_108, %c2_109, %c1_110] : memref<1x3x18x18xf32, #tpu.memory_space<vmem>>, vector<1x1x16x16xf32>
    %859 = vector.shape_cast %858 : vector<1x1x16x16xf32> to vector<16x16xf32>
    %c25 = arith.constant 25 : index
    %860 = memref.load %arg2[%c25] : memref<216xf32, #tpu.memory_space<smem>>
    %861 = vector.broadcast %860 : f32 to vector<16x16xf32>
    %862 = arith.mulf %861, %859 : vector<16x16xf32>
    %863 = arith.addf %829, %862 : vector<16x16xf32>
    %c52 = arith.constant 52 : index
    %864 = memref.load %arg2[%c52] : memref<216xf32, #tpu.memory_space<smem>>
    %865 = vector.broadcast %864 : f32 to vector<16x16xf32>
    %866 = arith.mulf %865, %859 : vector<16x16xf32>
    %867 = arith.addf %833, %866 : vector<16x16xf32>
    %c79 = arith.constant 79 : index
    %868 = memref.load %arg2[%c79] : memref<216xf32, #tpu.memory_space<smem>>
    %869 = vector.broadcast %868 : f32 to vector<16x16xf32>
    %870 = arith.mulf %869, %859 : vector<16x16xf32>
    %871 = arith.addf %837, %870 : vector<16x16xf32>
    %c106 = arith.constant 106 : index
    %872 = memref.load %arg2[%c106] : memref<216xf32, #tpu.memory_space<smem>>
    %873 = vector.broadcast %872 : f32 to vector<16x16xf32>
    %874 = arith.mulf %873, %859 : vector<16x16xf32>
    %875 = arith.addf %841, %874 : vector<16x16xf32>
    %c133 = arith.constant 133 : index
    %876 = memref.load %arg2[%c133] : memref<216xf32, #tpu.memory_space<smem>>
    %877 = vector.broadcast %876 : f32 to vector<16x16xf32>
    %878 = arith.mulf %877, %859 : vector<16x16xf32>
    %879 = arith.addf %845, %878 : vector<16x16xf32>
    %c160 = arith.constant 160 : index
    %880 = memref.load %arg2[%c160] : memref<216xf32, #tpu.memory_space<smem>>
    %881 = vector.broadcast %880 : f32 to vector<16x16xf32>
    %882 = arith.mulf %881, %859 : vector<16x16xf32>
    %883 = arith.addf %849, %882 : vector<16x16xf32>
    %c187 = arith.constant 187 : index
    %884 = memref.load %arg2[%c187] : memref<216xf32, #tpu.memory_space<smem>>
    %885 = vector.broadcast %884 : f32 to vector<16x16xf32>
    %886 = arith.mulf %885, %859 : vector<16x16xf32>
    %887 = arith.addf %853, %886 : vector<16x16xf32>
    %c214 = arith.constant 214 : index
    %888 = memref.load %arg2[%c214] : memref<216xf32, #tpu.memory_space<smem>>
    %889 = vector.broadcast %888 : f32 to vector<16x16xf32>
    %890 = arith.mulf %889, %859 : vector<16x16xf32>
    %891 = arith.addf %857, %890 : vector<16x16xf32>
    %c0_111 = arith.constant 0 : index
    %c2_112 = arith.constant 2 : index
    %c2_113 = arith.constant 2 : index
    %c2_114 = arith.constant 2 : index
    %892 = vector.load %arg1[%c0_111, %c2_112, %c2_113, %c2_114] : memref<1x3x18x18xf32, #tpu.memory_space<vmem>>, vector<1x1x16x16xf32>
    %893 = vector.shape_cast %892 : vector<1x1x16x16xf32> to vector<16x16xf32>
    %c26 = arith.constant 26 : index
    %894 = memref.load %arg2[%c26] : memref<216xf32, #tpu.memory_space<smem>>
    %895 = vector.broadcast %894 : f32 to vector<16x16xf32>
    %896 = arith.mulf %895, %893 : vector<16x16xf32>
    %897 = arith.addf %863, %896 : vector<16x16xf32>
    %c53 = arith.constant 53 : index
    %898 = memref.load %arg2[%c53] : memref<216xf32, #tpu.memory_space<smem>>
    %899 = vector.broadcast %898 : f32 to vector<16x16xf32>
    %900 = arith.mulf %899, %893 : vector<16x16xf32>
    %901 = arith.addf %867, %900 : vector<16x16xf32>
    %c80 = arith.constant 80 : index
    %902 = memref.load %arg2[%c80] : memref<216xf32, #tpu.memory_space<smem>>
    %903 = vector.broadcast %902 : f32 to vector<16x16xf32>
    %904 = arith.mulf %903, %893 : vector<16x16xf32>
    %905 = arith.addf %871, %904 : vector<16x16xf32>
    %c107 = arith.constant 107 : index
    %906 = memref.load %arg2[%c107] : memref<216xf32, #tpu.memory_space<smem>>
    %907 = vector.broadcast %906 : f32 to vector<16x16xf32>
    %908 = arith.mulf %907, %893 : vector<16x16xf32>
    %909 = arith.addf %875, %908 : vector<16x16xf32>
    %c134 = arith.constant 134 : index
    %910 = memref.load %arg2[%c134] : memref<216xf32, #tpu.memory_space<smem>>
    %911 = vector.broadcast %910 : f32 to vector<16x16xf32>
    %912 = arith.mulf %911, %893 : vector<16x16xf32>
    %913 = arith.addf %879, %912 : vector<16x16xf32>
    %c161 = arith.constant 161 : index
    %914 = memref.load %arg2[%c161] : memref<216xf32, #tpu.memory_space<smem>>
    %915 = vector.broadcast %914 : f32 to vector<16x16xf32>
    %916 = arith.mulf %915, %893 : vector<16x16xf32>
    %917 = arith.addf %883, %916 : vector<16x16xf32>
    %c188 = arith.constant 188 : index
    %918 = memref.load %arg2[%c188] : memref<216xf32, #tpu.memory_space<smem>>
    %919 = vector.broadcast %918 : f32 to vector<16x16xf32>
    %920 = arith.mulf %919, %893 : vector<16x16xf32>
    %921 = arith.addf %887, %920 : vector<16x16xf32>
    %c215 = arith.constant 215 : index
    %922 = memref.load %arg2[%c215] : memref<216xf32, #tpu.memory_space<smem>>
    %923 = vector.broadcast %922 : f32 to vector<16x16xf32>
    %924 = arith.mulf %923, %893 : vector<16x16xf32>
    %925 = arith.addf %891, %924 : vector<16x16xf32>
    %c0_115 = arith.constant 0 : index
    %926 = memref.load %arg3[%c0_115] : memref<8xf32, #tpu.memory_space<smem>>
    %927 = vector.broadcast %926 : f32 to vector<16x16xf32>
    %928 = arith.addf %897, %927 : vector<16x16xf32>
    %cst_116 = arith.constant 3.000000e-01 : f32
    %929 = vector.broadcast %cst_116 : f32 to vector<16x16xf32>
    %930 = arith.minimumf %928, %929 : vector<16x16xf32>
    %c0_117 = arith.constant 0 : index
    %c0_118 = arith.constant 0 : index
    %c0_119 = arith.constant 0 : index
    %c0_120 = arith.constant 0 : index
    %931 = vector.load %arg4[%c0_117, %c0_118, %c0_119, %c0_120] : memref<1x8x16x16xf32, #tpu.memory_space<vmem>>, vector<1x1x16x16xf32>
    %932 = vector.shape_cast %931 : vector<1x1x16x16xf32> to vector<16x16xf32>
    %933 = vector.shape_cast %930 : vector<16x16xf32> to vector<1x1x16x16xf32>
    tpu.vector_store %arg4[%c0_117, %c0_118, %c0_119, %c0_120], %933 {strides = array<i32>} : memref<1x8x16x16xf32, #tpu.memory_space<vmem>>, vector<1x1x16x16xf32>,
    %c1_121 = arith.constant 1 : index
    %934 = memref.load %arg3[%c1_121] : memref<8xf32, #tpu.memory_space<smem>>
    %935 = vector.broadcast %934 : f32 to vector<16x16xf32>
    %936 = arith.addf %901, %935 : vector<16x16xf32>
    %cst_122 = arith.constant 3.000000e-01 : f32
    %937 = vector.broadcast %cst_122 : f32 to vector<16x16xf32>
    %938 = arith.minimumf %936, %937 : vector<16x16xf32>
    %c0_123 = arith.constant 0 : index
    %c1_124 = arith.constant 1 : index
    %c0_125 = arith.constant 0 : index
    %c0_126 = arith.constant 0 : index
    %939 = vector.load %arg4[%c0_123, %c1_124, %c0_125, %c0_126] : memref<1x8x16x16xf32, #tpu.memory_space<vmem>>, vector<1x1x16x16xf32>
    %940 = vector.shape_cast %939 : vector<1x1x16x16xf32> to vector<16x16xf32>
    %941 = vector.shape_cast %938 : vector<16x16xf32> to vector<1x1x16x16xf32>
    tpu.vector_store %arg4[%c0_123, %c1_124, %c0_125, %c0_126], %941 {strides = array<i32>} : memref<1x8x16x16xf32, #tpu.memory_space<vmem>>, vector<1x1x16x16xf32>,
    %c2_127 = arith.constant 2 : index
    %942 = memref.load %arg3[%c2_127] : memref<8xf32, #tpu.memory_space<smem>>
    %943 = vector.broadcast %942 : f32 to vector<16x16xf32>
    %944 = arith.addf %905, %943 : vector<16x16xf32>
    %cst_128 = arith.constant 3.000000e-01 : f32
    %945 = vector.broadcast %cst_128 : f32 to vector<16x16xf32>
    %946 = arith.minimumf %944, %945 : vector<16x16xf32>
    %c0_129 = arith.constant 0 : index
    %c2_130 = arith.constant 2 : index
    %c0_131 = arith.constant 0 : index
    %c0_132 = arith.constant 0 : index
    %947 = vector.load %arg4[%c0_129, %c2_130, %c0_131, %c0_132] : memref<1x8x16x16xf32, #tpu.memory_space<vmem>>, vector<1x1x16x16xf32>
    %948 = vector.shape_cast %947 : vector<1x1x16x16xf32> to vector<16x16xf32>
    %949 = vector.shape_cast %946 : vector<16x16xf32> to vector<1x1x16x16xf32>
    tpu.vector_store %arg4[%c0_129, %c2_130, %c0_131, %c0_132], %949 {strides = array<i32>} : memref<1x8x16x16xf32, #tpu.memory_space<vmem>>, vector<1x1x16x16xf32>,
    %c3_133 = arith.constant 3 : index
    %950 = memref.load %arg3[%c3_133] : memref<8xf32, #tpu.memory_space<smem>>
    %951 = vector.broadcast %950 : f32 to vector<16x16xf32>
    %952 = arith.addf %909, %951 : vector<16x16xf32>
    %cst_134 = arith.constant 3.000000e-01 : f32
    %953 = vector.broadcast %cst_134 : f32 to vector<16x16xf32>
    %954 = arith.minimumf %952, %953 : vector<16x16xf32>
    %c0_135 = arith.constant 0 : index
    %c3_136 = arith.constant 3 : index
    %c0_137 = arith.constant 0 : index
    %c0_138 = arith.constant 0 : index
    %955 = vector.load %arg4[%c0_135, %c3_136, %c0_137, %c0_138] : memref<1x8x16x16xf32, #tpu.memory_space<vmem>>, vector<1x1x16x16xf32>
    %956 = vector.shape_cast %955 : vector<1x1x16x16xf32> to vector<16x16xf32>
    %957 = vector.shape_cast %954 : vector<16x16xf32> to vector<1x1x16x16xf32>
    tpu.vector_store %arg4[%c0_135, %c3_136, %c0_137, %c0_138], %957 {strides = array<i32>} : memref<1x8x16x16xf32, #tpu.memory_space<vmem>>, vector<1x1x16x16xf32>,
    %c4_139 = arith.constant 4 : index
    %958 = memref.load %arg3[%c4_139] : memref<8xf32, #tpu.memory_space<smem>>
    %959 = vector.broadcast %958 : f32 to vector<16x16xf32>
    %960 = arith.addf %913, %959 : vector<16x16xf32>
    %cst_140 = arith.constant 3.000000e-01 : f32
    %961 = vector.broadcast %cst_140 : f32 to vector<16x16xf32>
    %962 = arith.minimumf %960, %961 : vector<16x16xf32>
    %c0_141 = arith.constant 0 : index
    %c4_142 = arith.constant 4 : index
    %c0_143 = arith.constant 0 : index
    %c0_144 = arith.constant 0 : index
    %963 = vector.load %arg4[%c0_141, %c4_142, %c0_143, %c0_144] : memref<1x8x16x16xf32, #tpu.memory_space<vmem>>, vector<1x1x16x16xf32>
    %964 = vector.shape_cast %963 : vector<1x1x16x16xf32> to vector<16x16xf32>
    %965 = vector.shape_cast %962 : vector<16x16xf32> to vector<1x1x16x16xf32>
    tpu.vector_store %arg4[%c0_141, %c4_142, %c0_143, %c0_144], %965 {strides = array<i32>} : memref<1x8x16x16xf32, #tpu.memory_space<vmem>>, vector<1x1x16x16xf32>,
    %c5_145 = arith.constant 5 : index
    %966 = memref.load %arg3[%c5_145] : memref<8xf32, #tpu.memory_space<smem>>
    %967 = vector.broadcast %966 : f32 to vector<16x16xf32>
    %968 = arith.addf %917, %967 : vector<16x16xf32>
    %cst_146 = arith.constant 3.000000e-01 : f32
    %969 = vector.broadcast %cst_146 : f32 to vector<16x16xf32>
    %970 = arith.minimumf %968, %969 : vector<16x16xf32>
    %c0_147 = arith.constant 0 : index
    %c5_148 = arith.constant 5 : index
    %c0_149 = arith.constant 0 : index
    %c0_150 = arith.constant 0 : index
    %971 = vector.load %arg4[%c0_147, %c5_148, %c0_149, %c0_150] : memref<1x8x16x16xf32, #tpu.memory_space<vmem>>, vector<1x1x16x16xf32>
    %972 = vector.shape_cast %971 : vector<1x1x16x16xf32> to vector<16x16xf32>
    %973 = vector.shape_cast %970 : vector<16x16xf32> to vector<1x1x16x16xf32>
    tpu.vector_store %arg4[%c0_147, %c5_148, %c0_149, %c0_150], %973 {strides = array<i32>} : memref<1x8x16x16xf32, #tpu.memory_space<vmem>>, vector<1x1x16x16xf32>,
    %c6_151 = arith.constant 6 : index
    %974 = memref.load %arg3[%c6_151] : memref<8xf32, #tpu.memory_space<smem>>
    %975 = vector.broadcast %974 : f32 to vector<16x16xf32>
    %976 = arith.addf %921, %975 : vector<16x16xf32>
    %cst_152 = arith.constant 3.000000e-01 : f32
    %977 = vector.broadcast %cst_152 : f32 to vector<16x16xf32>
    %978 = arith.minimumf %976, %977 : vector<16x16xf32>
    %c0_153 = arith.constant 0 : index
    %c6_154 = arith.constant 6 : index
    %c0_155 = arith.constant 0 : index
    %c0_156 = arith.constant 0 : index
    %979 = vector.load %arg4[%c0_153, %c6_154, %c0_155, %c0_156] : memref<1x8x16x16xf32, #tpu.memory_space<vmem>>, vector<1x1x16x16xf32>
    %980 = vector.shape_cast %979 : vector<1x1x16x16xf32> to vector<16x16xf32>
    %981 = vector.shape_cast %978 : vector<16x16xf32> to vector<1x1x16x16xf32>
    tpu.vector_store %arg4[%c0_153, %c6_154, %c0_155, %c0_156], %981 {strides = array<i32>} : memref<1x8x16x16xf32, #tpu.memory_space<vmem>>, vector<1x1x16x16xf32>,
    %c7_157 = arith.constant 7 : index
    %982 = memref.load %arg3[%c7_157] : memref<8xf32, #tpu.memory_space<smem>>
    %983 = vector.broadcast %982 : f32 to vector<16x16xf32>
    %984 = arith.addf %925, %983 : vector<16x16xf32>
    %cst_158 = arith.constant 3.000000e-01 : f32
    %985 = vector.broadcast %cst_158 : f32 to vector<16x16xf32>
    %986 = arith.minimumf %984, %985 : vector<16x16xf32>
    %c0_159 = arith.constant 0 : index
    %c7_160 = arith.constant 7 : index
    %c0_161 = arith.constant 0 : index
    %c0_162 = arith.constant 0 : index
    %987 = vector.load %arg4[%c0_159, %c7_160, %c0_161, %c0_162] : memref<1x8x16x16xf32, #tpu.memory_space<vmem>>, vector<1x1x16x16xf32>
    %988 = vector.shape_cast %987 : vector<1x1x16x16xf32> to vector<16x16xf32>
    %989 = vector.shape_cast %986 : vector<16x16xf32> to vector<1x1x16x16xf32>
    tpu.vector_store %arg4[%c0_159, %c7_160, %c0_161, %c0_162], %989 {strides = array<i32>} : memref<1x8x16x16xf32, #tpu.memory_space<vmem>>, vector<1x1x16x16xf32>,
    return
  }
  func.func @transform_0(%arg0: i32) -> (i32, i32, i32, i32) {
    %c0_i32 = arith.constant 0 : i32
    %c0_i32_0 = arith.constant 0 : i32
    %c0_i32_1 = arith.constant 0 : i32
    %c0_i32_2 = arith.constant 0 : i32
    return %arg0, %c0_i32, %c0_i32_0, %c0_i32_1 : i32, i32, i32, i32
  }
  func.func @transform_1(%arg0: i32) -> i32 {
    %c0_i32 = arith.constant 0 : i32
    %c0_i32_0 = arith.constant 0 : i32
    return %c0_i32 : i32
  }
  func.func @transform_2(%arg0: i32) -> i32 {
    %c0_i32 = arith.constant 0 : i32
    %c0_i32_0 = arith.constant 0 : i32
    return %c0_i32 : i32
  }
  func.func @transform_3(%arg0: i32) -> (i32, i32, i32, i32) {
    %c0_i32 = arith.constant 0 : i32
    %c0_i32_0 = arith.constant 0 : i32
    %c0_i32_1 = arith.constant 0 : i32
    %c0_i32_2 = arith.constant 0 : i32
    return %arg0, %c0_i32, %c0_i32_0, %c0_i32_1 : i32, i32, i32, i32
  }
}

</mosaic_0001>

<bundles_post_ra>
// kernel: tpu_custom_call.1
= control target key start
LH: loop header
LB: loop body
LE: loop exit
PB: predicated region body
PF: predicated region fallthrough
CT: control target
= control target key end

     0   :  { %8 = vsyncpa [#allocation4], 0  ;;  %s5756_s0 = inlined_call_operand.vmem [shape: f32[2,3,18,18], index: 0, kind: input, shape index: {}]   ;;  %s5757_s1 = inlined_call_operand.vmem [shape: f32[216], index: 1, kind: input, shape index: {}]   ;;  %s5758_s2 = inlined_call_operand.vmem [shape: f32[8], index: 2, kind: input, shape index: {}]   ;;  %s5759_s3 = inlined_call_operand.hbm [shape: f32[2,8,16,16], index: 3, kind: output, shape index: {}]  }
   0x1   :  { %9 = vsyncpa [#allocation6], 0 }
   0x2   :  { %10 = vsyncpa [#allocation3], 0 }
   0x3   :  { %12 = vsyncpa [#allocation3 + $0x1], 0  ;;  %s3304_s12 = smov 0   ;;  %s3306_s13 = smov 0  }
   0x4   :  { %s3308_s14 = smov 0   ;;  %s3310_s15 = smov 0  }
   0x5 LB: > { %s3325_s16 = sadd.s32 4294967295, %s3275_s15   ;;  %s2834_s17 = sadd.s32 4294967294, %s3275_s15   ;;  %s3275_s15 = sphi %s3310_s15, %s6101_s15   ;;  %s3271_s14 = sphi %s3308_s14, %s6100_s14   ;;  %s3267_s13 = sphi %s3306_s13, %s6099_s13   ;;  %s3263_s12 = sphi %s3304_s12, %s6098_s12  }
   0x6   : > { %s3329_s18 = sadd.s32 1, %s3275_s15   ;;  %s93_s19 = sadd.s32 1, %s3271_s14 }
   0x7   : > { %s90_s20 = ssub.s32 %s3275_s15, %s3329_s18  ;;  %p103_p0 = scmp.ne.s32.totalorder %s3271_s14, %s3267_s13 }
   0x8   : > { %p91_p1 = scmp.eq.s32.totalorder %s90_s20, 0  ;;  %p104_p2 = scmp.eq.s32.totalorder %s3325_s16, 1 }
   0x9   : > { %p109_p3 = scmp.ne.s32.totalorder %s3267_s13, %s3263_s12  ;;  %p110_p4 = scmp.eq.s32.totalorder %s2834_s17, 1 }
   0xa   : > { %s3340_s21 = scalar_select %p91_p1, %s3271_s14, %s93_s19  }
   0xb   : > { %p3342_p5 = por %p104_p2, %p103_p0  ;;  %p3346_p6 = por %p110_p4, %p109_p3 }
   0xc   : > { %p2835_p7 = scmp.ge.s32.totalorder %s3275_s15, 1  ;;  %p117_p8 = scmp.lt.s32.totalorder %s3275_s15, 3 }
   0xd   : > { %s5767_s22 = scalar_select %p3342_p5, 1, 0 }
   0xe   : > { %s5768_s23 = scalar_select %p3346_p6, 1, 0 }
   0xf   : > { %p5760_p9 = scmp.eq.s32.totalorder %s3325_s16, 0  ;;  %p3353_p10 = pnand %p2835_p7, %p117_p8 }
  0x10   : > { %s130_s27 = sshll.u32 %s5757_s1, 4  ;;  %s141_s30 = sshll.u32 %s5758_s2, 4  ;;  %s131_s27 = int_to_ptr.vmem [resolvable:$true] %s130_s27  ;;  %s142_s30 = int_to_ptr.vmem [resolvable:$true] %s141_s30 }
  0x11   : > { %s5769_s24 = scalar_select %p3353_p10, 1, 0 }
  0x12   : > { %p3109_p11 = pneg %p3353_p10  ;;  %s3175_s5 = scalar_lea.vmem %s131_s27, 32 }
  0x13   : > { %p3176_p13 = scmp.ne.s32.totalorder %s131_s27, %s3175_s5  ;;  %p3183_p3 = scmp.lt.s32.totalorder %s131_s27, %s131_s27 }
  0x14   : > { %p3367_p12 = pnand %p5760_p9, %p3109_p11  ;;  %p3184_p4 = scmp.lt.s32.totalorder %s3175_s5, %s3175_s5 }
  0x16   : > { %p3177_p0 = pneg %p3367_p12  ;;  %p3185_p7 = por %p3184_p4, %p3183_p3 }
  0x18   : > { %p3178_p1 = pnand %p3177_p0, %p3176_p13 }
  0x1a   : > { %p3179_p2 = pneg %p3178_p1 }
  0x1c   : > { %p3186_p8 = pnand %p3185_p7, %p3179_p2 }
  0x1e   : > { %3189 = shalt.err (!%p3186_p8)
}
  0x1f   : > { %s3277_s6 = smov [#allocation2]   ;;  %s3190_s7 = scalar_lea.vmem %s142_s30, 16 }
  0x20   : > { %3112 = dma.vmem_to_smem (!%p3367_p12), %s131_s27, 32, %s3277_s6, [#allocation4]  }
  0x21   : > { %p3191_p11 = scmp.ne.s32.totalorder %s142_s30, %s3190_s7  ;;  %p3198_p5 = scmp.lt.s32.totalorder %s142_s30, %s142_s30 }
  0x22   : > { %p3199_p10 = scmp.lt.s32.totalorder %s3190_s7, %s3190_s7 }
  0x23   : > { %p3193_p9 = pnand %p3191_p11, %p3177_p0 }
  0x24   : > { %p3200_p13 = por %p3199_p10, %p3198_p5 }
  0x25   : > { %p3194_p6 = pneg %p3193_p9 }
  0x27   : > { %p3201_p1 = pnand %p3200_p13, %p3194_p6 }
  0x29   : > { %3204 = shalt.err (!%p3201_p1)
}
  0x2a   : > { %s3278_s8 = smov [#allocation5]   ;;  %p5771_p2 = scmp.ne.s32.totalorder %s5769_s24, 0 }
  0x2b   : > { %3115 = dma.vmem_to_smem (!%p3367_p12), %s142_s30, 16, %s3278_s8, [#allocation6]  }
  0x2c   : > { %162 = sbr.rel (%p5771_p2) target bundleno = 778 (0x30a), region = 32 }
  0x33   : > { %p5772_p3 = scmp.eq.s32.totalorder %s3325_s16, 0 }
  0x35   : > { %3250 = dma.done.wait (%p5772_p3), [#allocation4], 32   ;;  %p5773_p4 = pmov %p5772_p3 }
  0x36   : > { %p5774_p9 = pmov %p5772_p3 }
  0x37   : > { %3252 = vsyncadd (%p5773_p4), [#allocation4], 4294967264 }
  0x38   : > { %3254 = dma.done.wait (%p5774_p9), [#allocation6], 16   ;;  %p5775_p5 = pmov %p5772_p3 }
  0x3a   : > { %3256 = vsyncadd (%p5775_p5), [#allocation6], 4294967280 }
  0x3b   : > { %172 = sfence }
  0x3c   : > { %p191_p6 = scmp.lt.s32.totalorder %s3325_s16, 1  ;;  %s2852_s9 = sld [smem:[#allocation2 + $0x1c]]  ;;  %vm2670_vm0 = vcmask 130048  }
  0x3d   : > { %s2851_s10 = sld [smem:[#allocation2 + $0x1]]  ;;  %s2853_s17 = sld [smem:[#allocation2 + $0x37]] }
  0x3e   : > { %s192_s11 = scalar_select %p191_p6, %s3325_s16, 1 }
  0x3f   : > { %s2854_s26 = sld [smem:[#allocation2 + $0x52]]  ;;  %s3279_s27 = smov 127  }
  0x40   : > { %s3098_s19 = smul.u32 72, %s192_s11  ;;  %s2855_s28 = sld [smem:[#allocation2 + $0x6d]] }
  0x41   : > { %s2856_s29 = sld [smem:[#allocation2 + $0x88]]  ;;  %s2857_s30 = sld [smem:[#allocation2 + $0xa3]] }
  0x42   : > { %s3392_s25 = scalar_lea.vmem %s5756_s0, %s3098_s19  ;;  %v261_v2 = vstv %s2852_s9  ;;  %s2858_s4 = sld [smem:[#allocation2 + $0xbe]] }
  0x43   : > { %v3395_v0 = vld [vmem:[%s3392_s25] sm:$0xff]  ;;  %v3398_v1 = vld [vmem:[%s3392_s25 + $0x8] sm:$0xff]  ;;  %v247_v3 = vstv %s2851_s10  ;;  %v275_v8 = vstv %s2853_s17  ;;  %s2859_s5 = sld [smem:[#allocation2 + $0x2]]  ;;  %s2860_s6 = sld [smem:[#allocation2 + $0x1d]] }
  0x44   : > { %v262_v4 = vmul.f32 %v261_v2, %v3395_v0  ;;  %v248_v5 = vmul.f32 %v247_v3, %v3395_v0  ;;  %v263_v6 = vmul.f32 %v261_v2, %v3398_v1  ;;  %v249_v7 = vmul.f32 %v247_v3, %v3398_v1  ;;  %s2861_s7 = sld [smem:[#allocation2 + $0x38]]  ;;  %s2862_s8 = sld [smem:[#allocation2 + $0x53]]  ;;  %v3463_v50 = vld [vmem:[%s3392_s25 + $0x9] sm:$0xff]  ;;  %v3466_v52 = vld [vmem:[%s3392_s25 + $0x1] sm:$0xff] }
  0x45   : > { %v277_v9 = vmul.f32 %v275_v8, %v3398_v1  ;;  %v276_v10 = vmul.f32 %v275_v8, %v3395_v0  ;;  %v289_v11 = vstv %s2854_s26  ;;  %s3280_s9 = smov 126   ;;  %s2863_s10 = sld [smem:[#allocation2 + $0x6e]] }
  0x46   : > { %266 = vrot.lane.b32.xlu1 %v262_v4, %s3279_s27  ;;  %252 = vrot.lane.b32.xlu0 %v248_v5, %s3279_s27  ;;  %v291_v12 = vmul.f32 %v289_v11, %v3398_v1  ;;  %v290_v13 = vmul.f32 %v289_v11, %v3395_v0  ;;  %v303_v14 = vstv %s2855_s28  ;;  %s2864_s11 = sld [smem:[#allocation2 + $0x89]]  ;;  %s2865_s17 = sld [smem:[#allocation2 + $0xa4]] }
  0x47   : > { %v305_v15 = vmul.f32 %v303_v14, %v3398_v1  ;;  %v304_v16 = vmul.f32 %v303_v14, %v3395_v0  ;;  %v317_v17 = vstv %s2856_s29  ;;  %v331_v20 = vstv %s2857_s30  ;;  %s2866_s19 = sld [smem:[#allocation2 + $0xbf]]  ;;  %s2875_s20 = sld [smem:[#allocation2 + $0x4]] }
  0x48   : > { %v319_v18 = vmul.f32 %v317_v17, %v3398_v1  ;;  %v318_v19 = vmul.f32 %v317_v17, %v3395_v0  ;;  %v333_v21 = vmul.f32 %v331_v20, %v3398_v1  ;;  %v332_v22 = vmul.f32 %v331_v20, %v3395_v0  ;;  %s2876_s24 = sld [smem:[#allocation2 + $0x1f]]  ;;  %s2877_s26 = sld [smem:[#allocation2 + $0x3a]] }
  0x49   : > { %v345_v23 = vstv %s2858_s4  ;;  %v359_v26 = vstv %s2859_s5  ;;  %v373_v29 = vstv %s2860_s6  ;;  %s2878_s28 = sld [smem:[#allocation2 + $0x55]]  ;;  %s2879_s29 = sld [smem:[#allocation2 + $0x70]] }
  0x4a   : > { %268 = vrot.lane.b32.xlu1 %v263_v6, %s3279_s27  ;;  %254 = vrot.lane.b32.xlu0 %v249_v7, %s3279_s27  ;;  %v347_v24 = vmul.f32 %v345_v23, %v3398_v1  ;;  %v346_v25 = vmul.f32 %v345_v23, %v3395_v0  ;;  %v361_v27 = vmul.f32 %v359_v26, %v3398_v1  ;;  %v387_v32 = vstv %s2861_s7  ;;  %s2880_s30 = sld [smem:[#allocation2 + $0x8b]]  ;;  %s2881_s4 = sld [smem:[#allocation2 + $0xa6]] }
  0x4b   : > { %v360_v28 = vmul.f32 %v359_v26, %v3395_v0  ;;  %v375_v30 = vmul.f32 %v373_v29, %v3398_v1  ;;  %v374_v31 = vmul.f32 %v373_v29, %v3395_v0  ;;  %v389_v33 = vmul.f32 %v387_v32, %v3398_v1  ;;  %s2882_s5 = sld [smem:[#allocation2 + $0xc1]]  ;;  %s2883_s6 = sld [smem:[#allocation2 + $0x5]] }
  0x4c   : > { %v388_v34 = vmul.f32 %v387_v32, %v3395_v0  ;;  %v401_v35 = vstv %s2862_s8  ;;  %v415_v38 = vstv %s2863_s10  ;;  %v429_v41 = vstv %s2864_s11  ;;  %s2884_s7 = sld [smem:[#allocation2 + $0x20]]  ;;  %s2885_s8 = sld [smem:[#allocation2 + $0x3b]] }
  0x4d   : > { %v403_v36 = vmul.f32 %v401_v35, %v3398_v1  ;;  %v402_v37 = vmul.f32 %v401_v35, %v3395_v0  ;;  %v417_v39 = vmul.f32 %v415_v38, %v3398_v1  ;;  %v416_v40 = vmul.f32 %v415_v38, %v3395_v0  ;;  %s2886_s10 = sld [smem:[#allocation2 + $0x56]]  ;;  %s2887_s11 = sld [smem:[#allocation2 + $0x71]] }
  0x4e   : > { %282 = vrot.lane.b32.xlu1 %v277_v9, %s3279_s27  ;;  %280 = vrot.lane.b32.xlu0 %v276_v10, %s3279_s27  ;;  %v431_v42 = vmul.f32 %v429_v41, %v3398_v1  ;;  %v430_v43 = vmul.f32 %v429_v41, %v3395_v0  ;;  %v443_v44 = vstv %s2865_s17  ;;  %v457_v47 = vstv %s2866_s19  ;;  %s2888_s17 = sld [smem:[#allocation2 + $0x8c]]  ;;  %s2889_s19 = sld [smem:[#allocation2 + $0xa7]] }
  0x4f   : > { %v445_v45 = vmul.f32 %v443_v44, %v3398_v1  ;;  %v444_v46 = vmul.f32 %v443_v44, %v3395_v0  ;;  %v459_v48 = vmul.f32 %v457_v47, %v3398_v1  ;;  %v458_v49 = vmul.f32 %v457_v47, %v3395_v0  ;;  %v3544_v44 = vld [vmem:[%s3392_s25 + $0x2] sm:$0xff]  ;;  %p6096_p12 = scmp.ne.s32.totalorder %s5767_s22, 0 }
  0x50   : > { %v521_v51 = vstv %s2875_s20  ;;  %v535_v55 = vstv %s2876_s24  ;;  %v549_v58 = vstv %s2877_s26  ;;  %v563_v61 = vstv %s2878_s28  ;;  %s2890_s20 = sld [smem:[#allocation2 + $0xc2]]  ;;  %s2899_s24 = sld [smem:[#allocation2 + $0x7]] }
  0x51   : > { %v523_v53 = vmul.f32 %v521_v51, %v3463_v50  ;;  %v522_v54 = vmul.f32 %v521_v51, %v3466_v52  ;;  %v537_v56 = vmul.f32 %v535_v55, %v3463_v50  ;;  %v536_v57 = vmul.f32 %v535_v55, %v3466_v52  ;;  %s2900_s26 = sld [smem:[#allocation2 + $0x22]]  ;;  %s2901_s28 = sld [smem:[#allocation2 + $0x3d]] }
  0x52   : > { %296 = vrot.lane.b32.xlu1 %v291_v12, %s3279_s27  ;;  %294 = vrot.lane.b32.xlu0 %v290_v13, %s3279_s27  ;;  %v551_v59 = vmul.f32 %v549_v58, %v3463_v50  ;;  %v550_v60 = vmul.f32 %v549_v58, %v3466_v52  ;;  %v565_v62 = vmul.f32 %v563_v61, %v3463_v50  ;;  %v577_v2 = vstv %s2879_s29  ;;  %s2902_s29 = sld [smem:[#allocation2 + $0x58]] }
  0x53   : > { %v564_v63 = vmul.f32 %v563_v61, %v3466_v52  ;;  %v579_v3 = vmul.f32 %v577_v2, %v3463_v50  ;;  %v578_v4 = vmul.f32 %v577_v2, %v3466_v52  ;;  %v591_v5 = vstv %s2880_s30  ;;  %s3562_s30 = sld [smem:[#allocation2 + $0x73]] }
  0x54   : > { %v593_v6 = vmul.f32 %v591_v5, %v3463_v50  ;;  %v592_v7 = vmul.f32 %v591_v5, %v3466_v52  ;;  %v605_v8 = vstv %s2881_s4  ;;  %v619_v11 = vstv %s2882_s5  ;;  %s3564_s4 = sld [smem:[#allocation2]]  ;;  %s3570_s5 = sld [smem:[#allocation2 + $0x1b]] }
  0x55   : > { %v607_v9 = vmul.f32 %v605_v8, %v3463_v50  ;;  %v606_v10 = vmul.f32 %v605_v8, %v3466_v52  ;;  %v621_v12 = vmul.f32 %v619_v11, %v3463_v50  ;;  %v620_v13 = vmul.f32 %v619_v11, %v3466_v52 }
  0x56   : > { %310 = vrot.lane.b32.xlu1 %v305_v15, %s3279_s27  ;;  %308 = vrot.lane.b32.xlu0 %v304_v16, %s3279_s27  ;;  %v633_v14 = vstv %s2883_s6  ;;  %v647_v17 = vstv %s2884_s7  ;;  %s3576_s6 = sld [smem:[#allocation2 + $0x8e]]  ;;  %s3582_s7 = sld [smem:[#allocation2 + $0x3]] }
  0x57   : > { %v635_v15 = vmul.f32 %v633_v14, %v3463_v50  ;;  %v634_v16 = vmul.f32 %v633_v14, %v3466_v52  ;;  %v661_v20 = vstv %s2885_s8  ;;  %v675_v23 = vstv %s2886_s10  ;;  %s3584_s8 = sld [smem:[#allocation2 + $0x36]]  ;;  %s3590_s10 = sld [smem:[#allocation2 + $0xa9]] }
  0x58   : > { %v689_v26 = vstv %s2887_s11  ;;  %v703_v29 = vstv %s2888_s17  ;;  %v717_v32 = vstv %s2889_s19  ;;  %v837_v61 = vstv %s2902_s29  ;;  %s3592_s11 = sld [smem:[#allocation2 + $0x1e]]  ;;  %s3596_s17 = sld [smem:[#allocation2 + $0x51]] }
  0x59   : > { %v719_v35 = vmul.f32 %v717_v32, %v3463_v50  ;;  %s3602_s19 = sld [smem:[#allocation2 + $0xc4]]  ;;  %s3641_s29 = sld [smem:[#allocation2 + $0x87]] }
  0x5a   : > { %324 = vrot.lane.b32.xlu1 %v319_v18, %s3279_s27  ;;  %322 = vrot.lane.b32.xlu0 %v318_v19, %s3279_s27  ;;  %v649_v18 = vmul.f32 %v647_v17, %v3463_v50  ;;  %v648_v19 = vmul.f32 %v647_v17, %v3466_v52  ;;  %v199_v5 = vstv %s3564_s4  ;;  %v205_v8 = vstv %s3570_s5  ;;  %s3653_s4 = sld [smem:[#allocation2 + $0x6f]]  ;;  %s3664_s5 = sld [smem:[#allocation2 + $0xa2]] }
  0x5b   : > { %v200_v11 = vmul.f32 %v199_v5, %v3395_v0  ;;  %v206_v17 = vmul.f32 %v205_v8, %v3395_v0 }
  0x5e   : > { %338 = vrot.lane.b32.xlu1 %v333_v21, %s3279_s27  ;;  %336 = vrot.lane.b32.xlu0 %v332_v22, %s3279_s27  ;;  %v663_v21 = vmul.f32 %v661_v20, %v3463_v50  ;;  %v662_v22 = vmul.f32 %v661_v20, %v3466_v52 }
  0x62   : > { %352 = vrot.lane.b32.xlu1 %v347_v24, %s3279_s27  ;;  %350 = vrot.lane.b32.xlu0 %v346_v25, %s3279_s27  ;;  %v677_v24 = vmul.f32 %v675_v23, %v3463_v50  ;;  %v676_v25 = vmul.f32 %v675_v23, %v3466_v52  ;;  %v479_v23 = vstv %s3592_s11  ;;  %s3699_s11 = sld [smem:[#allocation2 + $0xa5]] }
  0x66   : > { %366 = vrot.lane.b32.xlu1 %v361_v27, %s3280_s9  ;;  %364 = vrot.lane.b32.xlu0 %v360_v28, %s3280_s9  ;;  %v691_v27 = vmul.f32 %v689_v26, %v3463_v50  ;;  %v690_v28 = vmul.f32 %v689_v26, %v3466_v52 }
  0x6a   : > { %380 = vrot.lane.b32.xlu1 %v375_v30, %s3280_s9  ;;  %378 = vrot.lane.b32.xlu0 %v374_v31, %s3280_s9  ;;  %v705_v30 = vmul.f32 %v703_v29, %v3463_v50  ;;  %v704_v31 = vmul.f32 %v703_v29, %v3466_v52 }
  0x6e   : > { %394 = vrot.lane.b32.xlu1 %v389_v33, %s3280_s9  ;;  %392 = vrot.lane.b32.xlu0 %v388_v34, %s3280_s9 }
  0x72   : > { %408 = vrot.lane.b32.xlu1 %v403_v36, %s3280_s9  ;;  %406 = vrot.lane.b32.xlu0 %v402_v37, %s3280_s9  ;;  %v718_v36 = vmul.f32 %v717_v32, %v3466_v52  ;;  %v731_v37 = vstv %s2890_s20  ;;  %s3609_s20 = sld [smem:[#allocation2 + $0x39]] }
  0x73   : > { %v732_v41 = vmul.f32 %v731_v37, %v3466_v52 }
  0x76   : > { %422 = vrot.lane.b32.xlu1 %v417_v39, %s3280_s9  ;;  %420 = vrot.lane.b32.xlu0 %v416_v40, %s3280_s9  ;;  %v733_v40 = vmul.f32 %v731_v37, %v3463_v50  ;;  %v893_v37 = vstv %s3602_s19  ;;  %s3720_s19 = sld [smem:[#allocation2 + $0xc0]] }
  0x7a   : > { %436 = vrot.lane.b32.xlu1 %v431_v42, %s3280_s9  ;;  %434 = vrot.lane.b32.xlu0 %v430_v43, %s3280_s9  ;;  %v3541_v42 = vld [vmem:[%s3392_s25 + $0xa] sm:$0xff]  ;;  %v795_v43 = vstv %s2899_s24  ;;  %s3614_s24 = sld [smem:[#allocation2 + $0x6c]] }
  0x7b   : > { %v797_v47 = vmul.f32 %v795_v43, %v3541_v42  ;;  %v839_v2 = vmul.f32 %v837_v61, %v3541_v42 }
  0x7e   : > { %450 = vrot.lane.b32.xlu1 %v445_v45, %s3280_s9  ;;  %448 = vrot.lane.b32.xlu0 %v444_v46, %s3280_s9 }
  0x82   : > { %464 = vrot.lane.b32.xlu1 %v459_v48, %s3280_s9  ;;  %462 = vrot.lane.b32.xlu0 %v458_v49, %s3280_s9  ;;  %v796_v48 = vmul.f32 %v795_v43, %v3544_v44  ;;  %v809_v49 = vstv %s2900_s26  ;;  %s3629_s26 = sld [smem:[#allocation2 + $0x8]]  ;;  %v485_v43 = vstv %s3609_s20  ;;  %s3736_s20 = sld [smem:[#allocation2 + $0x8f]] }
  0x83   : > { %v810_v55 = vmul.f32 %v809_v49, %v3544_v44 }
  0x86   : > { %528 = vrot.lane.b32.xlu1 %v523_v53, %s3279_s27  ;;  %526 = vrot.lane.b32.xlu0 %v522_v54, %s3279_s27  ;;  %v811_v54 = vmul.f32 %v809_v49, %v3541_v42 }
  0x8a   : > { %542 = vrot.lane.b32.xlu1 %v537_v56, %s3279_s27  ;;  %540 = vrot.lane.b32.xlu0 %v536_v57, %s3279_s27  ;;  %v823_v56 = vstv %s2901_s28  ;;  %s3632_s28 = sld [smem:[#allocation2 + $0x54]] }
  0x8e   : > { %556 = vrot.lane.b32.xlu1 %v551_v59, %s3279_s27  ;;  %554 = vrot.lane.b32.xlu0 %v550_v60, %s3279_s27  ;;  %v825_v59 = vmul.f32 %v823_v56, %v3541_v42  ;;  %v824_v60 = vmul.f32 %v823_v56, %v3544_v44 }
  0x92   : > { %570 = vrot.lane.b32.xlu1 %v565_v62, %s3279_s27  ;;  %568 = vrot.lane.b32.xlu0 %v564_v63, %s3279_s27 }
  0x96   : > { %584 = vrot.lane.b32.xlu1 %v579_v3, %s3279_s27  ;;  %582 = vrot.lane.b32.xlu0 %v578_v4, %s3279_s27  ;;  %v838_v3 = vmul.f32 %v837_v61, %v3544_v44  ;;  %v851_v4 = vstv %s3562_s30  ;;  %s3645_s30 = sld [smem:[#allocation2 + $0x23]] }
  0x9a   : > { %598 = vrot.lane.b32.xlu1 %v593_v6, %s3279_s27  ;;  %596 = vrot.lane.b32.xlu0 %v592_v7, %s3279_s27 }
  0x9e   : > { %612 = vrot.lane.b32.xlu1 %v607_v9, %s3279_s27  ;;  %610 = vrot.lane.b32.xlu0 %v606_v10, %s3279_s27  ;;  %v853_v9 = vmul.f32 %v851_v4, %v3541_v42  ;;  %v852_v10 = vmul.f32 %v851_v4, %v3544_v44  ;;  %v907_v4 = vstv %s3629_s26  ;;  %s2914_s26 = sld [smem:[#allocation2 + $0xc5]] }
  0xa2   : > { %626 = vrot.lane.b32.xlu1 %v621_v12, %s3279_s27  ;;  %624 = vrot.lane.b32.xlu0 %v620_v13, %s3279_s27  ;;  %v201_v12 = vmul.f32 %v199_v5, %v3398_v1  ;;  %v865_v13 = vstv %s3576_s6  ;;  %s3671_s6 = sld [smem:[#allocation2 + $0x3e]]  ;;  %v487_v5 = vmul.f32 %v485_v43, %v3463_v50 }
  0xa3   : > { %v867_v20 = vmul.f32 %v865_v13, %v3541_v42 }
  0xa6   : > { %640 = vrot.lane.b32.xlu1 %v635_v15, %s3280_s9  ;;  %638 = vrot.lane.b32.xlu0 %v634_v16, %s3280_s9  ;;  %v473_v16 = vstv %s3582_s7  ;;  %s3676_s7 = sld [smem:[#allocation2 + $0x8a]] }
  0xa7   : > { %v475_v26 = vmul.f32 %v473_v16, %v3463_v50 }
  0xaa   : > { %654 = vrot.lane.b32.xlu1 %v649_v18, %s3280_s9  ;;  %652 = vrot.lane.b32.xlu0 %v648_v19, %s3280_s9  ;;  %v207_v18 = vmul.f32 %v205_v8, %v3398_v1  ;;  %v211_v19 = vstv %s3584_s8  ;;  %v486_v8 = vmul.f32 %v485_v43, %v3466_v52  ;;  %s3687_s8 = sld [smem:[#allocation2 + $0xbd]] }
  0xab   : > { %v212_v29 = vmul.f32 %v211_v19, %v3395_v0 }
  0xae   : > { %668 = vrot.lane.b32.xlu1 %v663_v21, %s3280_s9  ;;  %666 = vrot.lane.b32.xlu0 %v662_v22, %s3280_s9  ;;  %v866_v21 = vmul.f32 %v865_v13, %v3544_v44  ;;  %v879_v22 = vstv %s3590_s10  ;;  %s3694_s10 = sld [smem:[#allocation2 + $0x59]] }
  0xb2   : > { %682 = vrot.lane.b32.xlu1 %v677_v24, %s3280_s9  ;;  %680 = vrot.lane.b32.xlu0 %v676_v25, %s3280_s9 }
  0xb6   : > { %696 = vrot.lane.b32.xlu1 %v691_v27, %s3280_s9  ;;  %694 = vrot.lane.b32.xlu0 %v690_v28, %s3280_s9  ;;  %v474_v27 = vmul.f32 %v473_v16, %v3466_v52  ;;  %v213_v28 = vmul.f32 %v211_v19, %v3398_v1 }
  0xb8   : > { %v3524_v33 = vpop.permute.xlu1 %266  ;;  %v3526_v34 = vpop.permute.xlu0 %252 }
  0xb9   : > { %v258_v24 = vadd.f32 %v3526_v34, %v200_v11  ;;  %v881_v34 = vmul.f32 %v879_v22, %v3541_v42 }
  0xba   : > { %710 = vrot.lane.b32.xlu1 %v705_v30, %s3280_s9  ;;  %708 = vrot.lane.b32.xlu0 %v704_v31, %s3280_s9  ;;  %v217_v30 = vstv %s3596_s17  ;;  %s3715_s17 = sld [smem:[#allocation2 + $0x74]] }
  0xbb   : > { %v218_v56 = vmul.f32 %v217_v30, %v3395_v0 }
  0xbc   : > { %v3532_v38 = vpop.permute.xlu1 %268  ;;  %v3534_v39 = vpop.permute.xlu0 %254 }
  0xbd   : > { %v259_v25 = vadd.f32 %v3534_v39, %v201_v12  ;;  %v880_v39 = vmul.f32 %v879_v22, %v3544_v44 }
  0xbe   : > { %724 = vrot.lane.b32.xlu1 %v719_v35, %s3280_s9  ;;  %722 = vrot.lane.b32.xlu0 %v718_v36, %s3280_s9 }
  0xc0   : > { %v3546_v45 = vpop.permute.xlu1 %282  ;;  %v3548_v46 = vpop.permute.xlu0 %280 }
  0xc1   : > { %v286_v11 = vadd.f32 %v3548_v46, %v212_v29  ;;  %v921_v46 = vstv %s3645_s30  ;;  %s2927_s30 = sld [smem:[#allocation2 + $0x40]] }
  0xc2   : > { %738 = vrot.lane.b32.xlu1 %v733_v40, %s3280_s9  ;;  %736 = vrot.lane.b32.xlu0 %v732_v41, %s3280_s9  ;;  %v481_v40 = vmul.f32 %v479_v23, %v3463_v50  ;;  %v480_v41 = vmul.f32 %v479_v23, %v3466_v52  ;;  %v908_v23 = vmul.f32 %v907_v4, %v3544_v44 }
  0xc4   : > { %v3554_v51 = vpop.permute.xlu1 %296  ;;  %v3556_v53 = vpop.permute.xlu0 %294 }
  0xc6   : > { %802 = vrot.lane.b32.xlu1 %v797_v47, %s3279_s27  ;;  %800 = vrot.lane.b32.xlu0 %v796_v48, %s3279_s27  ;;  %v272_v47 = vadd.f32 %v3524_v33, %v206_v17  ;;  %v273_v48 = vadd.f32 %v3532_v38, %v207_v18  ;;  %v895_v33 = vmul.f32 %v893_v37, %v3541_v42  ;;  %v229_v18 = vstv %s3641_s29  ;;  %s2926_s29 = sld [smem:[#allocation2 + $0x25]] }
  0xc7   : > { %v894_v38 = vmul.f32 %v893_v37, %v3544_v44 }
  0xc8   : > { %v3566_v57 = vpop.permute.xlu1 %310  ;;  %v3568_v58 = vpop.permute.xlu0 %308 }
  0xca   : > { %816 = vrot.lane.b32.xlu1 %v811_v54, %s3279_s27  ;;  %814 = vrot.lane.b32.xlu0 %v810_v55, %s3279_s27  ;;  %v219_v55 = vmul.f32 %v217_v30, %v3398_v1 }
  0xcc   : > { %v3578_v62 = vpop.permute.xlu1 %324  ;;  %v3580_v63 = vpop.permute.xlu0 %322 }
  0xce   : > { %830 = vrot.lane.b32.xlu1 %v825_v59, %s3279_s27  ;;  %828 = vrot.lane.b32.xlu0 %v824_v60, %s3279_s27  ;;  %v223_v59 = vstv %s3614_s24  ;;  %s3759_s24 = sld [smem:[#allocation2 + $0xaa]] }
  0xcf   : > { %v225_v16 = vmul.f32 %v223_v59, %v3398_v1  ;;  %v224_v17 = vmul.f32 %v223_v59, %v3395_v0 }
  0xd0   : > { %v3598_v6 = vpop.permute.xlu1 %338  ;;  %v3600_v7 = vpop.permute.xlu0 %336 }
  0xd2   : > { %844 = vrot.lane.b32.xlu1 %v839_v2, %s3279_s27  ;;  %842 = vrot.lane.b32.xlu0 %v838_v3, %s3279_s27 }
  0xd4   : > { %v3616_v14 = vpop.permute.xlu1 %352  ;;  %v3618_v15 = vpop.permute.xlu0 %350 }
  0xd6   : > { %858 = vrot.lane.b32.xlu1 %v853_v9, %s3279_s27  ;;  %856 = vrot.lane.b32.xlu0 %v852_v10, %s3279_s27  ;;  %v491_v9 = vstv %s3632_s28  ;;  %v287_v10 = vadd.f32 %v3546_v45, %v213_v28  ;;  %v909_v45 = vmul.f32 %v907_v4, %v3541_v42  ;;  %v300_v28 = vadd.f32 %v3556_v53, %v218_v56  ;;  %s2925_s28 = sld [smem:[#allocation2 + $0xa]] }
  0xd7   : > { %v935_v53 = vstv %s3671_s6  ;;  %s2930_s6 = sld [smem:[#allocation2 + $0x91]] }
  0xd8   : > { %v367_v31 = vpop.permute.xlu1 %366  ;;  %v365_v32 = vpop.permute.xlu0 %364 }
  0xd9   : > { %v371_v35 = vadd.f32 %v367_v31, %v259_v25  ;;  %v370_v36 = vadd.f32 %v365_v32, %v258_v24  ;;  %v493_v24 = vmul.f32 %v491_v9, %v3463_v50  ;;  %v492_v25 = vmul.f32 %v491_v9, %v3466_v52 }
  0xda   : > { %872 = vrot.lane.b32.xlu1 %v867_v20, %s3279_s27  ;;  %870 = vrot.lane.b32.xlu0 %v866_v21, %s3279_s27  ;;  %v231_v31 = vmul.f32 %v229_v18, %v3398_v1  ;;  %v230_v32 = vmul.f32 %v229_v18, %v3395_v0 }
  0xdb   : > { %v3657_v49 = vadd.f32 %v475_v26, %v371_v35  ;;  %v3659_v54 = vadd.f32 %v474_v27, %v370_v36  ;;  %v497_v26 = vstv %s3653_s4  ;;  %v301_v27 = vadd.f32 %v3554_v51, %v219_v55  ;;  %s2928_s4 = sld [smem:[#allocation2 + $0x5b]] }
  0xdc   : > { %v381_v60 = vpop.permute.xlu1 %380  ;;  %v379_v61 = vpop.permute.xlu0 %378  ;;  %v235_v35 = vstv %s3664_s5  ;;  %v922_v51 = vmul.f32 %v921_v46, %v3544_v44  ;;  %v498_v43 = vmul.f32 %v497_v26, %v3466_v52  ;;  %v314_v55 = vadd.f32 %v3568_v58, %v224_v17  ;;  %s2929_s5 = sld [smem:[#allocation2 + $0x76]] }
  0xdd   : > { %v385_v2 = vadd.f32 %v381_v60, %v273_v48  ;;  %v384_v3 = vadd.f32 %v379_v61, %v272_v47  ;;  %v503_v47 = vstv %s3676_s7  ;;  %v315_v48 = vadd.f32 %v3566_v57, %v225_v16  ;;  %s2931_s7 = sld [smem:[#allocation2 + $0xac]] }
  0xde   : > { %886 = vrot.lane.b32.xlu1 %v881_v34, %s3279_s27  ;;  %884 = vrot.lane.b32.xlu0 %v880_v39, %s3279_s27  ;;  %v237_v60 = vmul.f32 %v235_v35, %v3398_v1  ;;  %v236_v61 = vmul.f32 %v235_v35, %v3395_v0  ;;  %v936_v57 = vmul.f32 %v935_v53, %v3544_v44  ;;  %v949_v58 = vstv %s3694_s10  ;;  %s2933_s10 = sld [smem:[#allocation2 + $0xb]] }
  0xdf   : > { %v3680_v12 = vadd.f32 %v481_v40, %v385_v2  ;;  %v3682_v13 = vadd.f32 %v480_v41, %v384_v3  ;;  %v923_v40 = vmul.f32 %v921_v46, %v3541_v42  ;;  %v499_v41 = vmul.f32 %v497_v26, %v3463_v50 }
  0xe0   : > { %v395_v19 = vpop.permute.xlu1 %394  ;;  %v393_v20 = vpop.permute.xlu0 %392  ;;  %v241_v2 = vstv %s3687_s8  ;;  %v504_v9 = vmul.f32 %v503_v47, %v3466_v52  ;;  %v328_v16 = vadd.f32 %v3580_v63, %v230_v32  ;;  %v342_v26 = vadd.f32 %v3600_v7, %v236_v61  ;;  %s2932_s8 = sld [smem:[#allocation2 + $0xc7]] }
  0xe1   : > { %v399_v21 = vadd.f32 %v395_v19, %v287_v10  ;;  %v398_v22 = vadd.f32 %v393_v20, %v286_v11  ;;  %v509_v10 = vstv %s3699_s11  ;;  %v329_v11 = vadd.f32 %v3578_v62, %v231_v31  ;;  %s2934_s11 = sld [smem:[#allocation2 + $0x26]] }
  0xe2   : > { %900 = vrot.lane.b32.xlu1 %v895_v33, %s3279_s27  ;;  %898 = vrot.lane.b32.xlu0 %v894_v38, %s3279_s27  ;;  %v243_v19 = vmul.f32 %v241_v2, %v3398_v1  ;;  %v242_v20 = vmul.f32 %v241_v2, %v3395_v0  ;;  %v963_v62 = vstv %s3715_s17  ;;  %v511_v63 = vmul.f32 %v509_v10, %v3463_v50  ;;  %s2935_s17 = sld [smem:[#allocation2 + $0x41]] }
  0xe3   : > { %v3703_v29 = vadd.f32 %v487_v5, %v399_v21  ;;  %v3705_v30 = vadd.f32 %v486_v8, %v398_v22  ;;  %v937_v5 = vmul.f32 %v935_v53, %v3541_v42  ;;  %v505_v8 = vmul.f32 %v503_v47, %v3463_v50 }
  0xe4   : > { %v409_v36 = vpop.permute.xlu1 %408  ;;  %v407_v34 = vpop.permute.xlu0 %406  ;;  %v510_v1 = vmul.f32 %v509_v10, %v3466_v52  ;;  %v343_v0 = vadd.f32 %v3598_v6, %v237_v60  ;;  %v964_v6 = vmul.f32 %v963_v62, %v3544_v44  ;;  %v3807_v10 = vld [vmem:[%s3392_s25 + $0x18] sm:$0xff] }
  0xe5   : > { %v413_v37 = vadd.f32 %v409_v36, %v301_v27  ;;  %v412_v39 = vadd.f32 %v407_v34, %v300_v28  ;;  %v965_v34 = vmul.f32 %v963_v62, %v3541_v42 }
  0xe6   : > { %914 = vrot.lane.b32.xlu1 %v909_v45, %s3280_s9  ;;  %912 = vrot.lane.b32.xlu0 %v908_v23, %s3280_s9  ;;  %v951_v23 = vmul.f32 %v949_v58, %v3541_v42 }
  0xe7   : > { %v3724_v56 = vadd.f32 %v493_v24, %v413_v37  ;;  %v3726_v59 = vadd.f32 %v492_v25, %v412_v39  ;;  %v950_v24 = vmul.f32 %v949_v58, %v3544_v44  ;;  %v515_v25 = vstv %s3720_s19  ;;  %s2936_s19 = sld [smem:[#allocation2 + $0x5c]] }
  0xe8   : > { %v423_v3 = vpop.permute.xlu1 %422  ;;  %v421_v33 = vpop.permute.xlu0 %420  ;;  %v977_v37 = vstv %s3736_s20  ;;  %v517_v7 = vmul.f32 %v515_v25, %v3463_v50  ;;  %v516_v39 = vmul.f32 %v515_v25, %v3466_v52  ;;  %s2937_s20 = sld [smem:[#allocation2 + $0x77]] }
  0xe9   : > { %v427_v38 = vadd.f32 %v423_v3, %v315_v48  ;;  %v426_v4 = vadd.f32 %v421_v33, %v314_v55  ;;  %v979_v50 = vmul.f32 %v977_v37, %v3541_v42  ;;  %v978_v52 = vmul.f32 %v977_v37, %v3544_v44 }
  0xea   : > { %928 = vrot.lane.b32.xlu1 %v923_v40, %s3280_s9  ;;  %926 = vrot.lane.b32.xlu0 %v922_v51, %s3280_s9  ;;  %v357_v40 = vadd.f32 %v3616_v14, %v243_v19  ;;  %v356_v51 = vadd.f32 %v3618_v15, %v242_v20  ;;  %v991_v14 = vstv %s3759_s24  ;;  %v1084_v20 = vstv %s2926_s29  ;;  %s2938_s24 = sld [smem:[#allocation2 + $0x92]]  ;;  %s2951_s29 = sld [smem:[#allocation2 + $0xd]] }
  0xeb   : > { %v3743_v17 = vadd.f32 %v499_v41, %v427_v38  ;;  %v3745_v18 = vadd.f32 %v498_v43, %v426_v4  ;;  %v993_v3 = vmul.f32 %v991_v14, %v3541_v42  ;;  %v992_v33 = vmul.f32 %v991_v14, %v3544_v44 }
  0xec   : > { %v437_v21 = vpop.permute.xlu1 %436  ;;  %v435_v22 = vpop.permute.xlu0 %434  ;;  %v1005_v38 = vstv %s2914_s26  ;;  %v1140_v37 = vstv %s2930_s6  ;;  %s2939_s26 = sld [smem:[#allocation2 + $0xad]]  ;;  %s2955_s6 = sld [smem:[#allocation2 + $0x79]] }
  0xed   : > { %v441_v45 = vadd.f32 %v437_v21, %v329_v11  ;;  %v440_v46 = vadd.f32 %v435_v22, %v328_v16  ;;  %v1006_v58 = vmul.f32 %v1005_v38, %v3544_v44 }
  0xee   : > { %942 = vrot.lane.b32.xlu1 %v937_v5, %s3280_s9  ;;  %940 = vrot.lane.b32.xlu0 %v936_v57, %s3280_s9  ;;  %v1007_v57 = vmul.f32 %v1005_v38, %v3541_v42 }
  0xef   : > { %v3761_v27 = vadd.f32 %v505_v8, %v441_v45  ;;  %v3763_v28 = vadd.f32 %v504_v9, %v440_v46  ;;  %v3804_v8 = vld [vmem:[%s3392_s25 + $0x20] sm:$0xff]  ;;  %v1070_v9 = vstv %s2925_s28  ;;  %v1085_v45 = vmul.f32 %v3807_v10, %v1084_v20  ;;  %s2940_s28 = sld [smem:[#allocation2 + $0xc8]] }
  0xf0   : > { %v451_v31 = vpop.permute.xlu1 %450  ;;  %v449_v32 = vpop.permute.xlu0 %448  ;;  %v1072_v19 = vmul.f32 %v3804_v8, %v1070_v9  ;;  %v1071_v42 = vmul.f32 %v3807_v10, %v1070_v9  ;;  %v1086_v22 = vmul.f32 %v3804_v8, %v1084_v20  ;;  %v1098_v46 = vstv %s2927_s30  ;;  %s2952_s30 = sld [smem:[#allocation2 + $0x28]] }
  0xf1   : > { %v455_v35 = vadd.f32 %v451_v31, %v343_v0  ;;  %v454_v36 = vadd.f32 %v449_v32, %v342_v26  ;;  %v1100_v62 = vmul.f32 %v3804_v8, %v1098_v46  ;;  %v1126_v32 = vstv %s2929_s5  ;;  %s2954_s5 = sld [smem:[#allocation2 + $0x5e]] }
  0xf2   : > { %956 = vrot.lane.b32.xlu1 %v951_v23, %s3280_s9  ;;  %954 = vrot.lane.b32.xlu0 %v950_v24, %s3280_s9  ;;  %v1196_v20 = vstv %s2934_s11  ;;  %s2959_s11 = sld [smem:[#allocation2 + $0xe]] }
  0xf3   : > { %v3774_v53 = vadd.f32 %v511_v63, %v455_v35  ;;  %v3776_v41 = vadd.f32 %v510_v1, %v454_v36  ;;  %v1099_v63 = vmul.f32 %v3807_v10, %v1098_v46  ;;  %v1112_v1 = vstv %s2928_s4  ;;  %s2953_s4 = sld [smem:[#allocation2 + $0x43]] }
  0xf4   : > { %v465_v43 = vpop.permute.xlu1 %464  ;;  %v463_v47 = vpop.permute.xlu0 %462  ;;  %v1114_v26 = vmul.f32 %v3804_v8, %v1112_v1  ;;  %v1113_v31 = vmul.f32 %v3807_v10, %v1112_v1  ;;  %v1198_v46 = vmul.f32 %v3804_v8, %v1196_v20 }
  0xf5   : > { %v469_v48 = vadd.f32 %v465_v43, %v357_v40  ;;  %v468_v55 = vadd.f32 %v463_v47, %v356_v51  ;;  %v1142_v40 = vmul.f32 %v3804_v8, %v1140_v37  ;;  %v1141_v51 = vmul.f32 %v3807_v10, %v1140_v37 }
  0xf6   : > { %970 = vrot.lane.b32.xlu1 %v965_v34, %s3280_s9  ;;  %968 = vrot.lane.b32.xlu0 %v964_v6, %s3280_s9  ;;  %v1128_v34 = vmul.f32 %v3804_v8, %v1126_v32  ;;  %v1127_v6 = vmul.f32 %v3807_v10, %v1126_v32  ;;  %v1154_v43 = vstv %s2931_s7  ;;  %s2956_s7 = sld [smem:[#allocation2 + $0x94]] }
  0xf7   : > { %v3783_v15 = vadd.f32 %v517_v7, %v469_v48  ;;  %v3785_v60 = vadd.f32 %v516_v39, %v468_v55  ;;  %v1156_v55 = vmul.f32 %v3804_v8, %v1154_v43 }
  0xf8   : > { %v3787_v61 = vpop.permute.xlu1 %528  ;;  %v3789_v2 = vpop.permute.xlu0 %526 }
  0xfa   : > { %984 = vrot.lane.b32.xlu1 %v979_v50, %s3280_s9  ;;  %982 = vrot.lane.b32.xlu0 %v978_v52, %s3280_s9  ;;  %v1155_v50 = vmul.f32 %v3807_v10, %v1154_v43  ;;  %v1168_v52 = vstv %s2932_s8  ;;  %v1238_v43 = vstv %s2937_s20  ;;  %s2957_s8 = sld [smem:[#allocation2 + $0xaf]] }
  0xfb   : > { %v1169_v38 = vmul.f32 %v3807_v10, %v1168_v52  ;;  %s2962_s20 = sld [smem:[#allocation2 + $0x5f]] }
  0xfc   : > { %v3795_v4 = vpop.permute.xlu1 %542  ;;  %v3797_v5 = vpop.permute.xlu0 %540 }
  0xfe   : > { %998 = vrot.lane.b32.xlu1 %v993_v3, %s3280_s9  ;;  %996 = vrot.lane.b32.xlu0 %v992_v33, %s3280_s9  ;;  %v1170_v33 = vmul.f32 %v3804_v8, %v1168_v52  ;;  %v1240_v52 = vmul.f32 %v3804_v8, %v1238_v43 }
 0x100   : > { %v3809_v11 = vpop.permute.xlu1 %556  ;;  %v3811_v16 = vpop.permute.xlu0 %554 }
 0x102   : > { %1012 = vrot.lane.b32.xlu1 %v1007_v57, %s3280_s9  ;;  %1010 = vrot.lane.b32.xlu0 %v1006_v58, %s3280_s9  ;;  %v1182_v57 = vstv %s2933_s10  ;;  %s2958_s10 = sld [smem:[#allocation2 + $0xca]] }
 0x104   : > { %v3817_v44 = vpop.permute.xlu1 %570  ;;  %v3819_v21 = vpop.permute.xlu0 %568 }
 0x106   : > { %1077 = vrot.lane.b32.xlu1 %v1072_v19, %s3279_s27  ;;  %1075 = vrot.lane.b32.xlu0 %v1071_v42, %s3279_s27  ;;  %v1184_v19 = vmul.f32 %v3804_v8, %v1182_v57  ;;  %v1183_v42 = vmul.f32 %v3807_v10, %v1182_v57 }
 0x108   : > { %v3825_v23 = vpop.permute.xlu1 %584  ;;  %v3827_v24 = vpop.permute.xlu0 %582 }
 0x10a   : > { %1091 = vrot.lane.b32.xlu1 %v1086_v22, %s3279_s27  ;;  %1089 = vrot.lane.b32.xlu0 %v1085_v45, %s3279_s27 }
 0x10c   : > { %v3833_v25 = vpop.permute.xlu1 %598  ;;  %v3835_v0 = vpop.permute.xlu0 %596 }
 0x10e   : > { %1105 = vrot.lane.b32.xlu1 %v1100_v62, %s3279_s27  ;;  %1103 = vrot.lane.b32.xlu0 %v1099_v63, %s3279_s27  ;;  %v1197_v62 = vmul.f32 %v3807_v10, %v1196_v20  ;;  %v1210_v63 = vstv %s2935_s17  ;;  %s2960_s17 = sld [smem:[#allocation2 + $0x29]] }
 0x10f   : > { %v1211_v32 = vmul.f32 %v3807_v10, %v1210_v63 }
 0x110   : > { %v3841_v35 = vpop.permute.xlu1 %612  ;;  %v3843_v36 = vpop.permute.xlu0 %610 }
 0x112   : > { %1119 = vrot.lane.b32.xlu1 %v1114_v26, %s3279_s27  ;;  %1117 = vrot.lane.b32.xlu0 %v1113_v31, %s3279_s27  ;;  %v1212_v31 = vmul.f32 %v3804_v8, %v1210_v63 }
 0x114   : > { %v3849_v7 = vpop.permute.xlu1 %626  ;;  %v3851_v39 = vpop.permute.xlu0 %624 }
 0x116   : > { %1133 = vrot.lane.b32.xlu1 %v1128_v34, %s3279_s27  ;;  %1131 = vrot.lane.b32.xlu0 %v1127_v6, %s3279_s27  ;;  %v1224_v34 = vstv %s2936_s19  ;;  %s2961_s19 = sld [smem:[#allocation2 + $0x44]] }
 0x118   : > { %v3857_v47 = vpop.permute.xlu1 %640  ;;  %v3859_v48 = vpop.permute.xlu0 %638 }
 0x11a   : > { %1147 = vrot.lane.b32.xlu1 %v1142_v40, %s3279_s27  ;;  %1145 = vrot.lane.b32.xlu0 %v1141_v51, %s3279_s27  ;;  %v1226_v40 = vmul.f32 %v3804_v8, %v1224_v34  ;;  %v1225_v51 = vmul.f32 %v3807_v10, %v1224_v34  ;;  %v1280_v34 = vstv %s2940_s28  ;;  %s2965_s28 = sld [smem:[#allocation2 + $0xb0]] }
 0x11c   : > { %v3865_v14 = vpop.permute.xlu1 %654  ;;  %v3867_v3 = vpop.permute.xlu0 %652 }
 0x11e   : > { %1161 = vrot.lane.b32.xlu1 %v1156_v55, %s3279_s27  ;;  %1159 = vrot.lane.b32.xlu0 %v1155_v50, %s3279_s27 }
 0x120   : > { %v3873_v58 = vpop.permute.xlu1 %668  ;;  %v3875_v9 = vpop.permute.xlu0 %666 }
 0x121   : > { %5776 = vst [vmem:[#allocation11_spill] sm:$0xff] %v3875_v9 }
 0x122   : > { %1175 = vrot.lane.b32.xlu1 %v1170_v33, %s3279_s27  ;;  %1173 = vrot.lane.b32.xlu0 %v1169_v38, %s3279_s27  ;;  %v1239_v33 = vmul.f32 %v3807_v10, %v1238_v43  ;;  %v1252_v38 = vstv %s2938_s24  ;;  %v1282_v43 = vmul.f32 %v3804_v8, %v1280_v34  ;;  %s2963_s24 = sld [smem:[#allocation2 + $0x7a]] }
 0x123   : > { %v1253_v20 = vmul.f32 %v3807_v10, %v1252_v38 }
 0x124   : > { %v3881_v22 = vpop.permute.xlu1 %682  ;;  %v3883_v45 = vpop.permute.xlu0 %680 }
 0x125   : > { %5777 = vst [vmem:[#allocation12_spill] sm:$0xff] %v3881_v22  ;;  %5778 = vst [vmem:[#allocation13_spill] sm:$0xff] %v3883_v45 }
 0x126   : > { %1189 = vrot.lane.b32.xlu1 %v1184_v19, %s3280_s9  ;;  %1187 = vrot.lane.b32.xlu0 %v1183_v42, %s3280_s9  ;;  %v1254_v42 = vmul.f32 %v3804_v8, %v1252_v38  ;;  %v1344_v38 = vstv %s2951_s29  ;;  %s2966_s29 = sld [smem:[#allocation2 + $0xcb]] }
 0x128   : > { %v3889_v1 = vpop.permute.xlu1 %696  ;;  %v3891_v26 = vpop.permute.xlu0 %694 }
 0x129   : > { %5779 = vst [vmem:[#allocation14_spill] sm:$0xff] %v3889_v1  ;;  %5780 = vst [vmem:[#allocation15_spill] sm:$0xff] %v3891_v26 }
 0x12a   : > { %1203 = vrot.lane.b32.xlu1 %v1198_v46, %s3280_s9  ;;  %1201 = vrot.lane.b32.xlu0 %v1197_v62, %s3280_s9  ;;  %v1266_v46 = vstv %s2939_s26  ;;  %s2964_s26 = sld [smem:[#allocation2 + $0x95]] }
 0x12c   : > { %v3897_v6 = vpop.permute.xlu1 %710  ;;  %v3899_v37 = vpop.permute.xlu0 %708 }
 0x12d   : > { %5781 = vst [vmem:[#allocation16_spill] sm:$0xff] %v3897_v6  ;;  %5782 = vst [vmem:[#allocation17_spill] sm:$0xff] %v3899_v37 }
 0x12e   : > { %1217 = vrot.lane.b32.xlu1 %v1212_v31, %s3280_s9  ;;  %1215 = vrot.lane.b32.xlu0 %v1211_v32, %s3280_s9  ;;  %v1268_v31 = vmul.f32 %v3804_v8, %v1266_v46  ;;  %v1267_v32 = vmul.f32 %v3807_v10, %v1266_v46 }
 0x130   : > { %v3905_v55 = vpop.permute.xlu1 %724  ;;  %v3907_v50 = vpop.permute.xlu0 %722 }
 0x131   : > { %5783 = vst [vmem:[#allocation18_spill] sm:$0xff] %v3905_v55  ;;  %5784 = vst [vmem:[#allocation19_spill] sm:$0xff] %v3907_v50  ;;  %v3164_v50 = vld [vmem:[%s3392_s25 + $0x2] sm:$0xff] }
 0x132   : > { %1231 = vrot.lane.b32.xlu1 %v1226_v40, %s3280_s9  ;;  %1229 = vrot.lane.b32.xlu0 %v1225_v51, %s3280_s9 }
 0x134   : > { %v3913_v57 = vpop.permute.xlu1 %738  ;;  %v3915_v19 = vpop.permute.xlu0 %736 }
 0x135   : > { %5785 = vst [vmem:[#allocation20_spill] sm:$0xff] %v3913_v57  ;;  %5786 = vst [vmem:[#allocation21_spill] sm:$0xff] %v3915_v19 }
 0x136   : > { %1245 = vrot.lane.b32.xlu1 %v1240_v52, %s3280_s9  ;;  %1243 = vrot.lane.b32.xlu0 %v1239_v33, %s3280_s9  ;;  %v1281_v52 = vmul.f32 %v3807_v10, %v1280_v34  ;;  %v3938_v33 = vld [vmem:[%s3392_s25 + $0x21] sm:$0xff] }
 0x138   : > { %v3921_v62 = vpop.permute.xlu1 %802  ;;  %v3923_v63 = vpop.permute.xlu0 %800 }
 0x139   : > { %5787 = vst [vmem:[#allocation22_spill] sm:$0xff] %v3921_v62  ;;  %5788 = vst [vmem:[#allocation23_spill] sm:$0xff] %v3923_v63 }
 0x13a   : > { %1259 = vrot.lane.b32.xlu1 %v1254_v42, %s3280_s9  ;;  %1257 = vrot.lane.b32.xlu0 %v1253_v20, %s3280_s9  ;;  %v3941_v42 = vld [vmem:[%s3392_s25 + $0x19] sm:$0xff] }
 0x13c   : > { %v3929_v40 = vpop.permute.xlu1 %816  ;;  %v3931_v51 = vpop.permute.xlu0 %814 }
 0x13d   : > { %5789 = vst [vmem:[#allocation24_spill] sm:$0xff] %v3929_v40  ;;  %5790 = vst [vmem:[#allocation25_spill] sm:$0xff] %v3931_v51  ;;  %v1358_v51 = vstv %s2952_s30  ;;  %s2977_s30 = sld [smem:[#allocation2 + $0x10]] }
 0x13e   : > { %1273 = vrot.lane.b32.xlu1 %v1268_v31, %s3280_s9  ;;  %1271 = vrot.lane.b32.xlu0 %v1267_v32, %s3280_s9  ;;  %v1346_v31 = vmul.f32 %v3938_v33, %v1344_v38  ;;  %v1345_v32 = vmul.f32 %v3941_v42, %v1344_v38 }
 0x140   : > { %v3943_v20 = vpop.permute.xlu1 %830  ;;  %v3945_v46 = vpop.permute.xlu0 %828 }
 0x141   : > { %5791 = vst [vmem:[#allocation26_spill] sm:$0xff] %v3943_v20  ;;  %5792 = vst [vmem:[#allocation27_spill] sm:$0xff] %v3945_v46  ;;  %v1360_v46 = vmul.f32 %v3938_v33, %v1358_v51  ;;  %v1372_v20 = vstv %s2953_s4  ;;  %s2978_s4 = sld [smem:[#allocation2 + $0x2b]] }
 0x142   : > { %1287 = vrot.lane.b32.xlu1 %v1282_v43, %s3280_s9  ;;  %1285 = vrot.lane.b32.xlu0 %v1281_v52, %s3280_s9  ;;  %v1359_v43 = vmul.f32 %v3941_v42, %v1358_v51  ;;  %v1374_v38 = vmul.f32 %v3938_v33, %v1372_v20 }
 0x144   : > { %v3951_v34 = vpop.permute.xlu1 %844  ;;  %v3953_v40 = vpop.permute.xlu0 %842 }
 0x145   : > { %5793 = vst [vmem:[#allocation28_spill] sm:$0xff] %v3951_v34  ;;  %5794 = vst [vmem:[#allocation29_spill] sm:$0xff] %v3953_v40  ;;  %v1386_v40 = vstv %s2954_s5  ;;  %s2979_s5 = sld [smem:[#allocation2 + $0x46]] }
 0x146   : > { %1351 = vrot.lane.b32.xlu1 %v1346_v31, %s3279_s27  ;;  %1349 = vrot.lane.b32.xlu0 %v1345_v32, %s3279_s27  ;;  %v1373_v31 = vmul.f32 %v3941_v42, %v1372_v20  ;;  %v1388_v51 = vmul.f32 %v3938_v33, %v1386_v40 }
 0x148   : > { %v3959_v52 = vpop.permute.xlu1 %858  ;;  %v3961_v63 = vpop.permute.xlu0 %856 }
 0x149   : > { %5795 = vst [vmem:[#allocation30_spill] sm:$0xff] %v3959_v52  ;;  %5796 = vst [vmem:[#allocation31_spill] sm:$0xff] %v3961_v63  ;;  %v1400_v63 = vstv %s2955_s6  ;;  %s2980_s6 = sld [smem:[#allocation2 + $0x61]] }
 0x14a   : > { %1365 = vrot.lane.b32.xlu1 %v1360_v46, %s3279_s27  ;;  %1363 = vrot.lane.b32.xlu0 %v1359_v43, %s3279_s27  ;;  %v1387_v46 = vmul.f32 %v3941_v42, %v1386_v40  ;;  %v1402_v20 = vmul.f32 %v3938_v33, %v1400_v63 }
 0x14c   : > { %v3967_v32 = vpop.permute.xlu1 %872  ;;  %v3969_v34 = vpop.permute.xlu0 %870 }
 0x14d   : > { %5797 = vst [vmem:[#allocation32_spill] sm:$0xff] %v3967_v32  ;;  %5798 = vst [vmem:[#allocation33_spill] sm:$0xff] %v3969_v34  ;;  %v1414_v34 = vstv %s2956_s7  ;;  %s2981_s7 = sld [smem:[#allocation2 + $0x7c]] }
 0x14e   : > { %1379 = vrot.lane.b32.xlu1 %v1374_v38, %s3279_s27  ;;  %1377 = vrot.lane.b32.xlu0 %v1373_v31, %s3279_s27  ;;  %v1401_v38 = vmul.f32 %v3941_v42, %v1400_v63  ;;  %v1416_v40 = vmul.f32 %v3938_v33, %v1414_v34 }
 0x150   : > { %v3975_v43 = vpop.permute.xlu1 %886  ;;  %v3977_v52 = vpop.permute.xlu0 %884 }
 0x151   : > { %5799 = vst [vmem:[#allocation34_spill] sm:$0xff] %v3975_v43  ;;  %5800 = vst [vmem:[#allocation35_spill] sm:$0xff] %v3977_v52  ;;  %v1428_v52 = vstv %s2957_s8  ;;  %s2982_s8 = sld [smem:[#allocation2 + $0x97]] }
 0x152   : > { %1393 = vrot.lane.b32.xlu1 %v1388_v51, %s3279_s27  ;;  %1391 = vrot.lane.b32.xlu0 %v1387_v46, %s3279_s27  ;;  %v1415_v51 = vmul.f32 %v3941_v42, %v1414_v34  ;;  %v1430_v63 = vmul.f32 %v3938_v33, %v1428_v52 }
 0x154   : > { %v3983_v31 = vpop.permute.xlu1 %900  ;;  %v3985_v32 = vpop.permute.xlu0 %898 }
 0x155   : > { %5801 = vst [vmem:[#allocation36_spill] sm:$0xff] %v3983_v31  ;;  %5802 = vst [vmem:[#allocation37_spill] sm:$0xff] %v3985_v32  ;;  %v1442_v32 = vstv %s2958_s10  ;;  %s2983_s10 = sld [smem:[#allocation2 + $0xb2]] }
 0x156   : > { %1407 = vrot.lane.b32.xlu1 %v1402_v20, %s3279_s27  ;;  %1405 = vrot.lane.b32.xlu0 %v1401_v38, %s3279_s27  ;;  %v1429_v20 = vmul.f32 %v3941_v42, %v1428_v52  ;;  %v1444_v34 = vmul.f32 %v3938_v33, %v1442_v32 }
 0x158   : > { %v3991_v46 = vpop.permute.xlu1 %914  ;;  %v3993_v43 = vpop.permute.xlu0 %912 }
 0x159   : > { %5803 = vst [vmem:[#allocation38_spill] sm:$0xff] %v3991_v46  ;;  %5804 = vst [vmem:[#allocation39_spill] sm:$0xff] %v3993_v43  ;;  %v1456_v43 = vstv %s2959_s11  ;;  %s2984_s11 = sld [smem:[#allocation2 + $0xcd]] }
 0x15a   : > { %1421 = vrot.lane.b32.xlu1 %v1416_v40, %s3279_s27  ;;  %1419 = vrot.lane.b32.xlu0 %v1415_v51, %s3279_s27  ;;  %v1443_v40 = vmul.f32 %v3941_v42, %v1442_v32  ;;  %v1458_v52 = vmul.f32 %v3938_v33, %v1456_v43 }
 0x15c   : > { %v3999_v38 = vpop.permute.xlu1 %928  ;;  %v4001_v31 = vpop.permute.xlu0 %926 }
 0x15d   : > { %5805 = vst [vmem:[#allocation40_spill] sm:$0xff] %v3999_v38  ;;  %5806 = vst [vmem:[#allocation41_spill] sm:$0xff] %v4001_v31  ;;  %v1470_v31 = vstv %s2960_s17  ;;  %s2985_s17 = sld [smem:[#allocation2 + $0x11]] }
 0x15e   : > { %1435 = vrot.lane.b32.xlu1 %v1430_v63, %s3279_s27  ;;  %1433 = vrot.lane.b32.xlu0 %v1429_v20, %s3279_s27  ;;  %v1457_v63 = vmul.f32 %v3941_v42, %v1456_v43  ;;  %v1472_v32 = vmul.f32 %v3938_v33, %v1470_v31 }
 0x160   : > { %v4007_v51 = vpop.permute.xlu1 %942  ;;  %v4009_v46 = vpop.permute.xlu0 %940 }
 0x161   : > { %5807 = vst [vmem:[#allocation42_spill] sm:$0xff] %v4007_v51  ;;  %5808 = vst [vmem:[#allocation43_spill] sm:$0xff] %v4009_v46  ;;  %v1484_v46 = vstv %s2961_s19  ;;  %s2986_s19 = sld [smem:[#allocation2 + $0x2c]] }
 0x162   : > { %1449 = vrot.lane.b32.xlu1 %v1444_v34, %s3279_s27  ;;  %1447 = vrot.lane.b32.xlu0 %v1443_v40, %s3279_s27  ;;  %v1471_v34 = vmul.f32 %v3941_v42, %v1470_v31  ;;  %v1486_v43 = vmul.f32 %v3938_v33, %v1484_v46 }
 0x164   : > { %v4015_v20 = vpop.permute.xlu1 %956  ;;  %v4017_v38 = vpop.permute.xlu0 %954 }
 0x165   : > { %5809 = vst [vmem:[#allocation44_spill] sm:$0xff] %v4015_v20  ;;  %5810 = vst [vmem:[#allocation45_spill] sm:$0xff] %v4017_v38  ;;  %v1498_v38 = vstv %s2962_s20  ;;  %s2987_s20 = sld [smem:[#allocation2 + $0x47]] }
 0x166   : > { %1463 = vrot.lane.b32.xlu1 %v1458_v52, %s3280_s9  ;;  %1461 = vrot.lane.b32.xlu0 %v1457_v63, %s3280_s9  ;;  %v1485_v52 = vmul.f32 %v3941_v42, %v1484_v46  ;;  %v1500_v31 = vmul.f32 %v3938_v33, %v1498_v38 }
 0x168   : > { %v4023_v40 = vpop.permute.xlu1 %970  ;;  %v4025_v51 = vpop.permute.xlu0 %968 }
 0x169   : > { %5811 = vst [vmem:[#allocation46_spill] sm:$0xff] %v4023_v40  ;;  %5812 = vst [vmem:[#allocation47_spill] sm:$0xff] %v4025_v51  ;;  %v1512_v51 = vstv %s2963_s24  ;;  %s2988_s24 = sld [smem:[#allocation2 + $0x62]] }
 0x16a   : > { %1477 = vrot.lane.b32.xlu1 %v1472_v32, %s3280_s9  ;;  %1475 = vrot.lane.b32.xlu0 %v1471_v34, %s3280_s9  ;;  %v1499_v32 = vmul.f32 %v3941_v42, %v1498_v38  ;;  %v1514_v46 = vmul.f32 %v3938_v33, %v1512_v51 }
 0x16c   : > { %v4031_v63 = vpop.permute.xlu1 %984  ;;  %v4033_v20 = vpop.permute.xlu0 %982 }
 0x16d   : > { %5813 = vst [vmem:[#allocation48_spill] sm:$0xff] %v4031_v63  ;;  %5814 = vst [vmem:[#allocation49_spill] sm:$0xff] %v4033_v20  ;;  %v1526_v20 = vstv %s2964_s26  ;;  %s2989_s26 = sld [smem:[#allocation2 + $0x7d]] }
 0x16e   : > { %1491 = vrot.lane.b32.xlu1 %v1486_v43, %s3280_s9  ;;  %1489 = vrot.lane.b32.xlu0 %v1485_v52, %s3280_s9  ;;  %v1513_v43 = vmul.f32 %v3941_v42, %v1512_v51  ;;  %v1528_v38 = vmul.f32 %v3938_v33, %v1526_v20 }
 0x170   : > { %v4039_v34 = vpop.permute.xlu1 %998  ;;  %v4041_v40 = vpop.permute.xlu0 %996 }
 0x171   : > { %5815 = vst [vmem:[#allocation50_spill] sm:$0xff] %v4039_v34  ;;  %5816 = vst [vmem:[#allocation51_spill] sm:$0xff] %v4041_v40  ;;  %v1540_v40 = vstv %s2965_s28  ;;  %v4075_v34 = vld [vmem:[%s3392_s25 + $0x1a] sm:$0xff]  ;;  %s2990_s28 = sld [smem:[#allocation2 + $0x98]] }
 0x172   : > { %1505 = vrot.lane.b32.xlu1 %v1500_v31, %s3280_s9  ;;  %1503 = vrot.lane.b32.xlu0 %v1499_v32, %s3280_s9  ;;  %v1527_v31 = vmul.f32 %v3941_v42, %v1526_v20  ;;  %5824 = vst [vmem:[#allocation59_spill] sm:$0xff] %v4075_v34 }
 0x174   : > { %v4047_v52 = vpop.permute.xlu1 %1012  ;;  %v4049_v63 = vpop.permute.xlu0 %1010 }
 0x175   : > { %5817 = vst [vmem:[#allocation52_spill] sm:$0xff] %v4047_v52  ;;  %5818 = vst [vmem:[#allocation53_spill] sm:$0xff] %v4049_v63  ;;  %v1554_v63 = vstv %s2966_s29  ;;  %s2991_s29 = sld [smem:[#allocation2 + $0xb3]] }
 0x176   : > { %1519 = vrot.lane.b32.xlu1 %v1514_v46, %s3280_s9  ;;  %1517 = vrot.lane.b32.xlu0 %v1513_v43, %s3280_s9  ;;  %v1542_v46 = vmul.f32 %v3938_v33, %v1540_v40  ;;  %v1541_v43 = vmul.f32 %v3941_v42, %v1540_v40 }
 0x178   : > { %v4055_v32 = vpop.permute.xlu1 %1077  ;;  %v4057_v51 = vpop.permute.xlu0 %1075 }
 0x179   : > { %5819 = vst [vmem:[#allocation54_spill] sm:$0xff] %v4055_v32  ;;  %5820 = vst [vmem:[#allocation55_spill] sm:$0xff] %v4057_v51  ;;  %v1556_v51 = vmul.f32 %v3938_v33, %v1554_v63  ;;  %v4072_v32 = vld [vmem:[%s3392_s25 + $0x22] sm:$0xff] }
 0x17a   : > { %1533 = vrot.lane.b32.xlu1 %v1528_v38, %s3280_s9  ;;  %1531 = vrot.lane.b32.xlu0 %v1527_v31, %s3280_s9  ;;  %v1555_v38 = vmul.f32 %v3941_v42, %v1554_v63  ;;  %5823 = vst [vmem:[#allocation58_spill] sm:$0xff] %v4072_v32  ;;  %v1618_v31 = vstv %s2977_s30  ;;  %s2992_s30 = sld [smem:[#allocation2 + $0xce]] }
 0x17c   : > { %v4063_v52 = vpop.permute.xlu1 %1091  ;;  %v4065_v20 = vpop.permute.xlu0 %1089 }
 0x17d   : > { %5821 = vst [vmem:[#allocation56_spill] sm:$0xff] %v4063_v52  ;;  %5822 = vst [vmem:[#allocation57_spill] sm:$0xff] %v4065_v20  ;;  %v1632_v20 = vstv %s2978_s4  ;;  %s3003_s4 = sld [smem:[#allocation2 + $0x13]] }
 0x17e   : > { %1547 = vrot.lane.b32.xlu1 %v1542_v46, %s3280_s9  ;;  %1545 = vrot.lane.b32.xlu0 %v1541_v43, %s3280_s9  ;;  %v1620_v46 = vmul.f32 %v4072_v32, %v1618_v31  ;;  %v1619_v43 = vmul.f32 %v4075_v34, %v1618_v31 }
 0x180   : > { %v4077_v40 = vpop.permute.xlu1 %1105  ;;  %v4079_v62 = vpop.permute.xlu0 %1103 }
 0x181   : > { %5825 = vst [vmem:[#allocation60_spill] sm:$0xff] %v4077_v40  ;;  %5826 = vst [vmem:[#allocation61_spill] sm:$0xff] %v4079_v62  ;;  %v1634_v62 = vmul.f32 %v4072_v32, %v1632_v20  ;;  %v1646_v40 = vstv %s2979_s5  ;;  %s3004_s5 = sld [smem:[#allocation2 + $0x2e]] }
 0x182   : > { %1561 = vrot.lane.b32.xlu1 %v1556_v51, %s3280_s9  ;;  %1559 = vrot.lane.b32.xlu0 %v1555_v38, %s3280_s9  ;;  %v1633_v51 = vmul.f32 %v4075_v34, %v1632_v20  ;;  %v1648_v31 = vmul.f32 %v4072_v32, %v1646_v40 }
 0x184   : > { %v4085_v63 = vpop.permute.xlu1 %1119  ;;  %v4087_v52 = vpop.permute.xlu0 %1117 }
 0x185   : > { %5827 = vst [vmem:[#allocation62_spill] sm:$0xff] %v4085_v63  ;;  %5828 = vst [vmem:[#allocation63_spill] sm:$0xff] %v4087_v52  ;;  %v1660_v52 = vstv %s2980_s6  ;;  %s3005_s6 = sld [smem:[#allocation2 + $0x49]] }
 0x186   : > { %1625 = vrot.lane.b32.xlu1 %v1620_v46, %s3279_s27  ;;  %1623 = vrot.lane.b32.xlu0 %v1619_v43, %s3279_s27  ;;  %v1647_v46 = vmul.f32 %v4075_v34, %v1646_v40  ;;  %v1662_v20 = vmul.f32 %v4072_v32, %v1660_v52 }
 0x188   : > { %v4093_v38 = vpop.permute.xlu1 %1133  ;;  %v4095_v19 = vpop.permute.xlu0 %1131 }
 0x189   : > { %5829 = vst [vmem:[#allocation64_spill] sm:$0xff] %v4093_v38  ;;  %5830 = vst [vmem:[#allocation65_spill] sm:$0xff] %v4095_v19  ;;  %v1674_v19 = vstv %s2981_s7  ;;  %s3006_s7 = sld [smem:[#allocation2 + $0x64]] }
 0x18a   : > { %1639 = vrot.lane.b32.xlu1 %v1634_v62, %s3279_s27  ;;  %1637 = vrot.lane.b32.xlu0 %v1633_v51, %s3279_s27  ;;  %v1661_v62 = vmul.f32 %v4075_v34, %v1660_v52  ;;  %v1676_v40 = vmul.f32 %v4072_v32, %v1674_v19 }
 0x18c   : > { %v4101_v43 = vpop.permute.xlu1 %1147  ;;  %v4103_v63 = vpop.permute.xlu0 %1145 }
 0x18d   : > { %5831 = vst [vmem:[#allocation66_spill] sm:$0xff] %v4101_v43  ;;  %5832 = vst [vmem:[#allocation67_spill] sm:$0xff] %v4103_v63  ;;  %v1688_v63 = vstv %s2982_s8  ;;  %s3007_s8 = sld [smem:[#allocation2 + $0x7f]] }
 0x18e   : > { %1653 = vrot.lane.b32.xlu1 %v1648_v31, %s3279_s27  ;;  %1651 = vrot.lane.b32.xlu0 %v1647_v46, %s3279_s27  ;;  %v1675_v31 = vmul.f32 %v4075_v34, %v1674_v19  ;;  %v1690_v52 = vmul.f32 %v4072_v32, %v1688_v63 }
 0x190   : > { %v4109_v51 = vpop.permute.xlu1 %1161  ;;  %v4111_v38 = vpop.permute.xlu0 %1159 }
 0x191   : > { %5833 = vst [vmem:[#allocation68_spill] sm:$0xff] %v4109_v51  ;;  %5834 = vst [vmem:[#allocation69_spill] sm:$0xff] %v4111_v38  ;;  %v1702_v38 = vstv %s2983_s10  ;;  %s4235_s10 = sld [smem:[#allocation2 + $0x9a]] }
 0x192   : > { %1667 = vrot.lane.b32.xlu1 %v1662_v20, %s3279_s27  ;;  %1665 = vrot.lane.b32.xlu0 %v1661_v62, %s3279_s27  ;;  %v1689_v20 = vmul.f32 %v4075_v34, %v1688_v63  ;;  %v1704_v19 = vmul.f32 %v4072_v32, %v1702_v38 }
 0x194   : > { %v4117_v46 = vpop.permute.xlu1 %1175  ;;  %v4119_v43 = vpop.permute.xlu0 %1173 }
 0x195   : > { %5835 = vst [vmem:[#allocation70_spill] sm:$0xff] %v4117_v46  ;;  %5836 = vst [vmem:[#allocation71_spill] sm:$0xff] %v4119_v43  ;;  %v1716_v43 = vstv %s2984_s11  ;;  %s4237_s11 = sld [smem:[#allocation2 + $0x6]] }
 0x196   : > { %1681 = vrot.lane.b32.xlu1 %v1676_v40, %s3279_s27  ;;  %1679 = vrot.lane.b32.xlu0 %v1675_v31, %s3279_s27  ;;  %v1703_v40 = vmul.f32 %v4075_v34, %v1702_v38  ;;  %v1718_v63 = vmul.f32 %v4072_v32, %v1716_v43 }
 0x198   : > { %v4125_v62 = vpop.permute.xlu1 %1189  ;;  %v4127_v51 = vpop.permute.xlu0 %1187 }
 0x199   : > { %5837 = vst [vmem:[#allocation72_spill] sm:$0xff] %v4125_v62  ;;  %5838 = vst [vmem:[#allocation73_spill] sm:$0xff] %v4127_v51  ;;  %v1730_v51 = vstv %s2985_s17  ;;  %s4243_s17 = sld [smem:[#allocation2 + $0x21]] }
 0x19a   : > { %1695 = vrot.lane.b32.xlu1 %v1690_v52, %s3279_s27  ;;  %1693 = vrot.lane.b32.xlu0 %v1689_v20, %s3279_s27  ;;  %v1717_v52 = vmul.f32 %v4075_v34, %v1716_v43  ;;  %v1732_v38 = vmul.f32 %v4072_v32, %v1730_v51 }
 0x19c   : > { %v4133_v31 = vpop.permute.xlu1 %1203  ;;  %v4135_v46 = vpop.permute.xlu0 %1201 }
 0x19d   : > { %5839 = vst [vmem:[#allocation74_spill] sm:$0xff] %v4133_v31  ;;  %5840 = vst [vmem:[#allocation75_spill] sm:$0xff] %v4135_v46  ;;  %v1744_v46 = vstv %s2986_s19  ;;  %s4245_s19 = sld [smem:[#allocation2 + $0x3c]] }
 0x19e   : > { %1709 = vrot.lane.b32.xlu1 %v1704_v19, %s3279_s27  ;;  %1707 = vrot.lane.b32.xlu0 %v1703_v40, %s3279_s27  ;;  %v1731_v19 = vmul.f32 %v4075_v34, %v1730_v51  ;;  %v1746_v43 = vmul.f32 %v4072_v32, %v1744_v46 }
 0x1a0   : > { %v4141_v20 = vpop.permute.xlu1 %1217  ;;  %v4143_v62 = vpop.permute.xlu0 %1215 }
 0x1a1   : > { %5841 = vst [vmem:[#allocation76_spill] sm:$0xff] %v4141_v20  ;;  %5842 = vst [vmem:[#allocation77_spill] sm:$0xff] %v4143_v62  ;;  %v1758_v62 = vstv %s2987_s20  ;;  %s4247_s20 = sld [smem:[#allocation2 + $0x57]] }
 0x1a2   : > { %1723 = vrot.lane.b32.xlu1 %v1718_v63, %s3279_s27  ;;  %1721 = vrot.lane.b32.xlu0 %v1717_v52, %s3279_s27  ;;  %v1745_v63 = vmul.f32 %v4075_v34, %v1744_v46  ;;  %v1760_v51 = vmul.f32 %v4072_v32, %v1758_v62 }
 0x1a4   : > { %v4149_v40 = vpop.permute.xlu1 %1231  ;;  %v4151_v31 = vpop.permute.xlu0 %1229 }
 0x1a5   : > { %5843 = vst [vmem:[#allocation78_spill] sm:$0xff] %v4149_v40  ;;  %5844 = vst [vmem:[#allocation79_spill] sm:$0xff] %v4151_v31  ;;  %v1772_v31 = vstv %s2988_s24  ;;  %s4253_s24 = sld [smem:[#allocation2 + $0xb5]] }
 0x1a6   : > { %1737 = vrot.lane.b32.xlu1 %v1732_v38, %s3280_s9  ;;  %1735 = vrot.lane.b32.xlu0 %v1731_v19, %s3280_s9  ;;  %v1759_v38 = vmul.f32 %v4075_v34, %v1758_v62  ;;  %v1774_v46 = vmul.f32 %v4072_v32, %v1772_v31 }
 0x1a8   : > { %v4157_v52 = vpop.permute.xlu1 %1245  ;;  %v4159_v20 = vpop.permute.xlu0 %1243 }
 0x1a9   : > { %5845 = vst [vmem:[#allocation80_spill] sm:$0xff] %v4157_v52  ;;  %5846 = vst [vmem:[#allocation81_spill] sm:$0xff] %v4159_v20  ;;  %v1786_v20 = vstv %s2989_s26  ;;  %s4255_s26 = sld [smem:[#allocation2 + $0x72]] }
 0x1aa   : > { %1751 = vrot.lane.b32.xlu1 %v1746_v43, %s3280_s9  ;;  %1749 = vrot.lane.b32.xlu0 %v1745_v63, %s3280_s9  ;;  %v1773_v43 = vmul.f32 %v4075_v34, %v1772_v31  ;;  %v1788_v62 = vmul.f32 %v4072_v32, %v1786_v20 }
 0x1ac   : > { %v4165_v19 = vpop.permute.xlu1 %1259  ;;  %v4167_v40 = vpop.permute.xlu0 %1257 }
 0x1ad   : > { %5847 = vst [vmem:[#allocation82_spill] sm:$0xff] %v4165_v19  ;;  %5848 = vst [vmem:[#allocation83_spill] sm:$0xff] %v4167_v40  ;;  %v1800_v40 = vstv %s2990_s28  ;;  %s4261_s28 = sld [smem:[#allocation2 + $0x8d]] }
 0x1ae   : > { %1765 = vrot.lane.b32.xlu1 %v1760_v51, %s3280_s9  ;;  %1763 = vrot.lane.b32.xlu0 %v1759_v38, %s3280_s9  ;;  %v1787_v51 = vmul.f32 %v4075_v34, %v1786_v20  ;;  %v1802_v31 = vmul.f32 %v4072_v32, %v1800_v40 }
 0x1b0   : > { %v4173_v63 = vpop.permute.xlu1 %1273  ;;  %v4175_v52 = vpop.permute.xlu0 %1271 }
 0x1b1   : > { %5849 = vst [vmem:[#allocation84_spill] sm:$0xff] %v4173_v63  ;;  %5850 = vst [vmem:[#allocation85_spill] sm:$0xff] %v4175_v52  ;;  %v1814_v52 = vstv %s2991_s29  ;;  %v1828_v63 = vstv %s2992_s30  ;;  %s4263_s29 = sld [smem:[#allocation2 + $0xa8]]  ;;  %s4265_s30 = sld [smem:[#allocation2 + $0xc3]] }
 0x1b2   : > { %1779 = vrot.lane.b32.xlu1 %v1774_v46, %s3280_s9  ;;  %1777 = vrot.lane.b32.xlu0 %v1773_v43, %s3280_s9  ;;  %v1801_v46 = vmul.f32 %v4075_v34, %v1800_v40 }
 0x1b3   : > { %v777_v45 = vstv %s4261_s28  ;;  %s4398_s28 = sld [smem:[#allocation2 + $0xc]] }
 0x1b4   : > { %v4181_v38 = vpop.permute.xlu1 %1287  ;;  %v4183_v19 = vpop.permute.xlu0 %1285 }
 0x1b5   : > { %5851 = vst [vmem:[#allocation86_spill] sm:$0xff] %v4181_v38  ;;  %5852 = vst [vmem:[#allocation87_spill] sm:$0xff] %v4183_v19  ;;  %v4209_v38 = vld [vmem:[%s3392_s25 + $0x30] sm:$0xff] }
 0x1b6   : > { %1793 = vrot.lane.b32.xlu1 %v1788_v62, %s3280_s9  ;;  %1791 = vrot.lane.b32.xlu0 %v1787_v51, %s3280_s9  ;;  %v1816_v62 = vmul.f32 %v4072_v32, %v1814_v52  ;;  %v1815_v51 = vmul.f32 %v4075_v34, %v1814_v52 }
 0x1b8   : > { %v4189_v43 = vpop.permute.xlu1 %1351  ;;  %v4191_v20 = vpop.permute.xlu0 %1349 }
 0x1b9   : > { %5853 = vst [vmem:[#allocation88_spill] sm:$0xff] %v4189_v43  ;;  %5854 = vst [vmem:[#allocation89_spill] sm:$0xff] %v4191_v20  ;;  %v1830_v20 = vmul.f32 %v4072_v32, %v1828_v63  ;;  %v4206_v43 = vld [vmem:[%s3392_s25 + $0x38] sm:$0xff]  ;;  %v3163_v32 = vld [vmem:[%s3392_s25 + $0xa] sm:$0xff] }
 0x1ba   : > { %1807 = vrot.lane.b32.xlu1 %v1802_v31, %s3280_s9  ;;  %1805 = vrot.lane.b32.xlu0 %v1801_v46, %s3280_s9  ;;  %v1829_v31 = vmul.f32 %v4075_v34, %v1828_v63  ;;  %v1893_v46 = vstv %s3003_s4  ;;  %s4272_s4 = sld [smem:[#allocation2 + $0xd0]]  ;;  %v4342_v22 = vmul.f32 %v3163_v32, %v777_v45 }
 0x1bc   : > { %v4197_v19 = vpop.permute.xlu1 %1365  ;;  %v4199_v40 = vpop.permute.xlu0 %1363 }
 0x1bd   : > { %5855 = vst [vmem:[#allocation90_spill] sm:$0xff] %v4197_v19  ;;  %5856 = vst [vmem:[#allocation91_spill] sm:$0xff] %v4199_v40  ;;  %v1907_v40 = vstv %s3004_s5  ;;  %s4275_s5 = sld [smem:[#allocation2 + $0x9]] }
 0x1be   : > { %1821 = vrot.lane.b32.xlu1 %v1816_v62, %s3280_s9  ;;  %1819 = vrot.lane.b32.xlu0 %v1815_v51, %s3280_s9  ;;  %v1895_v62 = vmul.f32 %v4206_v43, %v1893_v46  ;;  %v1894_v51 = vmul.f32 %v4209_v38, %v1893_v46 }
 0x1c0   : > { %v4211_v52 = vpop.permute.xlu1 %1379  ;;  %v4213_v57 = vpop.permute.xlu0 %1377 }
 0x1c1   : > { %5857 = vst [vmem:[#allocation92_spill] sm:$0xff] %v4211_v52  ;;  %5858 = vst [vmem:[#allocation93_spill] sm:$0xff] %v4213_v57  ;;  %v1909_v57 = vmul.f32 %v4206_v43, %v1907_v40  ;;  %v1921_v52 = vstv %s3005_s6  ;;  %s4277_s6 = sld [smem:[#allocation2 + $0x24]] }
 0x1c2   : > { %1835 = vrot.lane.b32.xlu1 %v1830_v20, %s3280_s9  ;;  %1833 = vrot.lane.b32.xlu0 %v1829_v31, %s3280_s9  ;;  %v1908_v20 = vmul.f32 %v4209_v38, %v1907_v40  ;;  %v1923_v46 = vmul.f32 %v4206_v43, %v1921_v52 }
 0x1c4   : > { %v4219_v63 = vpop.permute.xlu1 %1393  ;;  %v4221_v19 = vpop.permute.xlu0 %1391 }
 0x1c5   : > { %5859 = vst [vmem:[#allocation94_spill] sm:$0xff] %v4219_v63  ;;  %5860 = vst [vmem:[#allocation95_spill] sm:$0xff] %v4221_v19  ;;  %v1935_v19 = vstv %s3006_s7  ;;  %s4284_s7 = sld [smem:[#allocation2 + $0x3f]] }
 0x1c6   : > { %1900 = vrot.lane.b32.xlu1 %v1895_v62, %s3279_s27  ;;  %1898 = vrot.lane.b32.xlu0 %v1894_v51, %s3279_s27  ;;  %v1922_v62 = vmul.f32 %v4209_v38, %v1921_v52  ;;  %v1936_v52 = vmul.f32 %v4209_v38, %v1935_v19 }
 0x1c8   : > { %v4227_v31 = vpop.permute.xlu1 %1407  ;;  %v4229_v34 = vpop.permute.xlu0 %1405 }
 0x1c9   : > { %5861 = vst [vmem:[#allocation96_spill] sm:$0xff] %v4227_v31  ;;  %5862 = vst [vmem:[#allocation97_spill] sm:$0xff] %v4229_v34  ;;  %v765_v34 = vstv %s4247_s20  ;;  %s4325_s20 = sld [smem:[#allocation2 + $0xc6]] }
 0x1ca   : > { %1914 = vrot.lane.b32.xlu1 %v1909_v57, %s3279_s27  ;;  %1912 = vrot.lane.b32.xlu0 %v1908_v20, %s3279_s27  ;;  %v1937_v57 = vmul.f32 %v4206_v43, %v1935_v19  ;;  %v1949_v20 = vstv %s3007_s8  ;;  %s4288_s8 = sld [smem:[#allocation2 + $0x5a]] }
 0x1cb   : > { %v1951_v19 = vmul.f32 %v4206_v43, %v1949_v20 }
 0x1cc   : > { %v4239_v40 = vpop.permute.xlu1 %1421  ;;  %v4241_v51 = vpop.permute.xlu0 %1419 }
 0x1cd   : > { %5863 = vst [vmem:[#allocation98_spill] sm:$0xff] %v4239_v40  ;;  %5864 = vst [vmem:[#allocation99_spill] sm:$0xff] %v4241_v51 }
 0x1ce   : > { %1928 = vrot.lane.b32.xlu1 %v1923_v46, %s3279_s27  ;;  %1926 = vrot.lane.b32.xlu0 %v1922_v62, %s3279_s27  ;;  %v1950_v46 = vmul.f32 %v4209_v38, %v1949_v20  ;;  %v1963_v62 = vstv %s4235_s10  ;;  %v759_v20 = vstv %s4245_s19  ;;  %s4298_s10 = sld [smem:[#allocation2 + $0x14]]  ;;  %s4323_s19 = sld [smem:[#allocation2 + $0xab]] }
 0x1cf   : > { %v1965_v31 = vmul.f32 %v4206_v43, %v1963_v62  ;;  %v1964_v63 = vmul.f32 %v4209_v38, %v1963_v62  ;;  %v4316_v26 = vmul.f32 %v3163_v32, %v759_v20  ;;  %v4318_v1 = vmul.f32 %v3164_v50, %v759_v20 }
 0x1d0   : > { %v4257_v51 = vpop.permute.xlu1 %1435  ;;  %v4259_v40 = vpop.permute.xlu0 %1433 }
 0x1d1   : > { %5865 = vst [vmem:[#allocation100_spill] sm:$0xff] %v4257_v51  ;;  %5866 = vst [vmem:[#allocation101_spill] sm:$0xff] %v4259_v40  ;;  %v747_v40 = vstv %s4237_s11  ;;  %s4308_s11 = sld [smem:[#allocation2 + $0x75]] }
 0x1d2   : > { %1942 = vrot.lane.b32.xlu1 %v1937_v57, %s3279_s27  ;;  %1940 = vrot.lane.b32.xlu0 %v1936_v52, %s3279_s27  ;;  %v753_v52 = vstv %s4243_s17  ;;  %v4301_v55 = vmul.f32 %v3164_v50, %v747_v40  ;;  %s4310_s17 = sld [smem:[#allocation2 + $0x90]]  ;;  %5873 = vst [vmem:[#allocation108_spill] sm:$0xff] %v4316_v26  ;;  %5874 = vst [vmem:[#allocation109_spill] sm:$0xff] %v4318_v1  ;;  %v1991_v26 = vstv %s4272_s4  ;;  %s4440_s4 = sld [smem:[#allocation2 + $0x42]] }
 0x1d3   : > { %v4303_v37 = vmul.f32 %v3163_v32, %v753_v52 }
 0x1d4   : > { %v4279_v51 = vpop.permute.xlu1 %1449  ;;  %v4281_v57 = vpop.permute.xlu0 %1447 }
 0x1d5   : > { %5867 = vst [vmem:[#allocation102_spill] sm:$0xff] %v4279_v51  ;;  %5868 = vst [vmem:[#allocation103_spill] sm:$0xff] %v4281_v57  ;;  %v4295_v51 = vmul.f32 %v3163_v32, %v747_v40  ;;  %v1977_v57 = vstv %s4253_s24  ;;  %v4320_v40 = vmul.f32 %v3163_v32, %v765_v34  ;;  %s4340_s24 = sld [smem:[#allocation2 + $0x2f]] }
 0x1d6   : > { %1956 = vrot.lane.b32.xlu1 %v1951_v19, %s3279_s27  ;;  %1954 = vrot.lane.b32.xlu0 %v1950_v46, %s3279_s27  ;;  %5869 = vst [vmem:[#allocation104_spill] sm:$0xff] %v4303_v37  ;;  %v4305_v19 = vmul.f32 %v3164_v50, %v753_v52  ;;  %v771_v46 = vstv %s4255_s26  ;;  %v783_v52 = vstv %s4263_s29  ;;  %v1978_v20 = vmul.f32 %v4209_v38, %v1977_v57  ;;  %s4376_s26 = sld [smem:[#allocation2 + $0x4a]]  ;;  %s4413_s29 = sld [smem:[#allocation2 + $0x27]] }
 0x1d7   : > { %5875 = vst [vmem:[#allocation110_spill] sm:$0xff] %v4320_v40  ;;  %v4335_v40 = vmul.f32 %v3163_v32, %v771_v46  ;;  %v4337_v1 = vmul.f32 %v3164_v50, %v771_v46  ;;  %v1028_v37 = vstv %s4277_s6  ;;  %s4465_s6 = sld [smem:[#allocation2 + $0x5d]] }
 0x1d8   : > { %5870 = vst [vmem:[#allocation105_spill] sm:$0xff] %v4305_v19  ;;  %v4312_v62 = vpop.permute.xlu1 %1463  ;;  %v4314_v6 = vpop.permute.xlu0 %1461  ;;  %v789_v19 = vstv %s4265_s30  ;;  %s4416_s30 = sld [smem:[#allocation2 + $0x65]] }
 0x1d9   : > { %5871 = vst [vmem:[#allocation106_spill] sm:$0xff] %v4312_v62  ;;  %5872 = vst [vmem:[#allocation107_spill] sm:$0xff] %v4314_v6  ;;  %v1979_v6 = vmul.f32 %v4206_v43, %v1977_v57  ;;  %v4333_v62 = vmul.f32 %v3164_v50, %v765_v34  ;;  %v4352_v34 = vmul.f32 %v3163_v32, %v783_v52 }
 0x1da   : > { %1970 = vrot.lane.b32.xlu1 %v1965_v31, %s3279_s27  ;;  %1968 = vrot.lane.b32.xlu0 %v1964_v63, %s3279_s27  ;;  %5877 = vst [vmem:[#allocation112_spill] sm:$0xff] %v4335_v40  ;;  %5878 = vst [vmem:[#allocation113_spill] sm:$0xff] %v4337_v1  ;;  %v4344_v31 = vmul.f32 %v3164_v50, %v777_v45  ;;  %v1022_v63 = vstv %s4275_s5  ;;  %v4356_v46 = vmul.f32 %v3163_v32, %v789_v19  ;;  %s4453_s5 = sld [smem:[#allocation2 + $0x80]] }
 0x1db   : > { %5876 = vst [vmem:[#allocation111_spill] sm:$0xff] %v4333_v62  ;;  %5881 = vst [vmem:[#allocation116_spill] sm:$0xff] %v4352_v34  ;;  %v4354_v62 = vmul.f32 %v3164_v50, %v783_v52  ;;  %v1034_v1 = vstv %s4284_s7  ;;  %v4359_v40 = vmul.f32 %v3164_v50, %v789_v19  ;;  %v1040_v45 = vstv %s4288_s8  ;;  %s4478_s7 = sld [smem:[#allocation2 + $0x78]]  ;;  %s4495_s8 = sld [smem:[#allocation2 + $0x9b]] }
 0x1dc   : > { %v4348_v9 = vpop.permute.xlu1 %1477  ;;  %v4350_v57 = vpop.permute.xlu0 %1475  ;;  %5883 = vst [vmem:[#allocation118_spill] sm:$0xff] %v4356_v46  ;;  %v4367_v52 = vmul.f32 %v3804_v8, %v1022_v63  ;;  %v4370_v32 = vmul.f32 %v3807_v10, %v1022_v63  ;;  %v4373_v50 = vmul.f32 %v3804_v8, %v1028_v37  ;;  %v4379_v19 = vmul.f32 %v3807_v10, %v1028_v37  ;;  %v3166_v37 = vld [vmem:[%s3392_s25 + $0x18] sm:$0xff] }
 0x1dd   : > { %5879 = vst [vmem:[#allocation114_spill] sm:$0xff] %v4348_v9  ;;  %5880 = vst [vmem:[#allocation115_spill] sm:$0xff] %v4350_v57  ;;  %v1993_v9 = vmul.f32 %v4206_v43, %v1991_v26  ;;  %v1992_v57 = vmul.f32 %v4209_v38, %v1991_v26  ;;  %v1046_v26 = vstv %s4308_s11  ;;  %v4391_v63 = vmul.f32 %v3807_v10, %v1034_v1  ;;  %s4529_s11 = sld [smem:[#allocation2 + $0xae]] }
 0x1de   : > { %5882 = vst [vmem:[#allocation117_spill] sm:$0xff] %v4354_v62  ;;  %5884 = vst [vmem:[#allocation119_spill] sm:$0xff] %v4359_v40  ;;  %1984 = vrot.lane.b32.xlu1 %v1979_v6, %s3279_s27  ;;  %1982 = vrot.lane.b32.xlu0 %v1978_v20, %s3279_s27  ;;  %v2005_v6 = vstv %s4298_s10  ;;  %v4382_v20 = vmul.f32 %v3804_v8, %v1034_v1  ;;  %v1052_v40 = vstv %s4310_s17  ;;  %s4523_s10 = sld [smem:[#allocation2 + $0x93]]  ;;  %s4543_s17 = sld [smem:[#allocation2 + $0xb6]] }
 0x1df   : > { %5885 = vst [vmem:[#allocation120_spill] sm:$0xff] %v4367_v52  ;;  %5886 = vst [vmem:[#allocation121_spill] sm:$0xff] %v4370_v32  ;;  %v1058_v62 = vstv %s4323_s19  ;;  %v1064_v34 = vstv %s4325_s20  ;;  %v4401_v8 = vmul.f32 %v3166_v37, %v1040_v45  ;;  %v2006_v10 = vmul.f32 %v4209_v38, %v2005_v6  ;;  %s4551_s19 = sld [smem:[#allocation2 + $0xc9]] }
 0x1e0   : > { %5887 = vst [vmem:[#allocation122_spill] sm:$0xff] %v4373_v50  ;;  %v4386_v46 = vpop.permute.xlu1 %1491  ;;  %v4388_v52 = vpop.permute.xlu0 %1489  ;;  %5890 = vst [vmem:[#allocation125_spill] sm:$0xff] %v4391_v63  ;;  %v3165_v50 = vld [vmem:[%s3392_s25 + $0x20] sm:$0xff]  ;;  %v2019_v63 = vstv %s4340_s24  ;;  %s4578_s20 = sld [smem:[#allocation2 + $0xd1]]  ;;  %s4612_s24 = sld [smem:[#allocation2 + $0x16]] }
 0x1e1   : > { %5888 = vst [vmem:[#allocation123_spill] sm:$0xff] %v4386_v46  ;;  %5889 = vst [vmem:[#allocation124_spill] sm:$0xff] %v4388_v52  ;;  %v4394_v32 = vmul.f32 %v3165_v50, %v1040_v45  ;;  %v2007_v52 = vmul.f32 %v4206_v43, %v2005_v6  ;;  %v4407_v1 = vmul.f32 %v3165_v50, %v1046_v26 }
 0x1e2   : > { %5892 = vst [vmem:[#allocation127_spill] sm:$0xff] %v4401_v8  ;;  %1998 = vrot.lane.b32.xlu1 %v1993_v9, %s3279_s27  ;;  %1996 = vrot.lane.b32.xlu0 %v1992_v57, %s3279_s27  ;;  %v4409_v46 = vmul.f32 %v3166_v37, %v1046_v26  ;;  %v4418_v45 = vmul.f32 %v3166_v37, %v1052_v40 }
 0x1e3   : > { %5891 = vst [vmem:[#allocation126_spill] sm:$0xff] %v4394_v32  ;;  %v4411_v32 = vmul.f32 %v3165_v50, %v1052_v40  ;;  %v4420_v9 = vmul.f32 %v3165_v50, %v1058_v62  ;;  %v4422_v57 = vmul.f32 %v3166_v37, %v1058_v62  ;;  %v4424_v8 = vmul.f32 %v3165_v50, %v1064_v34 }
 0x1e4   : > { %5893 = vst [vmem:[#allocation128_spill] sm:$0xff] %v4409_v46  ;;  %5895 = vst [vmem:[#allocation130_spill] sm:$0xff] %v4418_v45  ;;  %v4426_v6 = vpop.permute.xlu1 %1505  ;;  %v4428_v26 = vpop.permute.xlu0 %1503  ;;  %v532_v46 = vadd.f32 %v3789_v2, %v3659_v54  ;;  %v547_v40 = vadd.f32 %v3795_v4, %v3680_v12  ;;  %v4436_v45 = vmul.f32 %v3166_v37, %v1064_v34  ;;  %v5905_v37 = vld [vmem:[#allocation13_spill] sm:$0xff] }
 0x1e5   : > { %5894 = vst [vmem:[#allocation129_spill] sm:$0xff] %v4411_v32  ;;  %5896 = vst [vmem:[#allocation131_spill] sm:$0xff] %v4426_v6  ;;  %v533_v32 = vadd.f32 %v3787_v61, %v3657_v49  ;;  %v546_v62 = vadd.f32 %v3797_v5, %v3682_v13  ;;  %v2021_v50 = vmul.f32 %v4206_v43, %v2019_v63  ;;  %v2033_v61 = vstv %s4376_s26  ;;  %s4622_s26 = sld [smem:[#allocation2 + $0xf]]  ;;  %v5947_v6 = vld [vmem:[#allocation34_spill] sm:$0xff] }
 0x1e6   : > { %5897 = vst [vmem:[#allocation132_spill] sm:$0xff] %v4428_v26  ;;  %2012 = vrot.lane.b32.xlu1 %v2007_v52, %s3280_s9  ;;  %2010 = vrot.lane.b32.xlu0 %v2006_v10, %s3280_s9  ;;  %v2020_v49 = vmul.f32 %v4209_v38, %v2019_v63  ;;  %v561_v54 = vadd.f32 %v3809_v11, %v3703_v29  ;;  %v1296_v11 = vstv %s4398_s28  ;;  %v2061_v52 = vstv %s4453_s5  ;;  %s4640_s28 = sld [smem:[#allocation2 + $0x2a]]  ;;  %s4688_s5 = sld [smem:[#allocation2 + $0x4c]] }
 0x1e7   : > { %v560_v12 = vadd.f32 %v3811_v16, %v3705_v30  ;;  %v575_v13 = vadd.f32 %v3817_v44, %v3724_v56  ;;  %v574_v2 = vadd.f32 %v3819_v21, %v3726_v59  ;;  %v589_v4 = vadd.f32 %v3825_v23, %v3743_v17 }
 0x1e8   : > { %v588_v5 = vadd.f32 %v3827_v24, %v3745_v18  ;;  %v4463_v29 = vadd.f32 %v3833_v25, %v3761_v27  ;;  %v4467_v30 = vpop.permute.xlu1 %1519  ;;  %v4469_v56 = vpop.permute.xlu0 %1517  ;;  %v4473_v59 = vadd.f32 %v3835_v0, %v3763_v28  ;;  %v645_v17 = vadd.f32 %v3857_v47, %v533_v32  ;;  %v5904_v32 = vld [vmem:[#allocation12_spill] sm:$0xff] }
 0x1e9   : > { %5898 = vst [vmem:[#allocation133_spill] sm:$0xff] %v4467_v30  ;;  %5899 = vst [vmem:[#allocation134_spill] sm:$0xff] %v4469_v56  ;;  %v644_v18 = vadd.f32 %v3859_v48, %v532_v46  ;;  %v4482_v27 = vadd.f32 %v3841_v35, %v3774_v53  ;;  %v2035_v16 = vmul.f32 %v4206_v43, %v2033_v61  ;;  %v1302_v23 = vstv %s4413_s29  ;;  %s4649_s29 = sld [smem:[#allocation2 + $0x31]] }
 0x1ea   : > { %2026 = vrot.lane.b32.xlu1 %v2021_v50, %s3280_s9  ;;  %2024 = vrot.lane.b32.xlu0 %v2020_v49, %s3280_s9  ;;  %v2034_v28 = vmul.f32 %v4209_v38, %v2033_v61  ;;  %v4490_v44 = vadd.f32 %v3843_v36, %v3776_v41  ;;  %v659_v21 = vadd.f32 %v3865_v14, %v547_v40  ;;  %v2047_v24 = vstv %s4416_s30  ;;  %v5906_v40 = vld [vmem:[#allocation105_spill] sm:$0xff]  ;;  %s4669_s30 = sld [smem:[#allocation2 + $0x45]] }
 0x1eb   : > { %v4499_v53 = vadd.f32 %v3849_v7, %v3783_v15  ;;  %v4503_v25 = vadd.f32 %v3851_v39, %v3785_v60  ;;  %v658_v0 = vadd.f32 %v3867_v3, %v546_v62  ;;  %v4507_v41 = vmul.f32 %v3938_v33, %v1296_v11 }
 0x1ec   : > { %v4509_v35 = vpop.permute.xlu1 %1533  ;;  %v4511_v36 = vpop.permute.xlu0 %1531  ;;  %v673_v47 = vadd.f32 %v3873_v58, %v561_v54  ;;  %v4515_v48 = vadd.f32 %v4295_v51, %v645_v17  ;;  %v4518_v15 = vadd.f32 %v4301_v55, %v644_v18  ;;  %v4521_v60 = vmul.f32 %v3941_v42, %v1296_v11  ;;  %v5902_v58 = vld [vmem:[#allocation11_spill] sm:$0xff]  ;;  %v5903_v51 = vld [vmem:[#allocation104_spill] sm:$0xff]  ;;  %v5910_v18 = vld [vmem:[#allocation14_spill] sm:$0xff] }
 0x1ed   : > { %5900 = vst [vmem:[#allocation135_spill] sm:$0xff] %v4509_v35  ;;  %5901 = vst [vmem:[#allocation136_spill] sm:$0xff] %v4511_v36  ;;  %v4526_v7 = vmul.f32 %v3938_v33, %v1302_v23  ;;  %v1308_v39 = vstv %s4440_s4  ;;  %v2049_v14 = vmul.f32 %v4206_v43, %v2047_v24  ;;  %v2048_v3 = vmul.f32 %v4209_v38, %v2047_v24  ;;  %v5912_v24 = vld [vmem:[#allocation109_spill] sm:$0xff]  ;;  %v5928_v36 = vld [vmem:[#allocation118_spill] sm:$0xff]  ;;  %s4679_s4 = sld [smem:[#allocation2 + $0x60]] }
 0x1ee   : > { %2040 = vrot.lane.b32.xlu1 %v2035_v16, %s3280_s9  ;;  %2038 = vrot.lane.b32.xlu0 %v2034_v28, %s3280_s9  ;;  %v672_v55 = vadd.f32 %v5902_v58, %v560_v12  ;;  %v4537_v34 = vadd.f32 %v5903_v51, %v659_v21  ;;  %v4540_v46 = vmul.f32 %v3941_v42, %v1302_v23  ;;  %v1314_v50 = vstv %s4465_s6  ;;  %v5909_v12 = vld [vmem:[#allocation108_spill] sm:$0xff]  ;;  %v5911_v21 = vld [vmem:[#allocation15_spill] sm:$0xff]  ;;  %s4708_s6 = sld [smem:[#allocation2 + $0x7b]] }
 0x1ef   : > { %v687_v63 = vadd.f32 %v5904_v32, %v575_v13  ;;  %v686_v10 = vadd.f32 %v5905_v37, %v574_v2  ;;  %v4548_v62 = vadd.f32 %v5906_v40, %v658_v0  ;;  %v4558_v61 = vadd.f32 %v5909_v12, %v673_v47  ;;  %v5914_v58 = vld [vmem:[#allocation111_spill] sm:$0xff]  ;;  %v5915_v32 = vld [vmem:[#allocation16_spill] sm:$0xff]  ;;  %v5916_v40 = vld [vmem:[#allocation17_spill] sm:$0xff] }
 0x1f0   : > { %v4553_v49 = vpop.permute.xlu1 %1547  ;;  %v4555_v54 = vpop.permute.xlu0 %1545  ;;  %v4561_v17 = vmul.f32 %v3938_v33, %v1308_v39  ;;  %v4564_v13 = vmul.f32 %v3941_v42, %v1308_v39  ;;  %v1320_v2 = vstv %s4478_s7  ;;  %v701_v11 = vadd.f32 %v5910_v18, %v589_v4  ;;  %v5913_v4 = vld [vmem:[#allocation110_spill] sm:$0xff]  ;;  %v5929_v35 = vld [vmem:[#allocation119_spill] sm:$0xff]  ;;  %s4726_s7 = sld [smem:[#allocation2 + $0x67]] }
 0x1f1   : > { %5907 = vst [vmem:[#allocation11_spill] sm:$0xff] %v4553_v49  ;;  %5908 = vst [vmem:[#allocation104_spill] sm:$0xff] %v4555_v54  ;;  %v2063_v16 = vmul.f32 %v4206_v43, %v2061_v52  ;;  %v2062_v28 = vmul.f32 %v4209_v38, %v2061_v52  ;;  %v700_v23 = vadd.f32 %v5911_v21, %v588_v5  ;;  %v2075_v39 = vstv %s4495_s8  ;;  %s4742_s8 = sld [smem:[#allocation2 + $0x96]] }
 0x1f2   : > { %2054 = vrot.lane.b32.xlu1 %v2049_v14, %s3280_s9  ;;  %2052 = vrot.lane.b32.xlu0 %v2048_v3, %s3280_s9  ;;  %v762_v0 = vadd.f32 %v5912_v24, %v672_v55  ;;  %v4575_v47 = vmul.f32 %v3938_v33, %v1314_v50  ;;  %v769_v14 = vadd.f32 %v5913_v4, %v687_v63  ;;  %v1332_v21 = vstv %s4529_s11  ;;  %v5918_v4 = vld [vmem:[#allocation18_spill] sm:$0xff]  ;;  %s4765_s11 = sld [smem:[#allocation2 + $0x82]] }
 0x1f3   : > { %v768_v3 = vadd.f32 %v5914_v58, %v686_v10  ;;  %v4583_v51 = vmul.f32 %v3941_v42, %v1314_v50  ;;  %v4586_v52 = vmul.f32 %v3938_v33, %v1320_v2  ;;  %v715_v37 = vadd.f32 %v5915_v32, %v4463_v29  ;;  %v5917_v50 = vld [vmem:[#allocation112_spill] sm:$0xff]  ;;  %v5920_v58 = vld [vmem:[#allocation113_spill] sm:$0xff] }
 0x1f4   : > { %v4588_v5 = vpop.permute.xlu1 %1561  ;;  %v4590_v55 = vpop.permute.xlu0 %1559  ;;  %v714_v12 = vadd.f32 %v5916_v40, %v4473_v59  ;;  %v4597_v63 = vmul.f32 %v3941_v42, %v1320_v2  ;;  %v1326_v10 = vstv %s4523_s10  ;;  %v775_v18 = vadd.f32 %v5917_v50, %v701_v11  ;;  %v5919_v42 = vld [vmem:[#allocation19_spill] sm:$0xff]  ;;  %v5922_v40 = vld [vmem:[#allocation21_spill] sm:$0xff]  ;;  %s4757_s10 = sld [smem:[#allocation2 + $0xb1]] }
 0x1f5   : > { %v2077_v24 = vmul.f32 %v4206_v43, %v2075_v39  ;;  %v2076_v29 = vmul.f32 %v4209_v38, %v2075_v39  ;;  %v729_v59 = vadd.f32 %v5918_v4, %v4482_v27  ;;  %v728_v2 = vadd.f32 %v5919_v42, %v4490_v44  ;;  %v3167_v42 = vld [vmem:[%s3392_s25 + $0x19] sm:$0xff] }
 0x1f6   : > { %2068 = vrot.lane.b32.xlu1 %v2063_v16, %s3280_s9  ;;  %2066 = vrot.lane.b32.xlu0 %v2062_v28, %s3280_s9  ;;  %v774_v32 = vadd.f32 %v5920_v58, %v700_v23  ;;  %v2089_v11 = vstv %s4543_s17  ;;  %v5921_v16 = vld [vmem:[#allocation20_spill] sm:$0xff]  ;;  %v742_v50 = vadd.f32 %v5922_v40, %v4503_v25  ;;  %v4619_v39 = vmul.f32 %v3938_v33, %v1326_v10  ;;  %v3168_v58 = vld [vmem:[%s3392_s25 + $0x21] sm:$0xff]  ;;  %s4781_s17 = sld [smem:[#allocation2 + $0xcc]] }
 0x1f7   : > { %v743_v28 = vadd.f32 %v5921_v16, %v4499_v53  ;;  %v1338_v54 = vstv %s4551_s19  ;;  %v781_v23 = vadd.f32 %v4342_v22, %v715_v37  ;;  %v780_v4 = vadd.f32 %v4344_v31, %v714_v12  ;;  %v5925_v37 = vld [vmem:[#allocation116_spill] sm:$0xff]  ;;  %v5926_v12 = vld [vmem:[#allocation117_spill] sm:$0xff]  ;;  %s4804_s19 = sld [smem:[#allocation2 + $0x9d]] }
 0x1f8   : > { %v4624_v27 = vpop.permute.xlu1 %1625  ;;  %v4626_v44 = vpop.permute.xlu0 %1623  ;;  %v4631_v53 = vmul.f32 %v3167_v42, %v1326_v10  ;;  %v4634_v25 = vmul.f32 %v3168_v58, %v1332_v21  ;;  %v4636_v33 = vmul.f32 %v3167_v42, %v1332_v21  ;;  %v2091_v16 = vmul.f32 %v4206_v43, %v2089_v11  ;;  %v5927_v21 = vld [vmem:[#allocation22_spill] sm:$0xff] }
 0x1f9   : > { %5923 = vst [vmem:[#allocation12_spill] sm:$0xff] %v4624_v27  ;;  %5924 = vst [vmem:[#allocation13_spill] sm:$0xff] %v4626_v44  ;;  %v2090_v22 = vmul.f32 %v4209_v38, %v2089_v11  ;;  %v787_v31 = vadd.f32 %v5925_v37, %v729_v59  ;;  %v786_v10 = vadd.f32 %v5926_v12, %v728_v2  ;;  %v2103_v49 = vstv %s4578_s20  ;;  %v5932_v2 = vld [vmem:[#allocation23_spill] sm:$0xff]  ;;  %s4838_s20 = sld [smem:[#allocation2 + $0xb8]] }
 0x1fa   : > { %2082 = vrot.lane.b32.xlu1 %v2077_v24, %s3280_s9  ;;  %2080 = vrot.lane.b32.xlu0 %v2076_v29, %s3280_s9  ;;  %v4646_v40 = vmul.f32 %v3168_v58, %v1338_v54  ;;  %v807_v24 = vadd.f32 %v5927_v21, %v4515_v48  ;;  %v793_v29 = vadd.f32 %v5928_v36, %v743_v28  ;;  %v5933_v58 = vld [vmem:[#allocation24_spill] sm:$0xff]  ;;  %v5934_v48 = vld [vmem:[#allocation25_spill] sm:$0xff]  ;;  %v5936_v28 = vld [vmem:[#allocation27_spill] sm:$0xff] }
 0x1fb   : > { %v792_v56 = vadd.f32 %v5929_v35, %v742_v50  ;;  %v4655_v30 = vmul.f32 %v3167_v42, %v1338_v54  ;;  %v806_v11 = vadd.f32 %v5932_v2, %v4518_v15  ;;  %v821_v37 = vadd.f32 %v5933_v58, %v4537_v34  ;;  %v5935_v35 = vld [vmem:[#allocation26_spill] sm:$0xff]  ;;  %v5937_v34 = vld [vmem:[#allocation28_spill] sm:$0xff]  ;;  %v5938_v21 = vld [vmem:[#allocation29_spill] sm:$0xff] }
 0x1fc   : > { %v4657_v26 = vpop.permute.xlu1 %1639  ;;  %v4659_v59 = vpop.permute.xlu0 %1637  ;;  %v820_v36 = vadd.f32 %v5934_v48, %v4548_v62  ;;  %v835_v54 = vadd.f32 %v5935_v35, %v4558_v61  ;;  %v834_v50 = vadd.f32 %v5936_v28, %v762_v0  ;;  %v2105_v15 = vmul.f32 %v4206_v43, %v2103_v49  ;;  %v5939_v2 = vld [vmem:[#allocation30_spill] sm:$0xff]  ;;  %v4682_v61 = vld [vmem:[%s3392_s25 + $0x39] sm:$0xff]  ;;  %v4686_v48 = vld [vmem:[%s3392_s25 + $0x31] sm:$0xff] }
 0x1fd   : > { %5930 = vst [vmem:[#allocation105_spill] sm:$0xff] %v4657_v26  ;;  %5931 = vst [vmem:[#allocation108_spill] sm:$0xff] %v4659_v59  ;;  %v2104_v42 = vmul.f32 %v4209_v38, %v2103_v49  ;;  %v849_v12 = vadd.f32 %v5937_v34, %v769_v14  ;;  %v848_v62 = vadd.f32 %v5938_v21, %v768_v3  ;;  %v2167_v0 = vstv %s4612_s24  ;;  %v5941_v35 = vld [vmem:[#allocation38_spill] sm:$0xff]  ;;  %v5942_v28 = vld [vmem:[#allocation39_spill] sm:$0xff]  ;;  %s4851_s24 = sld [smem:[#allocation2 + $0x12]] }
 0x1fe   : > { %2096 = vrot.lane.b32.xlu1 %v2091_v16, %s3280_s9  ;;  %2094 = vrot.lane.b32.xlu0 %v2090_v22, %s3280_s9  ;;  %v863_v58 = vadd.f32 %v5939_v2, %v775_v18  ;;  %v5940_v16 = vld [vmem:[#allocation31_spill] sm:$0xff]  ;;  %v919_v49 = vadd.f32 %v5941_v35, %v807_v24  ;;  %v918_v14 = vadd.f32 %v5942_v28, %v806_v11  ;;  %v1570_v34 = vstv %s4622_s26  ;;  %v5945_v21 = vld [vmem:[#allocation32_spill] sm:$0xff]  ;;  %v5946_v59 = vld [vmem:[#allocation33_spill] sm:$0xff]  ;;  %s4866_s26 = sld [smem:[#allocation2 + $0x2d]] }
 0x1ff   : > { %v862_v22 = vadd.f32 %v5940_v16, %v774_v32  ;;  %v877_v2 = vadd.f32 %v5945_v21, %v781_v23  ;;  %v4700_v26 = vadd.f32 %v5946_v59, %v780_v4  ;;  %v4703_v44 = vadd.f32 %v5947_v6, %v787_v31  ;;  %v5948_v27 = vld [vmem:[#allocation35_spill] sm:$0xff]  ;;  %v5949_v24 = vld [vmem:[#allocation36_spill] sm:$0xff]  ;;  %v5950_v59 = vld [vmem:[#allocation37_spill] sm:$0xff] }
 0x200   : > { %v4694_v3 = vpop.permute.xlu1 %1653  ;;  %v4696_v18 = vpop.permute.xlu0 %1651  ;;  %v4706_v32 = vadd.f32 %v5948_v27, %v786_v10  ;;  %v4711_v11 = vadd.f32 %v5949_v24, %v793_v29  ;;  %v1576_v16 = vstv %s4640_s28  ;;  %v2169_v23 = vmul.f32 %v4682_v61, %v2167_v0  ;;  %v5951_v27 = vld [vmem:[#allocation40_spill] sm:$0xff]  ;;  %v5952_v10 = vld [vmem:[#allocation58_spill] sm:$0xff]  ;;  %v5953_v28 = vld [vmem:[#allocation41_spill] sm:$0xff]  ;;  %s4874_s28 = sld [smem:[#allocation2 + $0xd3]] }
 0x201   : > { %5943 = vst [vmem:[#allocation14_spill] sm:$0xff] %v4694_v3  ;;  %5944 = vst [vmem:[#allocation15_spill] sm:$0xff] %v4696_v18  ;;  %v2168_v4 = vmul.f32 %v4686_v48, %v2167_v0  ;;  %v4719_v6 = vadd.f32 %v5950_v59, %v792_v56  ;;  %v933_v31 = vadd.f32 %v5951_v27, %v821_v37  ;;  %v2181_v29 = vstv %s4649_s29  ;;  %v5954_v21 = vld [vmem:[#allocation120_spill] sm:$0xff]  ;;  %v5955_v24 = vld [vmem:[#allocation121_spill] sm:$0xff]  ;;  %s4887_s29 = sld [smem:[#allocation2 + $0x48]] }
 0x202   : > { %2110 = vrot.lane.b32.xlu1 %v2105_v15, %s3280_s9  ;;  %2108 = vrot.lane.b32.xlu0 %v2104_v42, %s3280_s9  ;;  %v4723_v35 = vmul.f32 %v5952_v10, %v1570_v34  ;;  %v932_v15 = vadd.f32 %v5953_v28, %v820_v36  ;;  %v4730_v42 = vadd.f32 %v5954_v21, %v919_v49  ;;  %v5956_v0 = vld [vmem:[#allocation59_spill] sm:$0xff]  ;;  %v5959_v59 = vld [vmem:[#allocation42_spill] sm:$0xff] }
 0x203   : > { %v4733_v18 = vadd.f32 %v5955_v24, %v918_v14  ;;  %v4736_v3 = vmul.f32 %v5956_v0, %v1570_v34  ;;  %v947_v27 = vadd.f32 %v5959_v59, %v835_v54  ;;  %v5960_v36 = vld [vmem:[#allocation43_spill] sm:$0xff]  ;;  %v4747_v49 = vmul.f32 %v5952_v10, %v1576_v16  ;;  %v5963_v54 = vld [vmem:[#allocation44_spill] sm:$0xff]  ;;  %v5964_v59 = vld [vmem:[#allocation122_spill] sm:$0xff] }
 0x204   : > { %v4738_v56 = vpop.permute.xlu1 %1667  ;;  %v4740_v37 = vpop.permute.xlu0 %1665  ;;  %v946_v28 = vadd.f32 %v5960_v36, %v834_v50  ;;  %v1582_v14 = vstv %s4669_s30  ;;  %v4751_v21 = vmul.f32 %v5956_v0, %v1576_v16  ;;  %v2183_v34 = vmul.f32 %v4682_v61, %v2181_v29  ;;  %v5965_v16 = vld [vmem:[#allocation45_spill] sm:$0xff]  ;;  %s4896_s30 = sld [smem:[#allocation2 + $0x17]] }
 0x205   : > { %5957 = vst [vmem:[#allocation109_spill] sm:$0xff] %v4738_v56  ;;  %5958 = vst [vmem:[#allocation110_spill] sm:$0xff] %v4740_v37  ;;  %v2182_v24 = vmul.f32 %v4686_v48, %v2181_v29  ;;  %v961_v50 = vadd.f32 %v5963_v54, %v849_v12  ;;  %v4761_v36 = vadd.f32 %v5964_v59, %v933_v31  ;;  %v1588_v37 = vstv %s4679_s4  ;;  %v5970_v54 = vld [vmem:[#allocation46_spill] sm:$0xff]  ;;  %s4903_s4 = sld [smem:[#allocation2 + $0x63]] }
 0x206   : > { %5961 = vst [vmem:[#allocation111_spill] sm:$0xff] %v4747_v49  ;;  %5962 = vst [vmem:[#allocation16_spill] sm:$0xff] %v4751_v21  ;;  %2174 = vrot.lane.b32.xlu1 %v2169_v23, %s3279_s27  ;;  %2172 = vrot.lane.b32.xlu0 %v2168_v4, %s3279_s27  ;;  %v2195_v56 = vstv %s4688_s5  ;;  %v960_v23 = vadd.f32 %v5965_v16, %v848_v62  ;;  %v4769_v4 = vadd.f32 %v4379_v19, %v932_v15  ;;  %v5971_v19 = vld [vmem:[#allocation125_spill] sm:$0xff]  ;;  %s4933_s5 = sld [smem:[#allocation2 + $0x32]] }
 0x207   : > { %v4772_v21 = vmul.f32 %v5952_v10, %v1582_v14  ;;  %v4775_v29 = vmul.f32 %v5956_v0, %v1582_v14  ;;  %v975_v59 = vadd.f32 %v5970_v54, %v863_v58  ;;  %v4785_v62 = vadd.f32 %v4382_v20, %v947_v27  ;;  %v5973_v58 = vld [vmem:[#allocation47_spill] sm:$0xff]  ;;  %v5974_v20 = vld [vmem:[#allocation126_spill] sm:$0xff] }
 0x208   : > { %v4777_v12 = vpop.permute.xlu1 %1681  ;;  %v4779_v31 = vpop.permute.xlu0 %1679  ;;  %v4788_v15 = vadd.f32 %v5971_v19, %v946_v28  ;;  %v1594_v16 = vstv %s4708_s6  ;;  %v4792_v14 = vmul.f32 %v5952_v10, %v1588_v37  ;;  %v974_v54 = vadd.f32 %v5973_v58, %v862_v22  ;;  %v5976_v19 = vld [vmem:[#allocation48_spill] sm:$0xff]  ;;  %v5982_v58 = vld [vmem:[#allocation50_spill] sm:$0xff]  ;;  %s4935_s6 = sld [smem:[#allocation2 + $0x7e]] }
 0x209   : > { %5966 = vst [vmem:[#allocation17_spill] sm:$0xff] %v4772_v21  ;;  %5967 = vst [vmem:[#allocation112_spill] sm:$0xff] %v4775_v29  ;;  %v1044_v27 = vadd.f32 %v5974_v20, %v961_v50  ;;  %v4801_v29 = vmul.f32 %v5956_v0, %v1588_v37  ;;  %v2209_v28 = vstv %s4726_s7  ;;  %v1600_v49 = vstv %s4742_s8  ;;  %v5981_v37 = vld [vmem:[#allocation49_spill] sm:$0xff]  ;;  %s4960_s7 = sld [smem:[#allocation2 + $0x4d]]  ;;  %s4967_s8 = sld [smem:[#allocation2 + $0x68]] }
 0x20a   : > { %5968 = vst [vmem:[#allocation18_spill] sm:$0xff] %v4777_v12  ;;  %5969 = vst [vmem:[#allocation19_spill] sm:$0xff] %v4779_v31  ;;  %2188 = vrot.lane.b32.xlu1 %v2183_v34, %s3279_s27  ;;  %2186 = vrot.lane.b32.xlu0 %v2182_v24, %s3279_s27  ;;  %v2197_v31 = vmul.f32 %v4682_v61, %v2195_v56  ;;  %v2196_v12 = vmul.f32 %v4686_v48, %v2195_v56  ;;  %v5977_v34 = vld [vmem:[#allocation127_spill] sm:$0xff] }
 0x20b   : > { %5972 = vst [vmem:[#allocation113_spill] sm:$0xff] %v4792_v14  ;;  %5975 = vst [vmem:[#allocation20_spill] sm:$0xff] %v4801_v29  ;;  %v989_v14 = vadd.f32 %v5976_v19, %v877_v2  ;;  %v1043_v21 = vadd.f32 %v5977_v34, %v960_v23  ;;  %v4809_v24 = vmul.f32 %v5952_v10, %v1594_v16  ;;  %v5984_v23 = vld [vmem:[#allocation51_spill] sm:$0xff]  ;;  %v1606_v34 = vstv %s4757_s10  ;;  %s5000_s10 = sld [smem:[#allocation2 + $0x83]] }
 0x20c   : > { %v4812_v56 = vpop.permute.xlu1 %1695  ;;  %v4814_v22 = vpop.permute.xlu0 %1693  ;;  %v988_v50 = vadd.f32 %v5981_v37, %v4700_v26  ;;  %v1003_v20 = vadd.f32 %v5982_v58, %v4703_v44  ;;  %v1050_v29 = vadd.f32 %v4407_v1, %v975_v59  ;;  %v4822_v2 = vmul.f32 %v5956_v0, %v1594_v16  ;;  %v5985_v44 = vld [vmem:[#allocation52_spill] sm:$0xff]  ;;  %v5989_v58 = vld [vmem:[#allocation129_spill] sm:$0xff] }
 0x20d   : > { %5978 = vst [vmem:[#allocation21_spill] sm:$0xff] %v4809_v24  ;;  %5979 = vst [vmem:[#allocation116_spill] sm:$0xff] %v4812_v56  ;;  %v1002_v19 = vadd.f32 %v5984_v23, %v4706_v32  ;;  %v2210_v26 = vmul.f32 %v4686_v48, %v2209_v28  ;;  %v1017_v1 = vadd.f32 %v5985_v44, %v4711_v11  ;;  %v5986_v59 = vld [vmem:[#allocation128_spill] sm:$0xff]  ;;  %v2223_v32 = vstv %s4765_s11  ;;  %s5015_s11 = sld [smem:[#allocation2 + $0x9e]] }
 0x20e   : > { %5980 = vst [vmem:[#allocation117_spill] sm:$0xff] %v4814_v22  ;;  %5983 = vst [vmem:[#allocation22_spill] sm:$0xff] %v4822_v2  ;;  %2202 = vrot.lane.b32.xlu1 %v2197_v31, %s3279_s27  ;;  %2200 = vrot.lane.b32.xlu0 %v2196_v12, %s3279_s27  ;;  %v2211_v22 = vmul.f32 %v4682_v61, %v2209_v28  ;;  %v1049_v16 = vadd.f32 %v5986_v59, %v974_v54  ;;  %v5988_v12 = vld [vmem:[#allocation53_spill] sm:$0xff]  ;;  %v1612_v44 = vstv %s4781_s17  ;;  %s5017_s17 = sld [smem:[#allocation2 + $0xb9]] }
 0x20f   : > { %v4835_v37 = vmul.f32 %v5952_v10, %v1600_v49  ;;  %v1016_v31 = vadd.f32 %v5988_v12, %v4719_v6  ;;  %v1056_v23 = vadd.f32 %v5989_v58, %v989_v14  ;;  %v4844_v56 = vmul.f32 %v5956_v0, %v1600_v49  ;;  %v5993_v10 = vld [vmem:[#allocation130_spill] sm:$0xff]  ;;  %v3170_v6 = vld [vmem:[%s3392_s25 + $0x1a] sm:$0xff] }
 0x210   : > { %v4846_v28 = vpop.permute.xlu1 %1709  ;;  %v4848_v11 = vpop.permute.xlu0 %1707  ;;  %v1055_v54 = vadd.f32 %v5993_v10, %v988_v50  ;;  %v1062_v59 = vadd.f32 %v4420_v9, %v1003_v20  ;;  %v4859_v14 = vmul.f32 %v3170_v6, %v1606_v34  ;;  %v1061_v0 = vadd.f32 %v4422_v57, %v1002_v19  ;;  %v5996_v57 = vld [vmem:[#allocation54_spill] sm:$0xff]  ;;  %v5997_v19 = vld [vmem:[#allocation55_spill] sm:$0xff]  ;;  %v5998_v58 = vld [vmem:[#allocation56_spill] sm:$0xff] }
 0x211   : > { %5987 = vst [vmem:[#allocation118_spill] sm:$0xff] %v4835_v37  ;;  %5990 = vst [vmem:[#allocation119_spill] sm:$0xff] %v4844_v56  ;;  %v3169_v37 = vld [vmem:[%s3392_s25 + $0x22] sm:$0xff]  ;;  %v2225_v49 = vmul.f32 %v4682_v61, %v2223_v32  ;;  %v2224_v12 = vmul.f32 %v4686_v48, %v2223_v32  ;;  %v1068_v9 = vadd.f32 %v4424_v8, %v1017_v1  ;;  %v6019_v56 = vld [vmem:[#allocation79_spill] sm:$0xff] }
 0x212   : > { %5991 = vst [vmem:[#allocation23_spill] sm:$0xff] %v4846_v28  ;;  %5992 = vst [vmem:[#allocation24_spill] sm:$0xff] %v4848_v11  ;;  %v4856_v2 = vmul.f32 %v3169_v37, %v1606_v34  ;;  %2216 = vrot.lane.b32.xlu1 %v2211_v22, %s3279_s27  ;;  %2214 = vrot.lane.b32.xlu0 %v2210_v26, %s3279_s27  ;;  %v4869_v50 = vmul.f32 %v3169_v37, %v1612_v44  ;;  %v2237_v34 = vstv %s4804_s19  ;;  %v5999_v1 = vld [vmem:[#allocation57_spill] sm:$0xff]  ;;  %s5068_s19 = sld [smem:[#allocation2 + $0xd4]] }
 0x213   : > { %5995 = vst [vmem:[#allocation26_spill] sm:$0xff] %v4859_v14  ;;  %v4871_v20 = vmul.f32 %v3170_v6, %v1612_v44  ;;  %v1082_v22 = vadd.f32 %v5996_v57, %v4730_v42  ;;  %v1081_v26 = vadd.f32 %v5997_v19, %v4733_v18  ;;  %v1096_v32 = vadd.f32 %v5998_v58, %v4761_v36  ;;  %v6000_v42 = vld [vmem:[#allocation60_spill] sm:$0xff]  ;;  %v6001_v18 = vld [vmem:[#allocation61_spill] sm:$0xff]  ;;  %v6002_v57 = vld [vmem:[#allocation62_spill] sm:$0xff] }
 0x214   : > { %5994 = vst [vmem:[#allocation25_spill] sm:$0xff] %v4856_v2  ;;  %v1067_v10 = vadd.f32 %v4436_v45, %v1016_v31  ;;  %v4883_v11 = vpop.permute.xlu1 %1723  ;;  %v4885_v8 = vpop.permute.xlu0 %1721  ;;  %v1095_v37 = vadd.f32 %v5999_v1, %v4769_v4  ;;  %v1110_v44 = vadd.f32 %v6000_v42, %v4785_v62  ;;  %v1109_v6 = vadd.f32 %v6001_v18, %v4788_v15  ;;  %v6003_v45 = vld [vmem:[#allocation63_spill] sm:$0xff]  ;;  %v6004_v62 = vld [vmem:[#allocation64_spill] sm:$0xff]  ;;  %v6005_v15 = vld [vmem:[#allocation65_spill] sm:$0xff] }
 0x215   : > { %v1124_v36 = vadd.f32 %v6002_v57, %v1044_v27  ;;  %v1123_v31 = vadd.f32 %v6003_v45, %v1043_v21  ;;  %v2239_v19 = vmul.f32 %v4682_v61, %v2237_v34  ;;  %v2238_v4 = vmul.f32 %v4686_v48, %v2237_v34  ;;  %v6006_v27 = vld [vmem:[#allocation66_spill] sm:$0xff]  ;;  %v6007_v57 = vld [vmem:[#allocation67_spill] sm:$0xff] }
 0x216   : > { %2230 = vrot.lane.b32.xlu1 %v2225_v49, %s3279_s27  ;;  %2228 = vrot.lane.b32.xlu0 %v2224_v12, %s3279_s27  ;;  %v1138_v58 = vadd.f32 %v6004_v62, %v1050_v29  ;;  %v1137_v1 = vadd.f32 %v6005_v15, %v1049_v16  ;;  %v4908_v42 = vadd.f32 %v6006_v27, %v1056_v23  ;;  %v2251_v18 = vstv %s4838_s20  ;;  %v6008_v49 = vld [vmem:[#allocation68_spill] sm:$0xff]  ;;  %v6010_v16 = vld [vmem:[#allocation69_spill] sm:$0xff]  ;;  %v6011_v23 = vld [vmem:[#allocation70_spill] sm:$0xff]  ;;  %s5123_s20 = sld [smem:[#allocation2 + $0x19]] }
 0x217   : > { %v4912_v21 = vadd.f32 %v6007_v57, %v1055_v54  ;;  %v4915_v45 = vadd.f32 %v6008_v49, %v1062_v59  ;;  %v6009_v12 = vld [vmem:[#allocation72_spill] sm:$0xff]  ;;  %v1845_v29 = vstv %s4851_s24  ;;  %v4924_v62 = vadd.f32 %v6010_v16, %v1061_v0  ;;  %v6012_v54 = vld [vmem:[#allocation71_spill] sm:$0xff]  ;;  %v6013_v59 = vld [vmem:[#allocation73_spill] sm:$0xff]  ;;  %s5176_s24 = sld [smem:[#allocation2 + $0x99]] }
 0x218   : > { %v1194_v28 = vadd.f32 %v6009_v12, %v1082_v22  ;;  %v4918_v34 = vpop.permute.xlu1 %1737  ;;  %v4920_v14 = vpop.permute.xlu0 %1735  ;;  %v4927_v15 = vadd.f32 %v6011_v23, %v1068_v9  ;;  %v4930_v27 = vadd.f32 %v6012_v54, %v1067_v10  ;;  %v1193_v57 = vadd.f32 %v6013_v59, %v1081_v26  ;;  %v6014_v22 = vld [vmem:[#allocation74_spill] sm:$0xff]  ;;  %v6015_v12 = vld [vmem:[#allocation75_spill] sm:$0xff] }
 0x219   : > { %v1208_v49 = vadd.f32 %v6014_v22, %v1096_v32  ;;  %v2253_v0 = vmul.f32 %v4682_v61, %v2251_v18  ;;  %v2252_v9 = vmul.f32 %v4686_v48, %v2251_v18  ;;  %v1851_v10 = vstv %s4866_s26  ;;  %v6016_v32 = vld [vmem:[#allocation76_spill] sm:$0xff]  ;;  %s5189_s26 = sld [smem:[#allocation2 + $0x34]] }
 0x21a   : > { %2244 = vrot.lane.b32.xlu1 %v2239_v19, %s3279_s27  ;;  %2242 = vrot.lane.b32.xlu0 %v2238_v4, %s3279_s27  ;;  %v1207_v16 = vadd.f32 %v6015_v12, %v1095_v37  ;;  %v2265_v26 = vstv %s4874_s28  ;;  %v4946_v23 = vmul.f32 %v4206_v43, %v1845_v29  ;;  %v4949_v54 = vmul.f32 %v4209_v38, %v1845_v29  ;;  %v6017_v19 = vld [vmem:[#allocation77_spill] sm:$0xff]  ;;  %s5219_s28 = sld [smem:[#allocation2 + $0xb4]] }
 0x21b   : > { %v1222_v59 = vadd.f32 %v6016_v32, %v1110_v44  ;;  %v1221_v22 = vadd.f32 %v6017_v19, %v1109_v6  ;;  %v4954_v4 = vadd.f32 %v4507_v41, %v1194_v28  ;;  %v1857_v37 = vstv %s4887_s29  ;;  %v6018_v32 = vld [vmem:[#allocation78_spill] sm:$0xff]  ;;  %s5235_s29 = sld [smem:[#allocation2 + $0x4f]] }
 0x21c   : > { %v4956_v2 = vpop.permute.xlu1 %1751  ;;  %v4958_v18 = vpop.permute.xlu0 %1749  ;;  %v4964_v12 = vadd.f32 %v4521_v60, %v1193_v57  ;;  %v2279_v29 = vstv %s4896_s30  ;;  %v4970_v44 = vmul.f32 %v4206_v43, %v1851_v10  ;;  %v4973_v6 = vmul.f32 %v4209_v38, %v1851_v10  ;;  %s5260_s30 = sld [smem:[#allocation2 + $0x6a]] }
 0x21d   : > { %v1306_v41 = vadd.f32 %v4526_v7, %v1208_v49  ;;  %v2267_v28 = vmul.f32 %v4682_v61, %v2265_v26  ;;  %v2266_v60 = vmul.f32 %v4686_v48, %v2265_v26  ;;  %v1863_v57 = vstv %s4903_s4  ;;  %s5262_s4 = sld [smem:[#allocation2 + $0xcf]] }
 0x21e   : > { %2258 = vrot.lane.b32.xlu1 %v2253_v0, %s3279_s27  ;;  %2256 = vrot.lane.b32.xlu0 %v2252_v9, %s3279_s27  ;;  %v1236_v19 = vadd.f32 %v6018_v32, %v1124_v36  ;;  %v1235_v24 = vadd.f32 %v6019_v56, %v1123_v31  ;;  %v4984_v10 = vadd.f32 %v4540_v46, %v1207_v16  ;;  %v2293_v31 = vstv %s4933_s5  ;;  %s5288_s5 = sld [smem:[#allocation2 + $0x85]] }
 0x21f   : > { %v4987_v7 = vmul.f32 %v4206_v43, %v1857_v37  ;;  %v4990_v49 = vadd.f32 %v4561_v17, %v1222_v59  ;;  %v4993_v0 = vadd.f32 %v4564_v13, %v1221_v22  ;;  %v2281_v36 = vmul.f32 %v4682_v61, %v2279_v29  ;;  %v6023_v13 = vld [vmem:[#allocation80_spill] sm:$0xff]  ;;  %v6024_v22 = vld [vmem:[#allocation81_spill] sm:$0xff] }
 0x220   : > { %v4995_v9 = vpop.permute.xlu1 %1765  ;;  %v4997_v26 = vpop.permute.xlu0 %1763  ;;  %v5003_v46 = vmul.f32 %v4209_v38, %v1857_v37  ;;  %v2280_v56 = vmul.f32 %v4686_v48, %v2279_v29  ;;  %v5008_v17 = vmul.f32 %v4206_v43, %v1863_v57  ;;  %v1869_v16 = vstv %s4935_s6  ;;  %v6026_v29 = vld [vmem:[#allocation82_spill] sm:$0xff]  ;;  %s5304_s6 = sld [smem:[#allocation2 + $0xa0]] }
 0x221   : > { %6020 = vst [vmem:[#allocation27_spill] sm:$0xff] %v4987_v7  ;;  %v1250_v59 = vadd.f32 %v6023_v13, %v1138_v58  ;;  %v1249_v32 = vadd.f32 %v6024_v22, %v1137_v1  ;;  %v5020_v37 = vmul.f32 %v4209_v38, %v1863_v57  ;;  %v5027_v1 = vadd.f32 %v4575_v47, %v1236_v19  ;;  %v6030_v47 = vld [vmem:[#allocation87_spill] sm:$0xff] }
 0x222   : > { %6021 = vst [vmem:[#allocation28_spill] sm:$0xff] %v5003_v46  ;;  %6022 = vst [vmem:[#allocation29_spill] sm:$0xff] %v5008_v17  ;;  %2272 = vrot.lane.b32.xlu1 %v2267_v28, %s3279_s27  ;;  %2270 = vrot.lane.b32.xlu0 %v2266_v60, %s3279_s27  ;;  %v1264_v17 = vadd.f32 %v6026_v29, %v4908_v42  ;;  %v6027_v46 = vld [vmem:[#allocation83_spill] sm:$0xff]  ;;  %v5030_v28 = vadd.f32 %v4583_v51, %v1235_v24  ;;  %v2321_v51 = vstv %s4967_s8  ;;  %v6032_v29 = vld [vmem:[#allocation84_spill] sm:$0xff]  ;;  %s3062_s8 = sld [smem:[#allocation2 + $0xd6]] }
 0x223   : > { %6025 = vst [vmem:[#allocation30_spill] sm:$0xff] %v5020_v37  ;;  %v1263_v58 = vadd.f32 %v6027_v46, %v4912_v21  ;;  %v2295_v22 = vmul.f32 %v4682_v61, %v2293_v31  ;;  %v2294_v57 = vmul.f32 %v4686_v48, %v2293_v31  ;;  %v2307_v37 = vstv %s4960_s7  ;;  %v6029_v21 = vld [vmem:[#allocation86_spill] sm:$0xff]  ;;  %s3061_s7 = sld [smem:[#allocation2 + $0xbb]] }
 0x224   : > { %v5032_v60 = vpop.permute.xlu1 %1779  ;;  %v5034_v13 = vpop.permute.xlu0 %1777  ;;  %v5040_v42 = vmul.f32 %v4206_v43, %v1869_v16  ;;  %v1292_v46 = vadd.f32 %v6029_v21, %v4927_v15  ;;  %v1291_v19 = vadd.f32 %v6030_v47, %v4930_v27  ;;  %v5048_v24 = vmul.f32 %v4209_v38, %v1869_v16  ;;  %v6034_v16 = vld [vmem:[#allocation88_spill] sm:$0xff] }
 0x225   : > { %v1278_v7 = vadd.f32 %v6032_v29, %v4915_v45  ;;  %v5053_v31 = vadd.f32 %v4586_v52, %v1250_v59  ;;  %v5056_v43 = vadd.f32 %v4597_v63, %v1249_v32  ;;  %v5061_v15 = vadd.f32 %v4619_v39, %v1264_v17  ;;  %v6033_v52 = vld [vmem:[#allocation85_spill] sm:$0xff] }
 0x226   : > { %6028 = vst [vmem:[#allocation31_spill] sm:$0xff] %v5040_v42  ;;  %6031 = vst [vmem:[#allocation38_spill] sm:$0xff] %v5048_v24  ;;  %2286 = vrot.lane.b32.xlu1 %v2281_v36, %s3280_s9  ;;  %2284 = vrot.lane.b32.xlu0 %v2280_v56, %s3280_s9  ;;  %v5064_v38 = vadd.f32 %v4631_v53, %v1263_v58  ;;  %v2309_v27 = vmul.f32 %v4682_v61, %v2307_v37  ;;  %v2335_v17 = vstv %s5000_s10  ;;  %v6035_v32 = vld [vmem:[#allocation89_spill] sm:$0xff]  ;;  %v6037_v24 = vld [vmem:[#allocation102_spill] sm:$0xff]  ;;  %s3063_s10 = sld [smem:[#allocation2 + $0x1a]] }
 0x227   : > { %v2308_v45 = vmul.f32 %v4686_v48, %v2307_v37  ;;  %v1277_v63 = vadd.f32 %v6033_v52, %v4924_v62  ;;  %v2323_v39 = vmul.f32 %v4682_v61, %v2321_v51  ;;  %v2322_v53 = vmul.f32 %v4686_v48, %v2321_v51  ;;  %v6036_v62 = vld [vmem:[#allocation90_spill] sm:$0xff] }
 0x228   : > { %v5072_v36 = vpop.permute.xlu1 %1793  ;;  %v5074_v56 = vpop.permute.xlu0 %1791  ;;  %v1356_v59 = vadd.f32 %v6034_v16, %v4954_v4  ;;  %v1355_v37 = vadd.f32 %v6035_v32, %v4964_v12  ;;  %v1342_v58 = vadd.f32 %v4646_v40, %v1292_v46  ;;  %v1341_v21 = vadd.f32 %v4655_v30, %v1291_v19  ;;  %v6038_v16 = vld [vmem:[#allocation103_spill] sm:$0xff]  ;;  %v6039_v12 = vld [vmem:[#allocation106_spill] sm:$0xff] }
 0x229   : > { %v1370_v47 = vadd.f32 %v6036_v62, %v1306_v41  ;;  %v5087_v29 = vadd.f32 %v4634_v25, %v1278_v7  ;;  %v2349_v51 = vstv %s5015_s11  ;;  %v2363_v52 = vstv %s5017_s17  ;;  %v6040_v40 = vld [vmem:[#allocation107_spill] sm:$0xff]  ;;  %v6042_v7 = vld [vmem:[#allocation114_spill] sm:$0xff]  ;;  %s3064_s11 = sld [smem:[#allocation2 + $0x35]]  ;;  %s3065_s17 = sld [smem:[#allocation2 + $0x50]] }
 0x22a   : > { %2300 = vrot.lane.b32.xlu1 %v2295_v22, %s3280_s9  ;;  %2298 = vrot.lane.b32.xlu0 %v2294_v57, %s3280_s9  ;;  %v1454_v4 = vadd.f32 %v6037_v24, %v1342_v58  ;;  %v1453_v42 = vadd.f32 %v6038_v16, %v1341_v21  ;;  %v1468_v32 = vadd.f32 %v6039_v12, %v1356_v59  ;;  %v6041_v30 = vld [vmem:[#allocation91_spill] sm:$0xff] }
 0x22b   : > { %v1467_v46 = vadd.f32 %v6040_v40, %v1355_v37  ;;  %v1369_v41 = vadd.f32 %v6041_v30, %v4984_v10  ;;  %v5100_v25 = vadd.f32 %v4636_v33, %v1277_v63  ;;  %v1482_v22 = vadd.f32 %v6042_v7, %v1370_v47  ;;  %v6043_v33 = vld [vmem:[#allocation115_spill] sm:$0xff] }
 0x22c   : > { %v5103_v19 = vpop.permute.xlu1 %1807  ;;  %v5105_v57 = vpop.permute.xlu0 %1805  ;;  %v2337_v24 = vmul.f32 %v4682_v61, %v2335_v17  ;;  %v1566_v58 = vadd.f32 %v4588_v5, %v1454_v4  ;;  %v1565_v59 = vadd.f32 %v4590_v55, %v1453_v42  ;;  %v2336_v37 = vmul.f32 %v4686_v48, %v2335_v17  ;;  %v6046_v4 = vld [vmem:[#allocation94_spill] sm:$0xff]  ;;  %v6047_v12 = vld [vmem:[#allocation111_spill] sm:$0xff] }
 0x22d   : > { %v5112_v10 = vmul.f32 %v4682_v61, %v2349_v51  ;;  %v1481_v63 = vadd.f32 %v6043_v33, %v1369_v41  ;;  %v5118_v21 = vmul.f32 %v4686_v48, %v2349_v51  ;;  %v5121_v62 = vmul.f32 %v4682_v61, %v2363_v52  ;;  %v6050_v7 = vld [vmem:[#allocation123_spill] sm:$0xff] }
 0x22e   : > { %2314 = vrot.lane.b32.xlu1 %v2309_v27, %s3280_s9  ;;  %2312 = vrot.lane.b32.xlu0 %v2308_v45, %s3280_s9  ;;  %v1574_v5 = vadd.f32 %v4723_v35, %v1468_v32  ;;  %v1573_v55 = vadd.f32 %v4736_v3, %v1467_v46  ;;  %v5128_v42 = vmul.f32 %v4686_v48, %v2363_v52  ;;  %v2377_v17 = vstv %s5068_s19  ;;  %v6044_v27 = vld [vmem:[#allocation92_spill] sm:$0xff]  ;;  %v6045_v45 = vld [vmem:[#allocation93_spill] sm:$0xff]  ;;  %s3066_s19 = sld [smem:[#allocation2 + $0x6b]] }
 0x22f   : > { %v1384_v47 = vadd.f32 %v6044_v27, %v4990_v49  ;;  %v1383_v51 = vadd.f32 %v6045_v45, %v4993_v0  ;;  %v1398_v16 = vadd.f32 %v6046_v4, %v5027_v1  ;;  %v1580_v40 = vadd.f32 %v6047_v12, %v1482_v22  ;;  %v6048_v3 = vld [vmem:[#allocation12_spill] sm:$0xff]  ;;  %v6049_v52 = vld [vmem:[#allocation13_spill] sm:$0xff] }
 0x230   : > { %v5138_v30 = vpop.permute.xlu1 %1821  ;;  %v5140_v35 = vpop.permute.xlu0 %1819  ;;  %v1630_v32 = vadd.f32 %v6048_v3, %v1574_v5  ;;  %v1629_v46 = vadd.f32 %v6049_v52, %v1573_v55  ;;  %v1616_v41 = vadd.f32 %v4869_v50, %v1566_v58  ;;  %v1615_v49 = vadd.f32 %v4871_v20, %v1565_v59  ;;  %v6051_v0 = vld [vmem:[#allocation124_spill] sm:$0xff]  ;;  %v6053_v20 = vld [vmem:[#allocation95_spill] sm:$0xff] }
 0x231   : > { %v1496_v33 = vadd.f32 %v6050_v7, %v1384_v47  ;;  %v1495_v27 = vadd.f32 %v6051_v0, %v1383_v51  ;;  %v6052_v45 = vld [vmem:[#allocation16_spill] sm:$0xff]  ;;  %v1397_v58 = vadd.f32 %v6053_v20, %v5030_v28  ;;  %v6054_v59 = vld [vmem:[#allocation131_spill] sm:$0xff]  ;;  %v6067_v20 = vld [vmem:[#allocation134_spill] sm:$0xff] }
 0x232   : > { %v1579_v1 = vadd.f32 %v6052_v45, %v1481_v63  ;;  %2328 = vrot.lane.b32.xlu1 %v2323_v39, %s3280_s9  ;;  %2326 = vrot.lane.b32.xlu0 %v2322_v53, %s3280_s9  ;;  %v1728_v22 = vadd.f32 %v4883_v11, %v1616_v41  ;;  %v1727_v5 = vadd.f32 %v4885_v8, %v1615_v49  ;;  %v6055_v11 = vld [vmem:[#allocation105_spill] sm:$0xff]  ;;  %v6056_v4 = vld [vmem:[#allocation108_spill] sm:$0xff] }
 0x233   : > { %v1742_v55 = vadd.f32 %v4918_v34, %v1630_v32  ;;  %v1741_v50 = vadd.f32 %v4920_v14, %v1629_v46  ;;  %v1510_v47 = vadd.f32 %v6054_v59, %v1398_v16  ;;  %v5159_v39 = vmul.f32 %v4682_v61, %v2377_v17  ;;  %v6057_v3 = vld [vmem:[#allocation132_spill] sm:$0xff]  ;;  %v6058_v32 = vld [vmem:[#allocation17_spill] sm:$0xff] }
 0x234   : > { %v1836_v51 = vpop.permute.xlu1 %1835  ;;  %v1834_v63 = vpop.permute.xlu0 %1833  ;;  %v5162_v53 = vmul.f32 %v4686_v48, %v2377_v17  ;;  %v1644_v8 = vadd.f32 %v6055_v11, %v1580_v40  ;;  %v1643_v34 = vadd.f32 %v6056_v4, %v1579_v1  ;;  %v1509_v28 = vadd.f32 %v6057_v3, %v1397_v58  ;;  %v6059_v52 = vld [vmem:[#allocation112_spill] sm:$0xff]  ;;  %v6069_v4 = vld [vmem:[#allocation99_spill] sm:$0xff] }
 0x235   : > { %v5166_v12 = vadd.f32 %v1836_v51, %v1728_v22  ;;  %v5168_v14 = vadd.f32 %v1834_v63, %v1727_v5  ;;  %v1586_v16 = vadd.f32 %v6058_v32, %v1496_v33  ;;  %v1585_v46 = vadd.f32 %v6059_v52, %v1495_v27  ;;  %v6060_v49 = vld [vmem:[#allocation96_spill] sm:$0xff]  ;;  %v6063_v27 = vld [vmem:[#allocation113_spill] sm:$0xff]  ;;  %v6070_v3 = vld [vmem:[#allocation135_spill] sm:$0xff] }
 0x236   : > { %2342 = vrot.lane.b32.xlu1 %v2337_v24, %s3280_s9  ;;  %2340 = vrot.lane.b32.xlu0 %v2336_v37, %s3280_s9  ;;  %v2441_v61 = vstv %s5123_s20  ;;  %v1756_v48 = vadd.f32 %v4956_v2, %v1644_v8  ;;  %v1755_v17 = vadd.f32 %v4958_v18, %v1643_v34  ;;  %v1849_v40 = vadd.f32 %v4946_v23, %v1742_v55  ;;  %v6061_v24 = vld [vmem:[#allocation97_spill] sm:$0xff]  ;;  %v6062_v37 = vld [vmem:[#allocation98_spill] sm:$0xff]  ;;  %v6065_v23 = vld [vmem:[#allocation15_spill] sm:$0xff]  ;;  %s5376_s20 = sld [smem:[#allocation2 + $0x15]] }
 0x237   : > { %v1848_v41 = vadd.f32 %v4949_v54, %v1741_v50  ;;  %v1412_v7 = vadd.f32 %v6060_v49, %v5053_v31  ;;  %v1411_v33 = vadd.f32 %v6061_v24, %v5056_v43  ;;  %v1426_v0 = vadd.f32 %v6062_v37, %v5061_v15  ;;  %v6064_v18 = vld [vmem:[#allocation14_spill] sm:$0xff]  ;;  %v5198_v31 = vld [vmem:[%s3392_s25 + $0x3a] sm:$0xff]  ;;  %v5201_v43 = vld [vmem:[%s3392_s25 + $0x32] sm:$0xff] }
 0x238   : > { %v1592_v45 = vadd.f32 %v6063_v27, %v1510_v47  ;;  %v1901_v1 = vpop.permute.xlu1 %1900  ;;  %v1899_v2 = vpop.permute.xlu0 %1898  ;;  %v1658_v22 = vadd.f32 %v6064_v18, %v1586_v16  ;;  %v1657_v5 = vadd.f32 %v6065_v23, %v1585_v46  ;;  %v6066_v50 = vld [vmem:[#allocation133_spill] sm:$0xff]  ;;  %v6068_v59 = vld [vmem:[#allocation20_spill] sm:$0xff]  ;;  %v1855_v11 = vadd.f32 %v4970_v44, %v1756_v48  ;;  %v6072_v52 = vld [vmem:[#allocation110_spill] sm:$0xff] }
 0x239   : > { %v5193_v54 = vadd.f32 %v1901_v1, %v1849_v40  ;;  %v5195_v55 = vadd.f32 %v1899_v2, %v1848_v41  ;;  %v1524_v15 = vadd.f32 %v6066_v50, %v1412_v7  ;;  %v1523_v58 = vadd.f32 %v6067_v20, %v1411_v33  ;;  %v6075_v41 = vld [vmem:[#allocation22_spill] sm:$0xff]  ;;  %v6076_v33 = vld [vmem:[#allocation27_spill] sm:$0xff]  ;;  %v6079_v2 = vld [vmem:[#allocation101_spill] sm:$0xff] }
 0x23a   : > { %v1591_v47 = vadd.f32 %v6068_v59, %v1509_v28  ;;  %2356 = vrot.lane.b32.xlu1 %v5112_v10, %s3280_s9  ;;  %2354 = vrot.lane.b32.xlu0 %v5118_v21, %s3280_s9  ;;  %v1770_v51 = vadd.f32 %v4995_v9, %v1658_v22  ;;  %v1769_v63 = vadd.f32 %v4997_v26, %v1657_v5  ;;  %v6071_v9 = vld [vmem:[#allocation109_spill] sm:$0xff]  ;;  %v6080_v18 = vld [vmem:[#allocation118_spill] sm:$0xff]  ;;  %v2455_v5 = vstv %s5189_s26  ;;  %v6083_v59 = vld [vmem:[#allocation11_spill] sm:$0xff]  ;;  %s5390_s26 = sld [smem:[#allocation2 + $0xa1]] }
 0x23b   : > { %v1854_v8 = vadd.f32 %v4973_v6, %v1755_v17  ;;  %v1425_v34 = vadd.f32 %v6069_v4, %v5064_v38  ;;  %v1538_v28 = vadd.f32 %v6070_v3, %v1426_v0  ;;  %v2443_v10 = vmul.f32 %v5198_v31, %v2441_v61  ;;  %v6073_v38 = vld [vmem:[#allocation136_spill] sm:$0xff]  ;;  %v6074_v17 = vld [vmem:[#allocation21_spill] sm:$0xff]  ;;  %v6081_v50 = vld [vmem:[#allocation18_spill] sm:$0xff] }
 0x23c   : > { %v1915_v32 = vpop.permute.xlu1 %1914  ;;  %v1913_v16 = vpop.permute.xlu0 %1912  ;;  %v2442_v21 = vmul.f32 %v5201_v43, %v2441_v61  ;;  %v1672_v26 = vadd.f32 %v6071_v9, %v1592_v45  ;;  %v1671_v44 = vadd.f32 %v6072_v52, %v1591_v47  ;;  %v1598_v40 = vadd.f32 %v6074_v17, %v1524_v15  ;;  %v6077_v0 = vld [vmem:[#allocation28_spill] sm:$0xff]  ;;  %v6086_v4 = vld [vmem:[#allocation29_spill] sm:$0xff]  ;;  %v6087_v3 = vld [vmem:[#allocation30_spill] sm:$0xff] }
 0x23d   : > { %v5223_v46 = vadd.f32 %v1915_v32, %v1855_v11  ;;  %v5225_v6 = vadd.f32 %v1913_v16, %v1854_v8  ;;  %v1537_v48 = vadd.f32 %v6073_v38, %v1425_v34  ;;  %v1597_v49 = vadd.f32 %v6075_v41, %v1523_v58  ;;  %v6078_v45 = vld [vmem:[#allocation100_spill] sm:$0xff]  ;;  %v6089_v17 = vld [vmem:[#allocation117_spill] sm:$0xff] }
 0x23e   : > { %2370 = vrot.lane.b32.xlu1 %v5121_v62, %s3280_s9  ;;  %2368 = vrot.lane.b32.xlu0 %v5128_v42, %s3280_s9  ;;  %v1875_v61 = vstv %s5176_s24  ;;  %v1784_v7 = vadd.f32 %v5032_v60, %v1672_v26  ;;  %v1783_v24 = vadd.f32 %v5034_v13, %v1671_v44  ;;  %v1861_v37 = vadd.f32 %v6076_v33, %v1770_v51  ;;  %v6082_v60 = vld [vmem:[#allocation19_spill] sm:$0xff]  ;;  %v3171_v9 = vld [vmem:[%s3392_s25 + $0x38] sm:$0xff]  ;;  %v6090_v41 = vld [vmem:[#allocation25_spill] sm:$0xff]  ;;  %s5388_s24 = sld [smem:[#allocation2 + $0x30]] }
 0x23f   : > { %v1860_v27 = vadd.f32 %v6077_v0, %v1769_v63  ;;  %v1440_v1 = vadd.f32 %v6078_v45, %v5087_v29  ;;  %v1439_v62 = vadd.f32 %v6079_v2, %v5100_v25  ;;  %v1604_v22 = vadd.f32 %v6080_v18, %v1538_v28  ;;  %v6084_v29 = vld [vmem:[#allocation104_spill] sm:$0xff]  ;;  %v6085_v25 = vld [vmem:[#allocation119_spill] sm:$0xff] }
 0x240   : > { %v1929_v42 = vpop.permute.xlu1 %1928  ;;  %v1927_v23 = vpop.permute.xlu0 %1926  ;;  %v1686_v15 = vadd.f32 %v6081_v50, %v1598_v40  ;;  %v1685_v20 = vadd.f32 %v6082_v60, %v1597_v49  ;;  %v1603_v63 = vadd.f32 %v6085_v25, %v1537_v48  ;;  %v1867_v34 = vadd.f32 %v6086_v4, %v1784_v7  ;;  %v6088_v38 = vld [vmem:[#allocation116_spill] sm:$0xff]  ;;  %v6091_v7 = vld [vmem:[#allocation26_spill] sm:$0xff] }
 0x241   : > { %v5249_v13 = vadd.f32 %v1929_v42, %v1861_v37  ;;  %v5251_v58 = vadd.f32 %v1927_v23, %v1860_v27  ;;  %v1552_v47 = vadd.f32 %v6083_v59, %v1440_v1  ;;  %v1551_v51 = vadd.f32 %v6084_v29, %v1439_v62  ;;  %v6092_v27 = vld [vmem:[#allocation31_spill] sm:$0xff]  ;;  %v6093_v1 = vld [vmem:[#allocation38_spill] sm:$0xff]  ;;  %v6095_v23 = vld [vmem:[#allocation24_spill] sm:$0xff] }
 0x242   : > { %2384 = vrot.lane.b32.xlu1 %v5159_v39, %s3280_s9  ;;  %2382 = vrot.lane.b32.xlu0 %v5162_v53, %s3280_s9  ;;  %v1798_v11 = vadd.f32 %v5072_v36, %v1686_v15  ;;  %v1797_v8 = vadd.f32 %v5074_v56, %v1685_v20  ;;  %v1866_v28 = vadd.f32 %v6087_v3, %v1783_v24  ;;  %v3172_v53 = vld [vmem:[%s3392_s25 + $0x30] sm:$0xff]  ;;  %v1881_v44 = vstv %s5219_s28  ;;  %s5403_s28 = sld [smem:[#allocation2 + $0xbc]] }
 0x243   : > { %v2457_v39 = vmul.f32 %v5198_v31, %v2455_v5  ;;  %v1877_v26 = vmul.f32 %v3171_v9, %v1875_v61  ;;  %v1876_v52 = vmul.f32 %v3172_v53, %v1875_v61  ;;  %v1700_v48 = vadd.f32 %v6088_v38, %v1604_v22 }
 0x244   : > { %v1943_v32 = vpop.permute.xlu1 %1942  ;;  %v1941_v16 = vpop.permute.xlu0 %1940  ;;  %v1699_v36 = vadd.f32 %v6089_v17, %v1603_v63  ;;  %v1610_v49 = vadd.f32 %v6090_v41, %v1552_v47  ;;  %v1609_v24 = vadd.f32 %v6091_v7, %v1551_v51  ;;  %v2456_v33 = vmul.f32 %v5201_v43, %v2455_v5 }
 0x245   : > { %v5274_v40 = vadd.f32 %v1943_v32, %v1867_v34  ;;  %v5276_v56 = vadd.f32 %v1941_v16, %v1866_v28  ;;  %v2469_v61 = vstv %s5235_s29  ;;  %v1812_v37 = vadd.f32 %v5103_v19, %v1700_v48  ;;  %s5405_s29 = sld [smem:[#allocation2 + $0x4b]] }
 0x246   : > { %2448 = vrot.lane.b32.xlu1 %v2443_v10, %s3279_s27  ;;  %2446 = vrot.lane.b32.xlu0 %v2442_v21, %s3279_s27  ;;  %v1811_v0 = vadd.f32 %v5105_v57, %v1699_v36  ;;  %v1873_v45 = vadd.f32 %v6092_v27, %v1798_v11  ;;  %v1872_v2 = vadd.f32 %v6093_v1, %v1797_v8  ;;  %v6094_v21 = vld [vmem:[#allocation23_spill] sm:$0xff]  ;;  %v2483_v60 = vstv %s5260_s30  ;;  %s5428_s30 = sld [smem:[#allocation2 + $0xd7]] }
 0x247   : > { %v1883_v10 = vmul.f32 %v3171_v9, %v1881_v44  ;;  %v1882_v22 = vmul.f32 %v3172_v53, %v1881_v44  ;;  %v1714_v42 = vadd.f32 %v6094_v21, %v1610_v49  ;;  %v1713_v5 = vadd.f32 %v6095_v23, %v1609_v24 }
 0x248   : > { %v1957_v62 = vpop.permute.xlu1 %1956  ;;  %v1955_v18 = vpop.permute.xlu0 %1954  ;;  %v2471_v57 = vmul.f32 %v5198_v31, %v2469_v61  ;;  %v2470_v15 = vmul.f32 %v5201_v43, %v2469_v61  ;;  %v1887_v20 = vstv %s5262_s4  ;;  %v1879_v29 = vadd.f32 %v1877_v26, %v1812_v37  ;;  %s5430_s4 = sld [smem:[#allocation2 + $0x66]] }
 0x249   : > { %v5292_v50 = vadd.f32 %v1957_v62, %v1873_v45  ;;  %v5294_v19 = vadd.f32 %v1955_v18, %v1872_v2  ;;  %v1826_v59 = vadd.f32 %v5138_v30, %v1714_v42  ;;  %v1825_v47 = vadd.f32 %v5140_v35, %v1713_v5 }
 0x24a   : > { %2462 = vrot.lane.b32.xlu1 %v2457_v39, %s3279_s27  ;;  %2460 = vrot.lane.b32.xlu0 %v2456_v33, %s3279_s27  ;;  %v1878_v51 = vadd.f32 %v1876_v52, %v1811_v0  ;;  %v2485_v4 = vmul.f32 %v5198_v31, %v2483_v60  ;;  %v2484_v30 = vmul.f32 %v5201_v43, %v2483_v60  ;;  %v2497_v32 = vstv %s5288_s5  ;;  %s5464_s5 = sld [smem:[#allocation2 + $0x9c]] }
 0x24b   : > { %v1889_v35 = vmul.f32 %v3171_v9, %v1887_v20  ;;  %v1885_v34 = vadd.f32 %v1883_v10, %v1826_v59  ;;  %v1884_v3 = vadd.f32 %v1882_v22, %v1825_v47  ;;  %v1888_v28 = vmul.f32 %v3172_v53, %v1887_v20 }
 0x24c   : > { %v1971_v25 = vpop.permute.xlu1 %1970  ;;  %v1969_v63 = vpop.permute.xlu0 %1968  ;;  %v2499_v44 = vmul.f32 %v5198_v31, %v2497_v32  ;;  %v2498_v9 = vmul.f32 %v5201_v43, %v2497_v32  ;;  %v2511_v48 = vstv %s5304_s6  ;;  %v2525_v33 = vstv %s3061_s7  ;;  %s3027_s6 = sld [smem:[#allocation2 + $0xb7]]  ;;  %s3028_s7 = sld [smem:[#allocation2 + $0xd2]] }
 0x24d   : > { %v5306_v11 = vadd.f32 %v1971_v25, %v1879_v29  ;;  %v5308_v8 = vadd.f32 %v1969_v63, %v1878_v51  ;;  %v1891_v38 = vadd.f32 %v1889_v35, %v5166_v12  ;;  %v1890_v53 = vadd.f32 %v1888_v28, %v5168_v14 }
 0x24e   : > { %2476 = vrot.lane.b32.xlu1 %v2471_v57, %s3279_s27  ;;  %2474 = vrot.lane.b32.xlu0 %v2470_v15, %s3279_s27  ;;  %v2513_v7 = vmul.f32 %v5198_v31, %v2511_v48  ;;  %v2512_v24 = vmul.f32 %v5201_v43, %v2511_v48  ;;  %v2527_v0 = vmul.f32 %v5198_v31, %v2525_v33  ;;  %v2539_v45 = vstv %s3062_s8  ;;  %v5424_v48 = vld [vmem:[%s3392_s25 + $0x31] sm:$0xff]  ;;  %s3048_s8 = sld [smem:[#allocation2 + $0x33]] }
 0x24f   : > { %v2526_v27 = vmul.f32 %v5201_v43, %v2525_v33  ;;  %v2540_v18 = vmul.f32 %v5201_v43, %v2539_v45  ;;  %v2553_v10 = vstv %s3063_s10  ;;  %v2567_v5 = vstv %s3064_s11  ;;  %s5556_s10 = sld [smem:[#allocation2 + $0x4e]]  ;;  %s5558_s11 = sld [smem:[#allocation2 + $0x69]] }
 0x250   : > { %v1985_v16 = vpop.permute.xlu1 %1984  ;;  %v1983_v39 = vpop.permute.xlu0 %1982  ;;  %v2554_v23 = vmul.f32 %v5201_v43, %v2553_v10  ;;  %v2568_v20 = vmul.f32 %v5201_v43, %v2567_v5  ;;  %v2581_v59 = vstv %s3065_s17  ;;  %v2595_v63 = vstv %s3066_s19  ;;  %s5569_s17 = sld [smem:[#allocation5]]  ;;  %s5574_s19 = sld [smem:[#allocation2 + $0x84]] }
 0x251   : > { %v5315_v26 = vadd.f32 %v1985_v16, %v1885_v34  ;;  %v5317_v52 = vadd.f32 %v1983_v39, %v1884_v3  ;;  %v2583_v51 = vmul.f32 %v5198_v31, %v2581_v59  ;;  %v2582_v25 = vmul.f32 %v5201_v43, %v2581_v59 }
 0x252   : > { %2490 = vrot.lane.b32.xlu1 %v2485_v4, %s3279_s27  ;;  %2488 = vrot.lane.b32.xlu0 %v2484_v30, %s3279_s27  ;;  %v2597_v35 = vmul.f32 %v5198_v31, %v2595_v63  ;;  %v2596_v34 = vmul.f32 %v5201_v43, %v2595_v63  ;;  %v2119_v28 = vstv %s5376_s20  ;;  %s5588_s20 = sld [smem:[#allocation2 + $0x9f]] }
 0x254   : > { %v1999_v17 = vpop.permute.xlu1 %1998  ;;  %v1997_v36 = vpop.permute.xlu0 %1996 }
 0x255   : > { %v5326_v41 = vadd.f32 %v1999_v17, %v1891_v38  ;;  %v5328_v49 = vadd.f32 %v1997_v36, %v1890_v53  ;;  %v5420_v38 = vld [vmem:[%s3392_s25 + $0x39] sm:$0xff]  ;;  %s5448_s25 = sld [smem:[#allocation2 + $0x81]] }
 0x256   : > { %2504 = vrot.lane.b32.xlu1 %v2499_v44, %s3279_s27  ;;  %2502 = vrot.lane.b32.xlu0 %v2498_v9, %s3279_s27  ;;  %v2125_v9 = vstv %s5388_s24  ;;  %v2121_v53 = vmul.f32 %v5420_v38, %v2119_v28  ;;  %s188_s24 = sand.u32 1, %s3267_s13  }
 0x257   : > { %v2127_v33 = vmul.f32 %v5420_v38, %v2125_v9 }
 0x258   : > { %v2013_v12 = vpop.permute.xlu1 %2012  ;;  %v2011_v14 = vpop.permute.xlu0 %2010 }
 0x259   : > { %v5335_v61 = vadd.f32 %v2013_v12, %v5193_v54  ;;  %v5338_v37 = vadd.f32 %v2011_v14, %v5195_v55  ;;  %v2541_v55 = vmul.f32 %v5198_v31, %v2539_v45  ;;  %v2637_v45 = vstv %s5403_s28  ;;  %s5601_s28 = sshll.u32 %s188_s24, 7 }
 0x25a   : > { %2518 = vrot.lane.b32.xlu1 %v2513_v7, %s3279_s27  ;;  %2516 = vrot.lane.b32.xlu0 %v2512_v24, %s3279_s27 }
 0x25c   : > { %v2027_v1 = vpop.permute.xlu1 %2026  ;;  %v2025_v2 = vpop.permute.xlu0 %2024 }
 0x25d   : > { %v5345_v62 = vadd.f32 %v2027_v1, %v5223_v46  ;;  %v5348_v54 = vadd.f32 %v2025_v2, %v5225_v6  ;;  %v2555_v6 = vmul.f32 %v5198_v31, %v2553_v10 }
 0x25e   : > { %2532 = vrot.lane.b32.xlu1 %v2527_v0, %s3279_s27  ;;  %2530 = vrot.lane.b32.xlu0 %v2526_v27, %s3279_s27  ;;  %v2126_v0 = vmul.f32 %v5424_v48, %v2125_v9  ;;  %v2123_v27 = vadd.f32 %v2121_v53, %v5335_v61  ;;  %v2639_v61 = vmul.f32 %v5198_v31, %v2637_v45 }
 0x260   : > { %v2041_v22 = vpop.permute.xlu1 %2040  ;;  %v2039_v21 = vpop.permute.xlu0 %2038 }
 0x261   : > { %v5355_v42 = vadd.f32 %v2041_v22, %v5249_v13  ;;  %v5358_v46 = vadd.f32 %v2039_v21, %v5251_v58  ;;  %v2569_v58 = vmul.f32 %v5198_v31, %v2567_v5  ;;  %v2129_v22 = vadd.f32 %v2127_v33, %v5345_v62 }
 0x262   : > { %2546 = vrot.lane.b32.xlu1 %v2541_v55, %s3279_s27  ;;  %2544 = vrot.lane.b32.xlu0 %v2540_v18, %s3279_s27  ;;  %s5374_s27 = sld [smem:[#allocation2 + $0x86]]  ;;  %v2128_v21 = vadd.f32 %v2126_v0, %v5348_v54 }
 0x264   : > { %v2055_v57 = vpop.permute.xlu1 %2054  ;;  %v2053_v15 = vpop.permute.xlu0 %2052 }
 0x265   : > { %v5365_v60 = vadd.f32 %v2055_v57, %v5274_v40  ;;  %v5368_v13 = vadd.f32 %v2053_v15, %v5276_v56  ;;  %v2137_v15 = vstv %s5430_s4  ;;  %s5617_s4 = sld [smem:[#allocation2 + $0xd5]] }
 0x266   : > { %2560 = vrot.lane.b32.xlu1 %v2555_v6, %s3280_s9  ;;  %2558 = vrot.lane.b32.xlu0 %v2554_v23, %s3280_s9  ;;  %v2651_v23 = vstv %s5428_s30  ;;  %s5608_s30 = sld [smem:[#allocation5 + $0x3]] }
 0x267   : > { %v2653_v62 = vmul.f32 %v5198_v31, %v2651_v23  ;;  %v2652_v54 = vmul.f32 %v5201_v43, %v2651_v23 }
 0x268   : > { %v2069_v47 = vpop.permute.xlu1 %2068  ;;  %v2067_v29 = vpop.permute.xlu0 %2066  ;;  %v2609_v3 = vstv %s5374_s27  ;;  %s5576_s27 = sld [smem:[#allocation5 + $0x1]] }
 0x269   : > { %v5379_v40 = vadd.f32 %v2069_v47, %v5292_v50  ;;  %v5382_v56 = vadd.f32 %v2067_v29, %v5294_v19  ;;  %v2611_v39 = vmul.f32 %v5198_v31, %v2609_v3  ;;  %v2610_v44 = vmul.f32 %v5201_v43, %v2609_v3 }
 0x26a   : > { %2574 = vrot.lane.b32.xlu1 %v2569_v58, %s3280_s9  ;;  %2572 = vrot.lane.b32.xlu0 %v2568_v20, %s3280_s9  ;;  %v2139_v29 = vmul.f32 %v5420_v38, %v2137_v15 }
 0x26c   : > { %v2083_v50 = vpop.permute.xlu1 %2082  ;;  %v2081_v4 = vpop.permute.xlu0 %2080 }
 0x26d   : > { %v5393_v19 = vadd.f32 %v2083_v50, %v5306_v11  ;;  %v5396_v30 = vadd.f32 %v2081_v4, %v5308_v8  ;;  %v2143_v50 = vstv %s5448_s25  ;;  %s5620_s25 = sld [smem:[#allocation5 + $0x4]] }
 0x26e   : > { %2588 = vrot.lane.b32.xlu1 %v2583_v51, %s3280_s9  ;;  %2586 = vrot.lane.b32.xlu0 %v2582_v25, %s3280_s9  ;;  %v2138_v51 = vmul.f32 %v5424_v48, %v2137_v15  ;;  %v2144_v3 = vmul.f32 %v5424_v48, %v2143_v50 }
 0x270   : > { %v2097_v11 = vpop.permute.xlu1 %2096  ;;  %v2095_v8 = vpop.permute.xlu0 %2094  ;;  %v2146_v53 = vadd.f32 %v2144_v3, %v5382_v56 }
 0x271   : > { %v5409_v32 = vadd.f32 %v2097_v11, %v5315_v26  ;;  %v5412_v16 = vadd.f32 %v2095_v8, %v5317_v52  ;;  %v2120_v26 = vmul.f32 %v5424_v48, %v2119_v28  ;;  %v2623_v52 = vstv %s5390_s26  ;;  %s5591_s26 = sld [smem:[#allocation5 + $0x2]] }
 0x272   : > { %2602 = vrot.lane.b32.xlu1 %v2597_v35, %s3280_s9  ;;  %2600 = vrot.lane.b32.xlu0 %v2596_v34, %s3280_s9  ;;  %v2625_v12 = vmul.f32 %v5198_v31, %v2623_v52  ;;  %v2624_v14 = vmul.f32 %v5201_v43, %v2623_v52  ;;  %v2145_v34 = vmul.f32 %v5420_v38, %v2143_v50  ;;  %v2149_v28 = vstv %s5464_s5  ;;  %s5625_s5 = scalar_lea.vmem [#allocation7], %s5601_s28 }
 0x274   : > { %v2111_v17 = vpop.permute.xlu1 %2110  ;;  %v2109_v36 = vpop.permute.xlu0 %2108  ;;  %v2147_v9 = vadd.f32 %v2145_v34, %v5379_v40 }
 0x275   : > { %v5433_v7 = vadd.f32 %v2111_v17, %v5326_v41  ;;  %v5436_v24 = vadd.f32 %v2109_v36, %v5328_v49  ;;  %v2122_v41 = vadd.f32 %v2120_v26, %v5338_v37  ;;  %v2131_v49 = vstv %s5405_s29  ;;  %s5605_s29 = sld [smem:[#allocation2 + $0xba]] }
 0x276   : > { %2616 = vrot.lane.b32.xlu1 %v2611_v39, %s3280_s9  ;;  %2614 = vrot.lane.b32.xlu0 %v2610_v44, %s3280_s9  ;;  %v2638_v37 = vmul.f32 %v5201_v43, %v2637_v45  ;;  %v2133_v10 = vmul.f32 %v5420_v38, %v2131_v49  ;;  %v2132_v6 = vmul.f32 %v5424_v48, %v2131_v49  ;;  %v2155_v17 = vstv %s3027_s6  ;;  %s5639_s6 = sld [smem:[#allocation5 + $0x5]] }
 0x277   : > { %v2157_v0 = vmul.f32 %v5420_v38, %v2155_v17  ;;  %v2156_v40 = vmul.f32 %v5424_v48, %v2155_v17 }
 0x278   : > { %v2175_v1 = vpop.permute.xlu1 %2174  ;;  %v2173_v2 = vpop.permute.xlu0 %2172  ;;  %v2135_v59 = vadd.f32 %v2133_v10, %v5355_v42  ;;  %v2134_v47 = vadd.f32 %v2132_v6, %v5358_v46  ;;  %v2141_v42 = vadd.f32 %v2139_v29, %v5365_v60  ;;  %v2140_v46 = vadd.f32 %v2138_v51, %v5368_v13 }
 0x279   : > { %v5450_v55 = vadd.f32 %v2175_v1, %v2123_v27  ;;  %v5452_v18 = vadd.f32 %v2173_v2, %v2122_v41  ;;  %v2151_v60 = vmul.f32 %v5420_v38, %v2149_v28  ;;  %v2150_v13 = vmul.f32 %v5424_v48, %v2149_v28 }
 0x27a   : > { %2630 = vrot.lane.b32.xlu1 %v2625_v12, %s3280_s9  ;;  %2628 = vrot.lane.b32.xlu0 %v2624_v14, %s3280_s9  ;;  %v2161_v41 = vstv %s3028_s7  ;;  %v2159_v1 = vadd.f32 %v2157_v0, %v5409_v32  ;;  %v2158_v2 = vadd.f32 %v2156_v40, %v5412_v16  ;;  %s5665_s7 = sld [smem:[#allocation5 + $0x6]] }
 0x27b   : > { %v2153_v12 = vadd.f32 %v2151_v60, %v5393_v19  ;;  %v2152_v14 = vadd.f32 %v2150_v13, %v5396_v30  ;;  %v2162_v19 = vmul.f32 %v5424_v48, %v2161_v41 }
 0x27c   : > { %v2189_v5 = vpop.permute.xlu1 %2188  ;;  %v2187_v57 = vpop.permute.xlu0 %2186 }
 0x27d   : > { %v5466_v58 = vadd.f32 %v2189_v5, %v2129_v22  ;;  %v5468_v20 = vadd.f32 %v2187_v57, %v2128_v21  ;;  %v2164_v6 = vadd.f32 %v2162_v19, %v5436_v24  ;;  %v2411_v19 = vstv %s5558_s11 }
 0x27e   : > { %2644 = vrot.lane.b32.xlu1 %v2639_v61, %s3280_s9  ;;  %2642 = vrot.lane.b32.xlu0 %v2638_v37, %s3280_s9  ;;  %v2163_v61 = vmul.f32 %v5420_v38, %v2161_v41  ;;  %v2399_v41 = vstv %s3048_s8  ;;  %s3097_s8 = sshll.u32 %s3325_s16, 11  ;;  %s5715_s16 = scalar_lea.sflag [#allocation3], %s188_s24 }
 0x280   : > { %v2203_v25 = vpop.permute.xlu1 %2202  ;;  %v2201_v63 = vpop.permute.xlu0 %2200  ;;  %v2165_v21 = vadd.f32 %v2163_v61, %v5433_v7  ;;  %v2405_v61 = vstv %s5556_s10  ;;  %s2750_s10 = sshll.u32 %s5625_s5, 4  ;;  %s5707_s10 = int_to_ptr.vmem [resolvable:$true] %s2750_s10 }
 0x281   : > { %v5479_v4 = vadd.f32 %v2203_v25, %v2135_v59  ;;  %v5481_v35 = vadd.f32 %v2201_v63, %v2134_v47 }
 0x282   : > { %2658 = vrot.lane.b32.xlu1 %v2653_v62, %s3280_s9  ;;  %2656 = vrot.lane.b32.xlu0 %v2652_v54, %s3280_s9  ;;  %s3047_s9 = sld [smem:[#allocation2 + $0x18]] }
 0x284   : > { %v2217_v11 = vpop.permute.xlu1 %2216  ;;  %v2215_v8 = vpop.permute.xlu0 %2214 }
 0x285   : > { %v5490_v39 = vadd.f32 %v2217_v11, %v2141_v42  ;;  %v5492_v44 = vadd.f32 %v2215_v8, %v2140_v46 }
 0x288   : > { %v2231_v26 = vpop.permute.xlu1 %2230  ;;  %v2229_v52 = vpop.permute.xlu0 %2228  ;;  %v2393_v17 = vstv %s3047_s9  ;;  %s5680_s9 = sld [smem:[#allocation5 + $0x7]] }
 0x289   : > { %v5498_v36 = vadd.f32 %v2231_v26, %v2147_v9  ;;  %v5500_v33 = vadd.f32 %v2229_v52, %v2146_v53 }
 0x28c   : > { %v2245_v56 = vpop.permute.xlu1 %2244  ;;  %v2243_v27 = vpop.permute.xlu0 %2242 }
 0x28d   : > { %v5506_v45 = vadd.f32 %v2245_v56, %v2153_v12  ;;  %v5508_v49 = vadd.f32 %v2243_v27, %v2152_v14  ;;  %v2395_v12 = vmul.f32 %v5198_v31, %v2393_v17  ;;  %v2394_v27 = vmul.f32 %v5201_v43, %v2393_v17 }
 0x290   : > { %v2259_v30 = vpop.permute.xlu1 %2258  ;;  %v2257_v37 = vpop.permute.xlu0 %2256 }
 0x291   : > { %v5514_v10 = vadd.f32 %v2259_v30, %v2159_v1  ;;  %v5516_v22 = vadd.f32 %v2257_v37, %v2158_v2  ;;  %v2401_v1 = vmul.f32 %v5198_v31, %v2399_v41  ;;  %v2400_v2 = vmul.f32 %v5201_v43, %v2399_v41 }
 0x292   : > { %v2417_v41 = vstv %s5574_s19  ;;  %s5705_s19 = scalar_lea.hbm %s5759_s3, %s3097_s8 }
 0x294   : > { %v2273_v23 = vpop.permute.xlu1 %2272  ;;  %v2271_v5 = vpop.permute.xlu0 %2270 }
 0x295   : > { %v5520_v57 = vadd.f32 %v2273_v23, %v2165_v21  ;;  %v5522_v32 = vadd.f32 %v2271_v5, %v2164_v6 }
 0x298   : > { %v2287_v16 = vpop.permute.xlu1 %2286  ;;  %v2285_v38 = vpop.permute.xlu0 %2284 }
 0x299   : > { %v2291_v40 = vadd.f32 %v2287_v16, %v5450_v55  ;;  %v2290_v56 = vadd.f32 %v2285_v38, %v5452_v18  ;;  %v2407_v16 = vmul.f32 %v5198_v31, %v2405_v61  ;;  %v2406_v38 = vmul.f32 %v5201_v43, %v2405_v61 }
 0x29b   : > { %v2397_v21 = vadd.f32 %v2395_v12, %v2291_v40  ;;  %v2396_v6 = vadd.f32 %v2394_v27, %v2290_v56  ;;  %v2412_v27 = vmul.f32 %v5201_v43, %v2411_v19 }
 0x29c   : > { %v2301_v15 = vpop.permute.xlu1 %2300  ;;  %v2299_v48 = vpop.permute.xlu0 %2298 }
 0x29d   : > { %v2305_v18 = vadd.f32 %v2301_v15, %v5466_v58  ;;  %v2304_v37 = vadd.f32 %v2299_v48, %v5468_v20  ;;  %v2413_v15 = vmul.f32 %v5198_v31, %v2411_v19  ;;  %v2665_v48 = vstv %s5569_s17 }
 0x29f   : > { %v2403_v40 = vadd.f32 %v2401_v1, %v2305_v18  ;;  %v2402_v56 = vadd.f32 %v2400_v2, %v2304_v37 }
 0x2a0   : > { %v2315_v62 = vpop.permute.xlu1 %2314  ;;  %v2313_v54 = vpop.permute.xlu0 %2312 }
 0x2a1   : > { %v2319_v58 = vadd.f32 %v2315_v62, %v5479_v4  ;;  %v2318_v20 = vadd.f32 %v2313_v54, %v5481_v35  ;;  %v2674_v4 = vstv %s5576_s27  ;;  %s3205_s27 = scalar_lea.vmem %s5707_s10, 2048 }
 0x2a2   : > { %p3206_p10 = scmp.ne.s32.totalorder %s5707_s10, %s3205_s27 }
 0x2a3   : > { %v2409_v19 = vadd.f32 %v2407_v16, %v2319_v58  ;;  %v2408_v18 = vadd.f32 %v2406_v38, %v2318_v20 }
 0x2a4   : > { %v5524_v59 = vpop.permute.xlu1 %2328  ;;  %v5526_v47 = vpop.permute.xlu0 %2326  ;;  %p3207_p0 = pnand %p3206_p10, %p6096_p12 }
 0x2a5   : > { %v2333_v2 = vadd.f32 %v5524_v59, %v5490_v39  ;;  %v2332_v61 = vadd.f32 %v5526_v47, %v5492_v44  ;;  %v2683_v39 = vstv %s5591_s26 }
 0x2a6   : > { %p3208_p7 = pneg %p3207_p0 }
 0x2a7   : > { %v2414_v58 = vadd.f32 %v2412_v27, %v2332_v61 }
 0x2a8   : > { %v5528_v29 = vpop.permute.xlu1 %2342  ;;  %v5530_v7 = vpop.permute.xlu0 %2340 }
 0x2a9   : > { %v2347_v38 = vadd.f32 %v5528_v29, %v5498_v36 }
 0x2ac   : > { %v5532_v24 = vpop.permute.xlu1 %2356  ;;  %v5534_v51 = vpop.permute.xlu0 %2354 }
 0x2ad   : > { %v2360_v27 = vadd.f32 %v5534_v51, %v5508_v49 }
 0x2b0   : > { %v5536_v25 = vpop.permute.xlu1 %2370  ;;  %v5538_v63 = vpop.permute.xlu0 %2368 }
 0x2b4   : > { %v5540_v50 = vpop.permute.xlu1 %2384  ;;  %v5542_v42 = vpop.permute.xlu0 %2382 }
 0x2b8   : > { %v2449_v46 = vpop.permute.xlu1 %2448  ;;  %v2447_v34 = vpop.permute.xlu0 %2446 }
 0x2b9   : > { %v2453_v23 = vadd.f32 %v2449_v46, %v2397_v21  ;;  %v2452_v5 = vadd.f32 %v2447_v34, %v2396_v6 }
 0x2bc   : > { %v2463_v3 = vpop.permute.xlu1 %2462  ;;  %v2461_v11 = vpop.permute.xlu0 %2460 }
 0x2bd   : > { %v2467_v35 = vadd.f32 %v2463_v3, %v2403_v40  ;;  %v2466_v62 = vadd.f32 %v2461_v11, %v2402_v56  ;;  %v2419_v11 = vmul.f32 %v5198_v31, %v2417_v41 }
 0x2c0   : > { %v5544_v8 = vpop.permute.xlu1 %2476  ;;  %v5546_v28 = vpop.permute.xlu0 %2474 }
 0x2c1   : > { %v2481_v44 = vadd.f32 %v5544_v8, %v2409_v19  ;;  %v2480_v59 = vadd.f32 %v5546_v28, %v2408_v18  ;;  %v2346_v8 = vadd.f32 %v5530_v7, %v5500_v33  ;;  %v2415_v28 = vadd.f32 %v2413_v15, %v2333_v2 }
 0x2c2   : > { %v2361_v15 = vadd.f32 %v5532_v24, %v5506_v45 }
 0x2c4   : > { %v5548_v9 = vpop.permute.xlu1 %2490  ;;  %v5550_v53 = vpop.permute.xlu0 %2488 }
 0x2c5   : > { %v2495_v36 = vadd.f32 %v5548_v9, %v2415_v28  ;;  %v2494_v33 = vadd.f32 %v5550_v53, %v2414_v58 }
 0x2c8   : > { %v5552_v60 = vpop.permute.xlu1 %2504  ;;  %v5554_v13 = vpop.permute.xlu0 %2502 }
 0x2cc   : > { %v5560_v26 = vpop.permute.xlu1 %2518  ;;  %v5562_v52 = vpop.permute.xlu0 %2516 }
 0x2d0   : > { %v5565_v14 = vpop.permute.xlu1 %2532  ;;  %v5567_v0 = vpop.permute.xlu0 %2530 }
 0x2d4   : > { %v5582_v30 = vpop.permute.xlu1 %2546  ;;  %v5584_v55 = vpop.permute.xlu0 %2544 }
 0x2d8   : > { %v2561_v17 = vpop.permute.xlu1 %2560  ;;  %v2559_v12 = vpop.permute.xlu0 %2558 }
 0x2d9   : > { %v2565_v46 = vadd.f32 %v2561_v17, %v2453_v23  ;;  %v2564_v34 = vadd.f32 %v2559_v12, %v2452_v5  ;;  %v2418_v17 = vmul.f32 %v5201_v43, %v2417_v41 }
 0x2db   : > { %v2667_v54 = vadd.f32 %v2665_v48, %v2565_v46  ;;  %v2666_v1 = vadd.f32 %v2665_v48, %v2564_v34  ;;  %v2423_v48 = vstv %s5588_s20  ;;  %v2420_v9 = vadd.f32 %v2418_v17, %v2346_v8  ;;  %s3281_s20 = smov [#allocation7]  }
 0x2dc   : > { %v2575_v37 = vpop.permute.xlu1 %2574  ;;  %v2573_v21 = vpop.permute.xlu0 %2572  ;;  %v2425_v41 = vmul.f32 %v5198_v31, %v2423_v48  ;;  %v2389_v8 = vadd.f32 %v5540_v50, %v5520_v57  ;;  %s3209_s26 = sshll.u32 %s3281_s20, 4  ;;  %s3210_s26 = int_to_ptr.vmem [resolvable:$false] %s3209_s26 }
 0x2dd   : > { %v2669_v6 = vmin.f32 %v2667_v54, 0.3  ;;  %v2668_v23 = vmin.f32 %v2666_v1, 0.3  ;;  %v2579_v5 = vadd.f32 %v2575_v37, %v2467_v35  ;;  %v2578_v3 = vadd.f32 %v2573_v21, %v2466_v62  ;;  %s3211_s28 = scalar_lea.vmem %s3210_s26, 4096  ;;  %p3212_p8 = scmp.lt.s32.totalorder %s5707_s10, %s3210_s26 }
 0x2de   : > { %v2429_v35 = vstv %s5605_s29  ;;  %v2692_v62 = vstv %s5608_s30  ;;  %v2421_v54 = vadd.f32 %v2419_v11, %v2347_v38  ;;  %v2508_v24 = vadd.f32 %v5554_v13, %v2420_v9  ;;  %p3213_p11 = scmp.lt.s32.totalorder %s3211_s28, %s3205_s27 }
 0x2df   : > { %2672 = vst.msk [vmem:[%s5625_s5 + $0x8] sm:$0xff] %vm2670_vm0, %v2669_v6  ;;  %2671 = vst.msk [vmem:[%s5625_s5] sm:$0xff] %vm2670_vm0, %v2668_v23  ;;  %v2676_v47 = vadd.f32 %v2674_v4, %v2579_v5  ;;  %v2675_v16 = vadd.f32 %v2674_v4, %v2578_v3  ;;  %v2424_v4 = vmul.f32 %v5201_v43, %v2423_v48  ;;  %v2435_v6 = vstv %s5617_s4 }
 0x2e0   : > { %v2589_v20 = vpop.permute.xlu1 %2588  ;;  %v2587_v12 = vpop.permute.xlu0 %2586  ;;  %v2431_v37 = vmul.f32 %v5198_v31, %v2429_v35  ;;  %v2430_v21 = vmul.f32 %v5201_v43, %v2429_v35  ;;  %v2701_v23 = vstv %s5620_s25  ;;  %v2509_v45 = vadd.f32 %v5552_v60, %v2421_v54  ;;  %p3214_p13 = por %p3213_p11, %p3212_p8 }
 0x2e1   : > { %v2678_v40 = vmin.f32 %v2676_v47, 0.3  ;;  %v2677_v56 = vmin.f32 %v2675_v16, 0.3  ;;  %v2593_v46 = vadd.f32 %v2589_v20, %v2481_v44  ;;  %v2592_v34 = vadd.f32 %v2587_v12, %v2480_v59 }
 0x2e2   : > { %v2375_v5 = vadd.f32 %v5536_v25, %v5514_v10  ;;  %v2374_v3 = vadd.f32 %v5538_v63, %v5516_v22  ;;  %v2427_v11 = vadd.f32 %v2425_v41, %v2361_v15  ;;  %v2426_v17 = vadd.f32 %v2424_v4, %v2360_v27  ;;  %p3215_p1 = pnand %p3214_p13, %p3208_p7 }
 0x2e3   : > { %3073 = vst.msk [vmem:[%s5625_s5 + $0x18] sm:$0xff] %vm2670_vm0, %v2678_v40  ;;  %3072 = vst.msk [vmem:[%s5625_s5 + $0x10] sm:$0xff] %vm2670_vm0, %v2677_v56  ;;  %v2685_v29 = vadd.f32 %v2683_v39, %v2593_v46  ;;  %v2684_v7 = vadd.f32 %v2683_v39, %v2592_v34  ;;  %v2437_v47 = vmul.f32 %v5198_v31, %v2435_v6  ;;  %v2710_v10 = vstv %s5639_s6 }
 0x2e4   : > { %v2603_v1 = vpop.permute.xlu1 %2602  ;;  %v2601_v53 = vpop.permute.xlu0 %2600  ;;  %v2436_v16 = vmul.f32 %v5201_v43, %v2435_v6  ;;  %v2523_v25 = vadd.f32 %v5560_v26, %v2427_v11  ;;  %v2522_v22 = vadd.f32 %v5562_v52, %v2426_v17  ;;  %v2388_v31 = vadd.f32 %v5542_v42, %v5522_v32 }
 0x2e5   : > { %v2687_v2 = vmin.f32 %v2685_v29, 0.3  ;;  %v2686_v61 = vmin.f32 %v2684_v7, 0.3  ;;  %v2607_v19 = vadd.f32 %v2603_v1, %v2495_v36  ;;  %v2606_v18 = vadd.f32 %v2601_v53, %v2494_v33 }
 0x2e6   : > { %v2433_v43 = vadd.f32 %v2431_v37, %v2375_v5  ;;  %v2432_v28 = vadd.f32 %v2430_v21, %v2374_v3  ;;  %v2439_v50 = vadd.f32 %v2437_v47, %v2389_v8  ;;  %v2438_v42 = vadd.f32 %v2436_v16, %v2388_v31 }
 0x2e7   : > { %3076 = vst.msk [vmem:[%s5625_s5 + $0x28] sm:$0xff] %vm2670_vm0, %v2687_v2  ;;  %3075 = vst.msk [vmem:[%s5625_s5 + $0x20] sm:$0xff] %vm2670_vm0, %v2686_v61  ;;  %v2694_v49 = vadd.f32 %v2692_v62, %v2607_v19  ;;  %v2693_v51 = vadd.f32 %v2692_v62, %v2606_v18  ;;  %v2719_v34 = vstv %s5665_s7  ;;  %v2728_v15 = vstv %s5680_s9 }
 0x2e8   : > { %v2617_v60 = vpop.permute.xlu1 %2616  ;;  %v2615_v48 = vpop.permute.xlu0 %2614  ;;  %v2537_v56 = vadd.f32 %v5565_v14, %v2433_v43  ;;  %v2536_v46 = vadd.f32 %v5567_v0, %v2432_v28  ;;  %v2551_v36 = vadd.f32 %v5582_v30, %v2439_v50  ;;  %v2550_v33 = vadd.f32 %v5584_v55, %v2438_v42 }
 0x2e9   : > { %v2696_v13 = vmin.f32 %v2694_v49, 0.3  ;;  %v2695_v39 = vmin.f32 %v2693_v51, 0.3  ;;  %v2621_v44 = vadd.f32 %v2617_v60, %v2509_v45  ;;  %v2620_v59 = vadd.f32 %v2615_v48, %v2508_v24 }
 0x2eb   : > { %3079 = vst.msk [vmem:[%s5625_s5 + $0x38] sm:$0xff] %vm2670_vm0, %v2696_v13  ;;  %3078 = vst.msk [vmem:[%s5625_s5 + $0x30] sm:$0xff] %vm2670_vm0, %v2695_v39  ;;  %v2703_v63 = vadd.f32 %v2701_v23, %v2621_v44  ;;  %v2702_v38 = vadd.f32 %v2701_v23, %v2620_v59 }
 0x2ec   : > { %v2631_v26 = vpop.permute.xlu1 %2630  ;;  %v2629_v58 = vpop.permute.xlu0 %2628 }
 0x2ed   : > { %v2705_v52 = vmin.f32 %v2703_v63, 0.3  ;;  %v2704_v20 = vmin.f32 %v2702_v38, 0.3  ;;  %v2635_v12 = vadd.f32 %v2631_v26, %v2523_v25  ;;  %v2634_v40 = vadd.f32 %v2629_v58, %v2522_v22 }
 0x2ef   : > { %3082 = vst.msk [vmem:[%s5625_s5 + $0x48] sm:$0xff] %vm2670_vm0, %v2705_v52  ;;  %3081 = vst.msk [vmem:[%s5625_s5 + $0x40] sm:$0xff] %vm2670_vm0, %v2704_v20  ;;  %v2712_v57 = vadd.f32 %v2710_v10, %v2635_v12  ;;  %v2711_v32 = vadd.f32 %v2710_v10, %v2634_v40 }
 0x2f0   : > { %v2645_v41 = vpop.permute.xlu1 %2644  ;;  %v2643_v4 = vpop.permute.xlu0 %2642 }
 0x2f1   : > { %v2714_v35 = vmin.f32 %v2712_v57, 0.3  ;;  %v2713_v62 = vmin.f32 %v2711_v32, 0.3  ;;  %v2649_v14 = vadd.f32 %v2645_v41, %v2537_v56  ;;  %v2648_v0 = vadd.f32 %v2643_v4, %v2536_v46 }
 0x2f3   : > { %3085 = vst.msk [vmem:[%s5625_s5 + $0x58] sm:$0xff] %vm2670_vm0, %v2714_v35  ;;  %3084 = vst.msk [vmem:[%s5625_s5 + $0x50] sm:$0xff] %vm2670_vm0, %v2713_v62  ;;  %v2721_v29 = vadd.f32 %v2719_v34, %v2649_v14  ;;  %v2720_v7 = vadd.f32 %v2719_v34, %v2648_v0 }
 0x2f4   : > { %v2659_v27 = vpop.permute.xlu1 %2658  ;;  %v2657_v54 = vpop.permute.xlu0 %2656 }
 0x2f5   : > { %v2723_v9 = vmin.f32 %v2721_v29, 0.3  ;;  %v2722_v1 = vmin.f32 %v2720_v7, 0.3  ;;  %v2663_v53 = vadd.f32 %v2659_v27, %v2551_v36  ;;  %v2662_v2 = vadd.f32 %v2657_v54, %v2550_v33 }
 0x2f7   : > { %3088 = vst.msk [vmem:[%s5625_s5 + $0x68] sm:$0xff] %vm2670_vm0, %v2723_v9  ;;  %3087 = vst.msk [vmem:[%s5625_s5 + $0x60] sm:$0xff] %vm2670_vm0, %v2722_v1  ;;  %v2730_v30 = vadd.f32 %v2728_v15, %v2663_v53  ;;  %v2729_v55 = vadd.f32 %v2728_v15, %v2662_v2 }
 0x2f9   : > { %v2732_v61 = vmin.f32 %v2730_v30, 0.3  ;;  %v2731_v19 = vmin.f32 %v2729_v55, 0.3 }
 0x2fb   : > { %3091 = vst.msk [vmem:[%s5625_s5 + $0x78] sm:$0xff] %vm2670_vm0, %v2732_v61  ;;  %3090 = vst.msk [vmem:[%s5625_s5 + $0x70] sm:$0xff] %vm2670_vm0, %v2731_v19 }
 0x2fc   : > { %3218 = shalt.err (!%p3215_p1)
}
 0x2fd   : > { %s3219_s24 = scalar_lea.hbm %s5705_s19, 2048  ;;  %s3223_s4 = scalar_lea.hbm %s5759_s3, 4096 }
 0x2fe   : > { %p3220_p2 = scmp.ne.s32.totalorder %s5705_s19, %s3219_s24  ;;  %p3224_p9 = scmp.lt.u32.totalorder %s5705_s19, %s5759_s3 }
 0x2ff   : > { %p3225_p5 = scmp.lt.u32.totalorder %s3223_s4, %s3219_s24  ;;  %p3227_p10 = scmp.lt.u32.totalorder %s3219_s24, %s5705_s19 }
 0x300   : > { %p3221_p3 = pnand %p3220_p2, %p6096_p12 }
 0x301   : > { %p3226_p6 = por %p3225_p5, %p3224_p9 }
 0x302   : > { %p3222_p4 = pneg %p3221_p3 }
 0x303   : > { %p3228_p0 = por %p3227_p10, %p3226_p6 }
 0x305   : > { %p3229_p7 = pnand %p3228_p0, %p3222_p4 }
 0x307   : > { %3232 = shalt.err (!%p3229_p7)
}
 0x308   : > { %s3282_s6 = smov 128   ;;  %s3283_s7 = smov 8  }
 0x309   : > { %3107 = dma.vmem_to_hbm [thread:$0]  (%p6096_p12), %s5707_s10, 2048, %s5705_s19, %s5715_s16, %s3282_s6, %s3282_s6, %s3283_s7  }
 0x30a PF: > { %p3124_p8 = scmp.ge.s32.totalorder %s3275_s15, 2  ;;  %s2765_s9 = sand.u32 1, %s3263_s12  }
 0x30b   : > { %p6097_p11 = scmp.ne.s32.totalorder %s5768_s23, 0  ;;  %s2766_s8 = scalar_lea.sflag [#allocation3], %s2765_s9 }
 0x30d   : > { %p3117_p13 = pnand %p3124_p8, %p6097_p11 }
 0x30f   : > { %3258 = dma.done.wait (!%p3117_p13), %s2766_s8, 2048  }
 0x310   : > { %3260 = vsyncadd (!%p3117_p13), %s2766_s8, 4294965248  ;;  %p15_p1 = scmp.ge.s32.totalorder %s3329_s18, 4   ;;  %s6098_s12 = smov %s3267_s13 }
 0x311   : > { %s6099_s13 = smov %s3271_s14  ;;  %s6100_s14 = smov %s3340_s21 }
 0x312   : > { %s6101_s15 = smov %s3329_s18  ;;  %17 = sbr.rel (!%p15_p1) target bundleno = 5 (0x5), region = 85 }
 0x319   :  { %2771 = vsyncpa [#allocation3], 1 }
 0x31a   :  { %2773 = vsyncpa [#allocation3 + $0x1], 1 }
 0x31b   :  { %2774 = vsyncpa [#allocation4], 1 }
 0x31c   :  { %2776 = vsyncpa [#allocation4 + $0x1], 1 }
 0x31d   :  { %2777 = vsyncpa [#allocation6], 1 }

</bundles_post_ra>
